<compile_context>
chip_gen: v6e
topology: v6e:2x2x1
jax: 0.10.0
libtpu: 0.0.40
codegen_flags: <defaults>
</compile_context>

<pallas_src>
import functools
import math

import jax
import jax.numpy as jnp
from jax import lax
from jax.experimental import pallas as pl
from jax.experimental.pallas import tpu as pltpu


# Conv1 tap order: center tap FIRST (so the shortcut input is the lane-0 slice
# of the conv1 column scratch); remaining 3x3 taps in raster order.
_TAP_ORDER = ((1, 1), (0, 0), (0, 1), (0, 2), (1, 0), (1, 2), (2, 0), (2, 1), (2, 2))


# ----------------------------- Pallas kernel --------------------------------

def _basic_block_kernel(*refs, identity_shortcut, stride, Hout, Wout, Cin, Cout,
                        B_tile):
    if identity_shortcut:
        (xps_ref, w1_ref, s1_ref, b1_ref, w2_ref, s2_ref, b2_ref,
         o_ref, col1_ref, y1pad_ref, col2_ref) = refs
        wsc_ref = ssc_ref = bsc_ref = None
    else:
        (xps_ref, w1_ref, s1_ref, b1_ref, w2_ref, s2_ref, b2_ref,
         wsc_ref, ssc_ref, bsc_ref,
         o_ref, col1_ref, y1pad_ref, col2_ref) = refs

    M = Hout * Wout

    # ---- conv1 columns built in VMEM (no im2col HBM blow-up) ----------------
    # xps[b, a*s+c, i, j, :] == x_padded[b, s*i + a, s*j + c, :]
    for b in range(B_tile):
        for t, (kh, kw) in enumerate(_TAP_ORDER):
            plane = (kh % stride) * stride + (kw % stride)
            ro, co = kh // stride, kw // stride
            tap = xps_ref[b, plane, ro:ro + Hout, co:co + Wout, :]
            col1_ref[b * M:(b + 1) * M, t * Cin:(t + 1) * Cin] = (
                tap.reshape(M, Cin).astype(col1_ref.dtype))

    # conv1 + BN1 + ReLU: ONE (B*M, 9*Cin) x (9*Cin, Cout) bf16 matmul, f32 acc
    y1 = jnp.dot(col1_ref[...], w1_ref[...], preferred_element_type=jnp.float32)
    y1 = jnp.maximum(y1 * s1_ref[...] + b1_ref[...], 0.0)

    # Restore spatial layout with a zero halo: dense stores only (no masked
    # per-column stores).  Re-done every step so the batch axis can be
    # "parallel" (megacore-safe).
    y1pad_ref[...] = jnp.zeros(y1pad_ref.shape, y1pad_ref.dtype)
    y1pad_ref[:, 1:1 + Hout, 1:1 + Wout, :] = y1.reshape(B_tile, Hout, Wout, Cout)

    # ---- conv2 + BN2: ONE (B*M, 9*Cout) x (9*Cout, Cout) bf16 matmul --------
    for b in range(B_tile):
        for t in range(9):
            kh, kw = t // 3, t % 3
            tap = y1pad_ref[b, kh:kh + Hout, kw:kw + Wout, :]
            col2_ref[b * M:(b + 1) * M, t * Cout:(t + 1) * Cout] = (
                tap.reshape(M, Cout).astype(col2_ref.dtype))
    y2 = jnp.dot(col2_ref[...], w2_ref[...], preferred_element_type=jnp.float32)
    y2 = y2 * s2_ref[...] + b2_ref[...]

    # ---- shortcut: the center tap is the first Cin lanes of col1 ------------
    x_center = col1_ref[:, 0:Cin]                       # (B*M, Cin) bf16
    if identity_shortcut:
        sc = x_center.astype(jnp.float32)
    else:
        sc = (jnp.dot(x_center, wsc_ref[...], preferred_element_type=jnp.float32)
              * ssc_ref[...] + bsc_ref[...])

    out = jnp.maximum(y2 + sc, 0.0)
    o_ref[...] = out.reshape(B_tile, M, Cout).astype(o_ref.dtype)


# ------------------------------- glue / wrapper ------------------------------

def _fold_bn(gamma, beta, mean, var, eps=1e-5):
    scale = gamma / jnp.sqrt(var + eps)
    bias = beta - mean * scale
    return (scale.reshape(1, -1).astype(jnp.float32),
            bias.reshape(1, -1).astype(jnp.float32))


def _pick_batch_tile(N, M, per_image_bytes, budget_bytes=24 << 20):
    """Images per grid step: amortize per-step overhead for small-M layers."""
    bt = min(N,
             max(1, 1024 // max(M, 1)),
             max(1, budget_bytes // max(per_image_bytes, 1)))
    bt = max(1, bt)
    while N % bt:
        bt -= 1
    return bt


def basic_block_pallas(x_nchw, params, stride):
    """Forward pass of BasicBlock. x_nchw: (N, Cin, H, W) float32 (PyTorch layout)."""
    N, Cin, H, W = x_nchw.shape
    Cout = params["w1"].shape[-1]
    Hout = (H - 1) // stride + 1
    Wout = (W - 1) // stride + 1
    M = Hout * Wout
    K1 = 9 * Cin
    K2 = 9 * Cout

    # --- padded NHWC input, stride folded out as s x s "parity planes":
    #     xps[n, a*s+c, i, j, :] = x_padded[n, s*i + a, s*j + c, :].
    #     Same total bytes as the input (no im2col duplication); kept in f32 so
    #     in-kernel tap slicing stays on unpacked 32-bit data (MXU still gets
    #     bf16 operands via the in-kernel cast).
    x = jnp.transpose(x_nchw, (0, 2, 3, 1)).astype(jnp.float32)        # NHWC
    Hq = Hout + 2 // stride
    Wq = Wout + 2 // stride
    xp = jnp.pad(x, ((0, 0), (1, 1), (1, 1), (0, 0)))                  # conv pad=1
    Hp, Wp = stride * Hq, stride * Wq
    xp = jnp.pad(xp, ((0, 0), (0, max(Hp - xp.shape[1], 0)),
                      (0, max(Wp - xp.shape[2], 0)), (0, 0)))[:, :Hp, :Wp, :]
    xps = xp.reshape(N, Hq, stride, Wq, stride, Cin)
    xps = xps.transpose(0, 2, 4, 1, 3, 5).reshape(N, stride * stride, Hq, Wq, Cin)

    # --- weights: bf16 MXU operands, folded BN in f32 -------------------------
    w1hwio = params["w1"]
    w1cat = jnp.concatenate([w1hwio[kh, kw] for kh, kw in _TAP_ORDER],
                            axis=0).astype(jnp.bfloat16)               # (9Cin, Cout)
    w2cat = params["w2"].reshape(K2, Cout).astype(jnp.bfloat16)        # raster order
    s1, b1 = _fold_bn(params["g1"], params["be1"], params["m1"], params["v1"])
    s2, b2 = _fold_bn(params["g2"], params["be2"], params["m2"], params["v2"])

    identity_shortcut = (stride == 1) and (Cin == Cout)

    # --- batch tiling + explicit VMEM budget ----------------------------------
    bytes_per_img = (2 * stride * stride * Hq * Wq * Cin * 4           # xps, 2 bufs, f32
                     + M * K1 * 2 + M * K2 * 2                         # col1/col2 (bf16)
                     + (Hout + 2) * (Wout + 2) * Cout * 4              # y1pad (f32)
                     + 2 * M * Cout * 4)                               # out, 2 bufs, f32
    B_tile = _pick_batch_tile(N, M, bytes_per_img)

    const = dict(pipeline_mode=pl.Buffered(1))    # grid-invariant: single buffer
    vec_spec = pl.BlockSpec((1, Cout), lambda n: (0, 0), **const)
    in_specs = [
        pl.BlockSpec((B_tile, stride * stride, Hq, Wq, Cin),
                     lambda n: (n, 0, 0, 0, 0)),
        pl.BlockSpec((K1, Cout), lambda n: (0, 0), **const),
        vec_spec, vec_spec,
        pl.BlockSpec((K2, Cout), lambda n: (0, 0), **const),
        vec_spec, vec_spec,
    ]
    inputs = [xps, w1cat, s1, b1, w2cat, s2, b2]
    if not identity_shortcut:
        wsc = params["wsc"][0, 0].astype(jnp.bfloat16)                 # (Cin, Cout)
        ssc, bsc = _fold_bn(params["gsc"], params["besc"], params["msc"], params["vsc"])
        in_specs += [pl.BlockSpec((Cin, Cout), lambda n: (0, 0), **const),
                     vec_spec, vec_spec]
        inputs += [wsc, ssc, bsc]

    weight_bytes = (K1 * Cout + K2 * Cout
                    + (0 if identity_shortcut else Cin * Cout)) * 2
    vmem_need = B_tile * bytes_per_img + weight_bytes + (8 << 20)
    vmem_limit = int(min(max(vmem_need, 16 << 20), 48 << 20))          # v7x-safe cap

    kernel = functools.partial(
        _basic_block_kernel, identity_shortcut=identity_shortcut, stride=stride,
        Hout=Hout, Wout=Wout, Cin=Cin, Cout=Cout, B_tile=B_tile)

    grid_spec = pltpu.PrefetchScalarGridSpec(
        num_scalar_prefetch=0,
        grid=(N // B_tile,),
        in_specs=in_specs,
        out_specs=pl.BlockSpec((B_tile, M, Cout), lambda n: (n, 0, 0)),
        scratch_shapes=[
            pltpu.VMEM((B_tile * M, K1), jnp.bfloat16),                 # conv1 columns
            pltpu.VMEM((B_tile, Hout + 2, Wout + 2, Cout), jnp.float32),  # padded y1
            pltpu.VMEM((B_tile * M, K2), jnp.bfloat16),                 # conv2 columns
        ],
    )

    out = pl.pallas_call(
        kernel,
        out_shape=jax.ShapeDtypeStruct((N, M, Cout), jnp.float32),
        grid_spec=grid_spec,
        compiler_params=pltpu.CompilerParams(
            dimension_semantics=("parallel",),
            vmem_limit_bytes=vmem_limit),
    )(*inputs)

    out = out.reshape(N, Hout, Wout, Cout)
    return jnp.transpose(out, (0, 3, 1, 2))                            # back to NCHW


# ---------------------------- pure-JAX reference -----------------------------

def basic_block_ref(x_nchw, params, stride, matmul_dtype=jnp.float32):
    """matmul_dtype=f32  -> exact module semantics (f32, HIGHEST precision).
       matmul_dtype=bf16 -> matches the kernel's quantization points exactly."""
    md = matmul_dtype
    x = jnp.transpose(x_nchw, (0, 2, 3, 1)).astype(jnp.float32)
    dn = ("NHWC", "HWIO", "NHWC")
    prec = lax.Precision.HIGHEST
    Cin = x.shape[-1]
    Cout = params["w1"].shape[-1]

    s1, b1 = _fold_bn(params["g1"], params["be1"], params["m1"], params["v1"])
    s2, b2 = _fold_bn(params["g2"], params["be2"], params["m2"], params["v2"])

    xq = x.astype(md)
    y = lax.conv_general_dilated(xq, params["w1"].astype(md), (stride, stride),
                                 ((1, 1), (1, 1)), dimension_numbers=dn,
                                 precision=prec, preferred_element_type=jnp.float32)
    y = jnp.maximum(y * s1 + b1, 0.0)
    y = lax.conv_general_dilated(y.astype(md), params["w2"].astype(md), (1, 1),
                                 ((1, 1), (1, 1)), dimension_numbers=dn,
                                 precision=prec, preferred_element_type=jnp.float32)
    y = y * s2 + b2

    if (stride != 1) or (Cin != Cout):
        ssc, bsc = _fold_bn(params["gsc"], params["besc"], params["msc"], params["vsc"])
        sc = lax.conv_general_dilated(xq, params["wsc"].astype(md), (stride, stride),
                                      ((0, 0), (0, 0)), dimension_numbers=dn,
                                      precision=prec,
                                      preferred_element_type=jnp.float32)
        sc = sc * ssc + bsc
    else:
        sc = xq.astype(jnp.float32)

    out = jnp.maximum(y + sc, 0.0)
    return jnp.transpose(out, (0, 3, 1, 2))


# ----------------------------- param construction ----------------------------

def init_params(key, cin, cout, stride):
    ks = jax.random.split(key, 16)
    fan1 = 3 * 3 * cin
    fan2 = 3 * 3 * cout
    p = {
        "w1": jax.random.normal(ks[0], (3, 3, cin, cout), jnp.float32) / math.sqrt(fan1),
        "g1": jax.random.uniform(ks[1], (cout,), jnp.float32, 0.5, 1.5),
        "be1": 0.1 * jax.random.normal(ks[2], (cout,), jnp.float32),
        "m1": 0.1 * jax.random.normal(ks[3], (cout,), jnp.float32),
        "v1": jax.random.uniform(ks[4], (cout,), jnp.float32, 0.5, 1.5),
        "w2": jax.random.normal(ks[5], (3, 3, cout, cout), jnp.float32) / math.sqrt(fan2),
        "g2": jax.random.uniform(ks[6], (cout,), jnp.float32, 0.5, 1.5),
        "be2": 0.1 * jax.random.normal(ks[7], (cout,), jnp.float32),
        "m2": 0.1 * jax.random.normal(ks[8], (cout,), jnp.float32),
        "v2": jax.random.uniform(ks[9], (cout,), jnp.float32, 0.5, 1.5),
    }
    if (stride != 1) or (cin != cout):
        p.update({
            "wsc": jax.random.normal(ks[10], (1, 1, cin, cout), jnp.float32) / math.sqrt(cin),
            "gsc": jax.random.uniform(ks[11], (cout,), jnp.float32, 0.5, 1.5),
            "besc": 0.1 * jax.random.normal(ks[12], (cout,), jnp.float32),
            "msc": 0.1 * jax.random.normal(ks[13], (cout,), jnp.float32),
            "vsc": jax.random.uniform(ks[14], (cout,), jnp.float32, 0.5, 1.5),
        })
    return p


# ------------------------------------ main ------------------------------------

if __name__ == "__main__":
    key = jax.random.PRNGKey(0)
    k1, k2, k3, k4 = jax.random.split(key, 4)

    # Case 1: projection shortcut (stride=2, channel expansion)
    N, Cin, Cout, H, W, stride = 2, 4, 8, 16, 16, 2
    x1 = jax.random.normal(k1, (N, Cin, H, W), jnp.float32)
    p1 = init_params(k2, Cin, Cout, stride)
    out1 = jax.block_until_ready(basic_block_pallas(x1, p1, stride))
    assert out1.shape == (N, Cout, H // stride, W // stride)
    # Tight check vs a bf16-matched reference, loose check vs the true f32 module
    # (matmul operands are bf16 in the kernel -> documented precision loss).
    ref1_bf16 = basic_block_ref(x1, p1, stride, matmul_dtype=jnp.bfloat16)
    ref1_f32 = basic_block_ref(x1, p1, stride)
    assert jnp.allclose(out1, ref1_bf16, atol=2e-3, rtol=2e-3), "projection: bf16-matched mismatch"
    assert jnp.allclose(out1, ref1_f32, atol=6e-2, rtol=6e-2), "projection: f32 module mismatch"

    # Case 2: identity shortcut (stride=1, same channels)
    N, Cin, Cout, H, W, stride = 2, 8, 8, 16, 16, 1
    x2 = jax.random.normal(k3, (N, Cin, H, W), jnp.float32)
    p2 = init_params(k4, Cin, Cout, stride)
    out2 = jax.block_until_ready(basic_block_pallas(x2, p2, stride))
    assert out2.shape == (N, Cout, H, W)
    ref2_bf16 = basic_block_ref(x2, p2, stride, matmul_dtype=jnp.bfloat16)
    ref2_f32 = basic_block_ref(x2, p2, stride)
    assert jnp.allclose(out2, ref2_bf16, atol=2e-3, rtol=2e-3), "identity: bf16-matched mismatch"
    assert jnp.allclose(out2, ref2_f32, atol=6e-2, rtol=6e-2), "identity: f32 module mismatch"

    print("KERNEL_OK")
</pallas_src>

<mosaic_0001>
module attributes {stable_mosaic.version = 11 : i64} {
  func.func @_basic_block_kernel(%arg0: i32, %arg1: memref<2x4x9x9x4xf32, #tpu.memory_space<vmem>>, %arg2: memref<36x8xbf16, #tpu.memory_space<vmem>>, %arg3: memref<1x8xf32, #tpu.memory_space<vmem>>, %arg4: memref<1x8xf32, #tpu.memory_space<vmem>>, %arg5: memref<72x8xbf16, #tpu.memory_space<vmem>>, %arg6: memref<1x8xf32, #tpu.memory_space<vmem>>, %arg7: memref<1x8xf32, #tpu.memory_space<vmem>>, %arg8: memref<4x8xbf16, #tpu.memory_space<vmem>>, %arg9: memref<1x8xf32, #tpu.memory_space<vmem>>, %arg10: memref<1x8xf32, #tpu.memory_space<vmem>>, %arg11: memref<2x64x8xf32, #tpu.memory_space<vmem>>, %arg12: memref<128x36xbf16, #tpu.memory_space<vmem>>, %arg13: memref<2x10x10x8xf32, #tpu.memory_space<vmem>>, %arg14: memref<128x72xbf16, #tpu.memory_space<vmem>>) attributes {dimension_semantics = [#tpu.dimension_semantics<parallel>], iteration_bounds = array<i64: 1>, scalar_prefetch = 0 : i64, scratch_operands = 3 : i64, tpu.core_type = #tpu.core_type<tc>, window_params = [{transform_indices = @transform_0, window_bounds = array<i64: 2, 4, 9, 9, 4>}, {pipeline_mode = #tpu.pipeline_mode<synchronous>, transform_indices = @transform_1, window_bounds = array<i64: 36, 8>}, {pipeline_mode = #tpu.pipeline_mode<synchronous>, transform_indices = @transform_2, window_bounds = array<i64: 1, 8>}, {pipeline_mode = #tpu.pipeline_mode<synchronous>, transform_indices = @transform_3, window_bounds = array<i64: 1, 8>}, {pipeline_mode = #tpu.pipeline_mode<synchronous>, transform_indices = @transform_4, window_bounds = array<i64: 72, 8>}, {pipeline_mode = #tpu.pipeline_mode<synchronous>, transform_indices = @transform_5, window_bounds = array<i64: 1, 8>}, {pipeline_mode = #tpu.pipeline_mode<synchronous>, transform_indices = @transform_6, window_bounds = array<i64: 1, 8>}, {pipeline_mode = #tpu.pipeline_mode<synchronous>, transform_indices = @transform_7, window_bounds = array<i64: 4, 8>}, {pipeline_mode = #tpu.pipeline_mode<synchronous>, transform_indices = @transform_8, window_bounds = array<i64: 1, 8>}, {pipeline_mode = #tpu.pipeline_mode<synchronous>, transform_indices = @transform_9, window_bounds = array<i64: 1, 8>}, {transform_indices = @transform_10, window_bounds = array<i64: 2, 64, 8>}]} {
    %c0 = arith.constant 0 : index
    %c3 = arith.constant 3 : index
    %c0_0 = arith.constant 0 : index
    %c0_1 = arith.constant 0 : index
    %c0_2 = arith.constant 0 : index
    %0 = vector.load %arg1[%c0, %c3, %c0_0, %c0_1, %c0_2] : memref<2x4x9x9x4xf32, #tpu.memory_space<vmem>>, vector<1x1x8x8x4xf32>
    %1 = vector.shape_cast %0 : vector<1x1x8x8x4xf32> to vector<8x8x4xf32>
    %2 = vector.shape_cast %1 : vector<8x8x4xf32> to vector<64x4xf32>
    %3 = arith.truncf %2 : vector<64x4xf32> to vector<64x4xbf16>
    %c0_3 = arith.constant 0 : index
    %c0_4 = arith.constant 0 : index
    %4 = vector.load %arg12[%c0_3, %c0_4] : memref<128x36xbf16, #tpu.memory_space<vmem>>, vector<64x4xbf16>
    tpu.vector_store %arg12[%c0_3, %c0_4], %3 {strides = array<i32>} : memref<128x36xbf16, #tpu.memory_space<vmem>>, vector<64x4xbf16>,
    %c0_5 = arith.constant 0 : index
    %c0_6 = arith.constant 0 : index
    %c0_7 = arith.constant 0 : index
    %c0_8 = arith.constant 0 : index
    %c0_9 = arith.constant 0 : index
    %5 = vector.load %arg1[%c0_5, %c0_6, %c0_7, %c0_8, %c0_9] : memref<2x4x9x9x4xf32, #tpu.memory_space<vmem>>, vector<1x1x8x8x4xf32>
    %6 = vector.shape_cast %5 : vector<1x1x8x8x4xf32> to vector<8x8x4xf32>
    %7 = vector.shape_cast %6 : vector<8x8x4xf32> to vector<64x4xf32>
    %8 = arith.truncf %7 : vector<64x4xf32> to vector<64x4xbf16>
    %c0_10 = arith.constant 0 : index
    %c4 = arith.constant 4 : index
    %9 = vector.load %arg12[%c0_10, %c4] : memref<128x36xbf16, #tpu.memory_space<vmem>>, vector<64x4xbf16>
    tpu.vector_store %arg12[%c0_10, %c4], %8 {strides = array<i32>} : memref<128x36xbf16, #tpu.memory_space<vmem>>, vector<64x4xbf16>,
    %c0_11 = arith.constant 0 : index
    %c1 = arith.constant 1 : index
    %c0_12 = arith.constant 0 : index
    %c0_13 = arith.constant 0 : index
    %c0_14 = arith.constant 0 : index
    %10 = vector.load %arg1[%c0_11, %c1, %c0_12, %c0_13, %c0_14] : memref<2x4x9x9x4xf32, #tpu.memory_space<vmem>>, vector<1x1x8x8x4xf32>
    %11 = vector.shape_cast %10 : vector<1x1x8x8x4xf32> to vector<8x8x4xf32>
    %12 = vector.shape_cast %11 : vector<8x8x4xf32> to vector<64x4xf32>
    %13 = arith.truncf %12 : vector<64x4xf32> to vector<64x4xbf16>
    %c0_15 = arith.constant 0 : index
    %c8 = arith.constant 8 : index
    %14 = vector.load %arg12[%c0_15, %c8] : memref<128x36xbf16, #tpu.memory_space<vmem>>, vector<64x4xbf16>
    tpu.vector_store %arg12[%c0_15, %c8], %13 {strides = array<i32>} : memref<128x36xbf16, #tpu.memory_space<vmem>>, vector<64x4xbf16>,
    %c0_16 = arith.constant 0 : index
    %c0_17 = arith.constant 0 : index
    %c0_18 = arith.constant 0 : index
    %c1_19 = arith.constant 1 : index
    %c0_20 = arith.constant 0 : index
    %15 = vector.load %arg1[%c0_16, %c0_17, %c0_18, %c1_19, %c0_20] : memref<2x4x9x9x4xf32, #tpu.memory_space<vmem>>, vector<1x1x8x8x4xf32>
    %16 = vector.shape_cast %15 : vector<1x1x8x8x4xf32> to vector<8x8x4xf32>
    %17 = vector.shape_cast %16 : vector<8x8x4xf32> to vector<64x4xf32>
    %18 = arith.truncf %17 : vector<64x4xf32> to vector<64x4xbf16>
    %c0_21 = arith.constant 0 : index
    %c12 = arith.constant 12 : index
    %19 = vector.load %arg12[%c0_21, %c12] : memref<128x36xbf16, #tpu.memory_space<vmem>>, vector<64x4xbf16>
    tpu.vector_store %arg12[%c0_21, %c12], %18 {strides = array<i32>} : memref<128x36xbf16, #tpu.memory_space<vmem>>, vector<64x4xbf16>,
    %c0_22 = arith.constant 0 : index
    %c2 = arith.constant 2 : index
    %c0_23 = arith.constant 0 : index
    %c0_24 = arith.constant 0 : index
    %c0_25 = arith.constant 0 : index
    %20 = vector.load %arg1[%c0_22, %c2, %c0_23, %c0_24, %c0_25] : memref<2x4x9x9x4xf32, #tpu.memory_space<vmem>>, vector<1x1x8x8x4xf32>
    %21 = vector.shape_cast %20 : vector<1x1x8x8x4xf32> to vector<8x8x4xf32>
    %22 = vector.shape_cast %21 : vector<8x8x4xf32> to vector<64x4xf32>
    %23 = arith.truncf %22 : vector<64x4xf32> to vector<64x4xbf16>
    %c0_26 = arith.constant 0 : index
    %c16 = arith.constant 16 : index
    %24 = vector.load %arg12[%c0_26, %c16] : memref<128x36xbf16, #tpu.memory_space<vmem>>, vector<64x4xbf16>
    tpu.vector_store %arg12[%c0_26, %c16], %23 {strides = array<i32>} : memref<128x36xbf16, #tpu.memory_space<vmem>>, vector<64x4xbf16>,
    %c0_27 = arith.constant 0 : index
    %c2_28 = arith.constant 2 : index
    %c0_29 = arith.constant 0 : index
    %c1_30 = arith.constant 1 : index
    %c0_31 = arith.constant 0 : index
    %25 = vector.load %arg1[%c0_27, %c2_28, %c0_29, %c1_30, %c0_31] : memref<2x4x9x9x4xf32, #tpu.memory_space<vmem>>, vector<1x1x8x8x4xf32>
    %26 = vector.shape_cast %25 : vector<1x1x8x8x4xf32> to vector<8x8x4xf32>
    %27 = vector.shape_cast %26 : vector<8x8x4xf32> to vector<64x4xf32>
    %28 = arith.truncf %27 : vector<64x4xf32> to vector<64x4xbf16>
    %c0_32 = arith.constant 0 : index
    %c20 = arith.constant 20 : index
    %29 = vector.load %arg12[%c0_32, %c20] : memref<128x36xbf16, #tpu.memory_space<vmem>>, vector<64x4xbf16>
    tpu.vector_store %arg12[%c0_32, %c20], %28 {strides = array<i32>} : memref<128x36xbf16, #tpu.memory_space<vmem>>, vector<64x4xbf16>,
    %c0_33 = arith.constant 0 : index
    %c0_34 = arith.constant 0 : index
    %c1_35 = arith.constant 1 : index
    %c0_36 = arith.constant 0 : index
    %c0_37 = arith.constant 0 : index
    %30 = vector.load %arg1[%c0_33, %c0_34, %c1_35, %c0_36, %c0_37] : memref<2x4x9x9x4xf32, #tpu.memory_space<vmem>>, vector<1x1x8x8x4xf32>
    %31 = vector.shape_cast %30 : vector<1x1x8x8x4xf32> to vector<8x8x4xf32>
    %32 = vector.shape_cast %31 : vector<8x8x4xf32> to vector<64x4xf32>
    %33 = arith.truncf %32 : vector<64x4xf32> to vector<64x4xbf16>
    %c0_38 = arith.constant 0 : index
    %c24 = arith.constant 24 : index
    %34 = vector.load %arg12[%c0_38, %c24] : memref<128x36xbf16, #tpu.memory_space<vmem>>, vector<64x4xbf16>
    tpu.vector_store %arg12[%c0_38, %c24], %33 {strides = array<i32>} : memref<128x36xbf16, #tpu.memory_space<vmem>>, vector<64x4xbf16>,
    %c0_39 = arith.constant 0 : index
    %c1_40 = arith.constant 1 : index
    %c1_41 = arith.constant 1 : index
    %c0_42 = arith.constant 0 : index
    %c0_43 = arith.constant 0 : index
    %35 = vector.load %arg1[%c0_39, %c1_40, %c1_41, %c0_42, %c0_43] : memref<2x4x9x9x4xf32, #tpu.memory_space<vmem>>, vector<1x1x8x8x4xf32>
    %36 = vector.shape_cast %35 : vector<1x1x8x8x4xf32> to vector<8x8x4xf32>
    %37 = vector.shape_cast %36 : vector<8x8x4xf32> to vector<64x4xf32>
    %38 = arith.truncf %37 : vector<64x4xf32> to vector<64x4xbf16>
    %c0_44 = arith.constant 0 : index
    %c28 = arith.constant 28 : index
    %39 = vector.load %arg12[%c0_44, %c28] : memref<128x36xbf16, #tpu.memory_space<vmem>>, vector<64x4xbf16>
    tpu.vector_store %arg12[%c0_44, %c28], %38 {strides = array<i32>} : memref<128x36xbf16, #tpu.memory_space<vmem>>, vector<64x4xbf16>,
    %c0_45 = arith.constant 0 : index
    %c0_46 = arith.constant 0 : index
    %c1_47 = arith.constant 1 : index
    %c1_48 = arith.constant 1 : index
    %c0_49 = arith.constant 0 : index
    %40 = vector.load %arg1[%c0_45, %c0_46, %c1_47, %c1_48, %c0_49] : memref<2x4x9x9x4xf32, #tpu.memory_space<vmem>>, vector<1x1x8x8x4xf32>
    %41 = vector.shape_cast %40 : vector<1x1x8x8x4xf32> to vector<8x8x4xf32>
    %42 = vector.shape_cast %41 : vector<8x8x4xf32> to vector<64x4xf32>
    %43 = arith.truncf %42 : vector<64x4xf32> to vector<64x4xbf16>
    %c0_50 = arith.constant 0 : index
    %c32 = arith.constant 32 : index
    %44 = vector.load %arg12[%c0_50, %c32] : memref<128x36xbf16, #tpu.memory_space<vmem>>, vector<64x4xbf16>
    tpu.vector_store %arg12[%c0_50, %c32], %43 {strides = array<i32>} : memref<128x36xbf16, #tpu.memory_space<vmem>>, vector<64x4xbf16>,
    %c1_51 = arith.constant 1 : index
    %c3_52 = arith.constant 3 : index
    %c0_53 = arith.constant 0 : index
    %c0_54 = arith.constant 0 : index
    %c0_55 = arith.constant 0 : index
    %45 = vector.load %arg1[%c1_51, %c3_52, %c0_53, %c0_54, %c0_55] : memref<2x4x9x9x4xf32, #tpu.memory_space<vmem>>, vector<1x1x8x8x4xf32>
    %46 = vector.shape_cast %45 : vector<1x1x8x8x4xf32> to vector<8x8x4xf32>
    %47 = vector.shape_cast %46 : vector<8x8x4xf32> to vector<64x4xf32>
    %48 = arith.truncf %47 : vector<64x4xf32> to vector<64x4xbf16>
    %c64 = arith.constant 64 : index
    %c0_56 = arith.constant 0 : index
    %49 = vector.load %arg12[%c64, %c0_56] : memref<128x36xbf16, #tpu.memory_space<vmem>>, vector<64x4xbf16>
    tpu.vector_store %arg12[%c64, %c0_56], %48 {strides = array<i32>} : memref<128x36xbf16, #tpu.memory_space<vmem>>, vector<64x4xbf16>,
    %c1_57 = arith.constant 1 : index
    %c0_58 = arith.constant 0 : index
    %c0_59 = arith.constant 0 : index
    %c0_60 = arith.constant 0 : index
    %c0_61 = arith.constant 0 : index
    %50 = vector.load %arg1[%c1_57, %c0_58, %c0_59, %c0_60, %c0_61] : memref<2x4x9x9x4xf32, #tpu.memory_space<vmem>>, vector<1x1x8x8x4xf32>
    %51 = vector.shape_cast %50 : vector<1x1x8x8x4xf32> to vector<8x8x4xf32>
    %52 = vector.shape_cast %51 : vector<8x8x4xf32> to vector<64x4xf32>
    %53 = arith.truncf %52 : vector<64x4xf32> to vector<64x4xbf16>
    %c64_62 = arith.constant 64 : index
    %c4_63 = arith.constant 4 : index
    %54 = vector.load %arg12[%c64_62, %c4_63] : memref<128x36xbf16, #tpu.memory_space<vmem>>, vector<64x4xbf16>
    tpu.vector_store %arg12[%c64_62, %c4_63], %53 {strides = array<i32>} : memref<128x36xbf16, #tpu.memory_space<vmem>>, vector<64x4xbf16>,
    %c1_64 = arith.constant 1 : index
    %c1_65 = arith.constant 1 : index
    %c0_66 = arith.constant 0 : index
    %c0_67 = arith.constant 0 : index
    %c0_68 = arith.constant 0 : index
    %55 = vector.load %arg1[%c1_64, %c1_65, %c0_66, %c0_67, %c0_68] : memref<2x4x9x9x4xf32, #tpu.memory_space<vmem>>, vector<1x1x8x8x4xf32>
    %56 = vector.shape_cast %55 : vector<1x1x8x8x4xf32> to vector<8x8x4xf32>
    %57 = vector.shape_cast %56 : vector<8x8x4xf32> to vector<64x4xf32>
    %58 = arith.truncf %57 : vector<64x4xf32> to vector<64x4xbf16>
    %c64_69 = arith.constant 64 : index
    %c8_70 = arith.constant 8 : index
    %59 = vector.load %arg12[%c64_69, %c8_70] : memref<128x36xbf16, #tpu.memory_space<vmem>>, vector<64x4xbf16>
    tpu.vector_store %arg12[%c64_69, %c8_70], %58 {strides = array<i32>} : memref<128x36xbf16, #tpu.memory_space<vmem>>, vector<64x4xbf16>,
    %c1_71 = arith.constant 1 : index
    %c0_72 = arith.constant 0 : index
    %c0_73 = arith.constant 0 : index
    %c1_74 = arith.constant 1 : index
    %c0_75 = arith.constant 0 : index
    %60 = vector.load %arg1[%c1_71, %c0_72, %c0_73, %c1_74, %c0_75] : memref<2x4x9x9x4xf32, #tpu.memory_space<vmem>>, vector<1x1x8x8x4xf32>
    %61 = vector.shape_cast %60 : vector<1x1x8x8x4xf32> to vector<8x8x4xf32>
    %62 = vector.shape_cast %61 : vector<8x8x4xf32> to vector<64x4xf32>
    %63 = arith.truncf %62 : vector<64x4xf32> to vector<64x4xbf16>
    %c64_76 = arith.constant 64 : index
    %c12_77 = arith.constant 12 : index
    %64 = vector.load %arg12[%c64_76, %c12_77] : memref<128x36xbf16, #tpu.memory_space<vmem>>, vector<64x4xbf16>
    tpu.vector_store %arg12[%c64_76, %c12_77], %63 {strides = array<i32>} : memref<128x36xbf16, #tpu.memory_space<vmem>>, vector<64x4xbf16>,
    %c1_78 = arith.constant 1 : index
    %c2_79 = arith.constant 2 : index
    %c0_80 = arith.constant 0 : index
    %c0_81 = arith.constant 0 : index
    %c0_82 = arith.constant 0 : index
    %65 = vector.load %arg1[%c1_78, %c2_79, %c0_80, %c0_81, %c0_82] : memref<2x4x9x9x4xf32, #tpu.memory_space<vmem>>, vector<1x1x8x8x4xf32>
    %66 = vector.shape_cast %65 : vector<1x1x8x8x4xf32> to vector<8x8x4xf32>
    %67 = vector.shape_cast %66 : vector<8x8x4xf32> to vector<64x4xf32>
    %68 = arith.truncf %67 : vector<64x4xf32> to vector<64x4xbf16>
    %c64_83 = arith.constant 64 : index
    %c16_84 = arith.constant 16 : index
    %69 = vector.load %arg12[%c64_83, %c16_84] : memref<128x36xbf16, #tpu.memory_space<vmem>>, vector<64x4xbf16>
    tpu.vector_store %arg12[%c64_83, %c16_84], %68 {strides = array<i32>} : memref<128x36xbf16, #tpu.memory_space<vmem>>, vector<64x4xbf16>,
    %c1_85 = arith.constant 1 : index
    %c2_86 = arith.constant 2 : index
    %c0_87 = arith.constant 0 : index
    %c1_88 = arith.constant 1 : index
    %c0_89 = arith.constant 0 : index
    %70 = vector.load %arg1[%c1_85, %c2_86, %c0_87, %c1_88, %c0_89] : memref<2x4x9x9x4xf32, #tpu.memory_space<vmem>>, vector<1x1x8x8x4xf32>
    %71 = vector.shape_cast %70 : vector<1x1x8x8x4xf32> to vector<8x8x4xf32>
    %72 = vector.shape_cast %71 : vector<8x8x4xf32> to vector<64x4xf32>
    %73 = arith.truncf %72 : vector<64x4xf32> to vector<64x4xbf16>
    %c64_90 = arith.constant 64 : index
    %c20_91 = arith.constant 20 : index
    %74 = vector.load %arg12[%c64_90, %c20_91] : memref<128x36xbf16, #tpu.memory_space<vmem>>, vector<64x4xbf16>
    tpu.vector_store %arg12[%c64_90, %c20_91], %73 {strides = array<i32>} : memref<128x36xbf16, #tpu.memory_space<vmem>>, vector<64x4xbf16>,
    %c1_92 = arith.constant 1 : index
    %c0_93 = arith.constant 0 : index
    %c1_94 = arith.constant 1 : index
    %c0_95 = arith.constant 0 : index
    %c0_96 = arith.constant 0 : index
    %75 = vector.load %arg1[%c1_92, %c0_93, %c1_94, %c0_95, %c0_96] : memref<2x4x9x9x4xf32, #tpu.memory_space<vmem>>, vector<1x1x8x8x4xf32>
    %76 = vector.shape_cast %75 : vector<1x1x8x8x4xf32> to vector<8x8x4xf32>
    %77 = vector.shape_cast %76 : vector<8x8x4xf32> to vector<64x4xf32>
    %78 = arith.truncf %77 : vector<64x4xf32> to vector<64x4xbf16>
    %c64_97 = arith.constant 64 : index
    %c24_98 = arith.constant 24 : index
    %79 = vector.load %arg12[%c64_97, %c24_98] : memref<128x36xbf16, #tpu.memory_space<vmem>>, vector<64x4xbf16>
    tpu.vector_store %arg12[%c64_97, %c24_98], %78 {strides = array<i32>} : memref<128x36xbf16, #tpu.memory_space<vmem>>, vector<64x4xbf16>,
    %c1_99 = arith.constant 1 : index
    %c1_100 = arith.constant 1 : index
    %c1_101 = arith.constant 1 : index
    %c0_102 = arith.constant 0 : index
    %c0_103 = arith.constant 0 : index
    %80 = vector.load %arg1[%c1_99, %c1_100, %c1_101, %c0_102, %c0_103] : memref<2x4x9x9x4xf32, #tpu.memory_space<vmem>>, vector<1x1x8x8x4xf32>
    %81 = vector.shape_cast %80 : vector<1x1x8x8x4xf32> to vector<8x8x4xf32>
    %82 = vector.shape_cast %81 : vector<8x8x4xf32> to vector<64x4xf32>
    %83 = arith.truncf %82 : vector<64x4xf32> to vector<64x4xbf16>
    %c64_104 = arith.constant 64 : index
    %c28_105 = arith.constant 28 : index
    %84 = vector.load %arg12[%c64_104, %c28_105] : memref<128x36xbf16, #tpu.memory_space<vmem>>, vector<64x4xbf16>
    tpu.vector_store %arg12[%c64_104, %c28_105], %83 {strides = array<i32>} : memref<128x36xbf16, #tpu.memory_space<vmem>>, vector<64x4xbf16>,
    %c1_106 = arith.constant 1 : index
    %c0_107 = arith.constant 0 : index
    %c1_108 = arith.constant 1 : index
    %c1_109 = arith.constant 1 : index
    %c0_110 = arith.constant 0 : index
    %85 = vector.load %arg1[%c1_106, %c0_107, %c1_108, %c1_109, %c0_110] : memref<2x4x9x9x4xf32, #tpu.memory_space<vmem>>, vector<1x1x8x8x4xf32>
    %86 = vector.shape_cast %85 : vector<1x1x8x8x4xf32> to vector<8x8x4xf32>
    %87 = vector.shape_cast %86 : vector<8x8x4xf32> to vector<64x4xf32>
    %88 = arith.truncf %87 : vector<64x4xf32> to vector<64x4xbf16>
    %c64_111 = arith.constant 64 : index
    %c32_112 = arith.constant 32 : index
    %89 = vector.load %arg12[%c64_111, %c32_112] : memref<128x36xbf16, #tpu.memory_space<vmem>>, vector<64x4xbf16>
    tpu.vector_store %arg12[%c64_111, %c32_112], %88 {strides = array<i32>} : memref<128x36xbf16, #tpu.memory_space<vmem>>, vector<64x4xbf16>,
    %c0_113 = arith.constant 0 : index
    %c0_114 = arith.constant 0 : index
    %90 = vector.load %arg12[%c0_113, %c0_114] : memref<128x36xbf16, #tpu.memory_space<vmem>>, vector<128x36xbf16>
    %c0_115 = arith.constant 0 : index
    %c0_116 = arith.constant 0 : index
    %91 = vector.load %arg2[%c0_115, %c0_116] : memref<36x8xbf16, #tpu.memory_space<vmem>>, vector<36x8xbf16>
    %cst = arith.constant dense<0.000000e+00> : vector<128x8xf32>
    %92 = tpu.matmul %90, %91, %cst {dimension_numbers = #tpu.dot_dimension_numbers<[1], [0], [0], [1], [0, 0, 1, 1], [], []>} : vector<128x36xbf16>, vector<36x8xbf16>, vector<128x8xf32> -> vector<128x8xf32>
    %c0_117 = arith.constant 0 : index
    %c0_118 = arith.constant 0 : index
    %93 = vector.load %arg3[%c0_117, %c0_118] : memref<1x8xf32, #tpu.memory_space<vmem>>, vector<1x8xf32>
    %94 = vector.broadcast %93 : vector<1x8xf32> to vector<128x8xf32>
    %95 = arith.mulf %92, %94 : vector<128x8xf32>
    %c0_119 = arith.constant 0 : index
    %c0_120 = arith.constant 0 : index
    %96 = vector.load %arg4[%c0_119, %c0_120] : memref<1x8xf32, #tpu.memory_space<vmem>>, vector<1x8xf32>
    %97 = vector.broadcast %96 : vector<1x8xf32> to vector<128x8xf32>
    %98 = arith.addf %95, %97 : vector<128x8xf32>
    %cst_121 = arith.constant 0.000000e+00 : f32
    %99 = vector.broadcast %cst_121 : f32 to vector<128x8xf32>
    %100 = arith.maximumf %98, %99 : vector<128x8xf32>
    %cst_122 = arith.constant 0.000000e+00 : f32
    %101 = vector.broadcast %cst_122 : f32 to vector<2x10x10x8xf32>
    %c0_123 = arith.constant 0 : index
    %c0_124 = arith.constant 0 : index
    %c0_125 = arith.constant 0 : index
    %c0_126 = arith.constant 0 : index
    %102 = vector.load %arg13[%c0_123, %c0_124, %c0_125, %c0_126] : memref<2x10x10x8xf32, #tpu.memory_space<vmem>>, vector<2x10x10x8xf32>
    tpu.vector_store %arg13[%c0_123, %c0_124, %c0_125, %c0_126], %101 {strides = array<i32>} : memref<2x10x10x8xf32, #tpu.memory_space<vmem>>, vector<2x10x10x8xf32>,
    %103 = vector.shape_cast %100 : vector<128x8xf32> to vector<2x8x8x8xf32>
    %c0_127 = arith.constant 0 : index
    %c1_128 = arith.constant 1 : index
    %c1_129 = arith.constant 1 : index
    %c0_130 = arith.constant 0 : index
    %104 = vector.load %arg13[%c0_127, %c1_128, %c1_129, %c0_130] : memref<2x10x10x8xf32, #tpu.memory_space<vmem>>, vector<2x8x8x8xf32>
    tpu.vector_store %arg13[%c0_127, %c1_128, %c1_129, %c0_130], %103 {strides = array<i32>} : memref<2x10x10x8xf32, #tpu.memory_space<vmem>>, vector<2x8x8x8xf32>,
    %c0_131 = arith.constant 0 : index
    %c0_132 = arith.constant 0 : index
    %c0_133 = arith.constant 0 : index
    %c0_134 = arith.constant 0 : index
    %105 = vector.load %arg13[%c0_131, %c0_132, %c0_133, %c0_134] : memref<2x10x10x8xf32, #tpu.memory_space<vmem>>, vector<1x8x8x8xf32>
    %106 = vector.shape_cast %105 : vector<1x8x8x8xf32> to vector<8x8x8xf32>
    %107 = vector.shape_cast %106 : vector<8x8x8xf32> to vector<64x8xf32>
    %108 = arith.truncf %107 : vector<64x8xf32> to vector<64x8xbf16>
    %c0_135 = arith.constant 0 : index
    %c0_136 = arith.constant 0 : index
    %109 = vector.load %arg14[%c0_135, %c0_136] : memref<128x72xbf16, #tpu.memory_space<vmem>>, vector<64x8xbf16>
    tpu.vector_store %arg14[%c0_135, %c0_136], %108 {strides = array<i32>} : memref<128x72xbf16, #tpu.memory_space<vmem>>, vector<64x8xbf16>,
    %c0_137 = arith.constant 0 : index
    %c0_138 = arith.constant 0 : index
    %c1_139 = arith.constant 1 : index
    %c0_140 = arith.constant 0 : index
    %110 = vector.load %arg13[%c0_137, %c0_138, %c1_139, %c0_140] : memref<2x10x10x8xf32, #tpu.memory_space<vmem>>, vector<1x8x8x8xf32>
    %111 = vector.shape_cast %110 : vector<1x8x8x8xf32> to vector<8x8x8xf32>
    %112 = vector.shape_cast %111 : vector<8x8x8xf32> to vector<64x8xf32>
    %113 = arith.truncf %112 : vector<64x8xf32> to vector<64x8xbf16>
    %c0_141 = arith.constant 0 : index
    %c8_142 = arith.constant 8 : index
    %114 = vector.load %arg14[%c0_141, %c8_142] : memref<128x72xbf16, #tpu.memory_space<vmem>>, vector<64x8xbf16>
    tpu.vector_store %arg14[%c0_141, %c8_142], %113 {strides = array<i32>} : memref<128x72xbf16, #tpu.memory_space<vmem>>, vector<64x8xbf16>,
    %c0_143 = arith.constant 0 : index
    %c0_144 = arith.constant 0 : index
    %c2_145 = arith.constant 2 : index
    %c0_146 = arith.constant 0 : index
    %115 = vector.load %arg13[%c0_143, %c0_144, %c2_145, %c0_146] : memref<2x10x10x8xf32, #tpu.memory_space<vmem>>, vector<1x8x8x8xf32>
    %116 = vector.shape_cast %115 : vector<1x8x8x8xf32> to vector<8x8x8xf32>
    %117 = vector.shape_cast %116 : vector<8x8x8xf32> to vector<64x8xf32>
    %118 = arith.truncf %117 : vector<64x8xf32> to vector<64x8xbf16>
    %c0_147 = arith.constant 0 : index
    %c16_148 = arith.constant 16 : index
    %119 = vector.load %arg14[%c0_147, %c16_148] : memref<128x72xbf16, #tpu.memory_space<vmem>>, vector<64x8xbf16>
    tpu.vector_store %arg14[%c0_147, %c16_148], %118 {strides = array<i32>} : memref<128x72xbf16, #tpu.memory_space<vmem>>, vector<64x8xbf16>,
    %c0_149 = arith.constant 0 : index
    %c1_150 = arith.constant 1 : index
    %c0_151 = arith.constant 0 : index
    %c0_152 = arith.constant 0 : index
    %120 = vector.load %arg13[%c0_149, %c1_150, %c0_151, %c0_152] : memref<2x10x10x8xf32, #tpu.memory_space<vmem>>, vector<1x8x8x8xf32>
    %121 = vector.shape_cast %120 : vector<1x8x8x8xf32> to vector<8x8x8xf32>
    %122 = vector.shape_cast %121 : vector<8x8x8xf32> to vector<64x8xf32>
    %123 = arith.truncf %122 : vector<64x8xf32> to vector<64x8xbf16>
    %c0_153 = arith.constant 0 : index
    %c24_154 = arith.constant 24 : index
    %124 = vector.load %arg14[%c0_153, %c24_154] : memref<128x72xbf16, #tpu.memory_space<vmem>>, vector<64x8xbf16>
    tpu.vector_store %arg14[%c0_153, %c24_154], %123 {strides = array<i32>} : memref<128x72xbf16, #tpu.memory_space<vmem>>, vector<64x8xbf16>,
    %c0_155 = arith.constant 0 : index
    %c1_156 = arith.constant 1 : index
    %c1_157 = arith.constant 1 : index
    %c0_158 = arith.constant 0 : index
    %125 = vector.load %arg13[%c0_155, %c1_156, %c1_157, %c0_158] : memref<2x10x10x8xf32, #tpu.memory_space<vmem>>, vector<1x8x8x8xf32>
    %126 = vector.shape_cast %125 : vector<1x8x8x8xf32> to vector<8x8x8xf32>
    %127 = vector.shape_cast %126 : vector<8x8x8xf32> to vector<64x8xf32>
    %128 = arith.truncf %127 : vector<64x8xf32> to vector<64x8xbf16>
    %c0_159 = arith.constant 0 : index
    %c32_160 = arith.constant 32 : index
    %129 = vector.load %arg14[%c0_159, %c32_160] : memref<128x72xbf16, #tpu.memory_space<vmem>>, vector<64x8xbf16>
    tpu.vector_store %arg14[%c0_159, %c32_160], %128 {strides = array<i32>} : memref<128x72xbf16, #tpu.memory_space<vmem>>, vector<64x8xbf16>,
    %c0_161 = arith.constant 0 : index
    %c1_162 = arith.constant 1 : index
    %c2_163 = arith.constant 2 : index
    %c0_164 = arith.constant 0 : index
    %130 = vector.load %arg13[%c0_161, %c1_162, %c2_163, %c0_164] : memref<2x10x10x8xf32, #tpu.memory_space<vmem>>, vector<1x8x8x8xf32>
    %131 = vector.shape_cast %130 : vector<1x8x8x8xf32> to vector<8x8x8xf32>
    %132 = vector.shape_cast %131 : vector<8x8x8xf32> to vector<64x8xf32>
    %133 = arith.truncf %132 : vector<64x8xf32> to vector<64x8xbf16>
    %c0_165 = arith.constant 0 : index
    %c40 = arith.constant 40 : index
    %134 = vector.load %arg14[%c0_165, %c40] : memref<128x72xbf16, #tpu.memory_space<vmem>>, vector<64x8xbf16>
    tpu.vector_store %arg14[%c0_165, %c40], %133 {strides = array<i32>} : memref<128x72xbf16, #tpu.memory_space<vmem>>, vector<64x8xbf16>,
    %c0_166 = arith.constant 0 : index
    %c2_167 = arith.constant 2 : index
    %c0_168 = arith.constant 0 : index
    %c0_169 = arith.constant 0 : index
    %135 = vector.load %arg13[%c0_166, %c2_167, %c0_168, %c0_169] : memref<2x10x10x8xf32, #tpu.memory_space<vmem>>, vector<1x8x8x8xf32>
    %136 = vector.shape_cast %135 : vector<1x8x8x8xf32> to vector<8x8x8xf32>
    %137 = vector.shape_cast %136 : vector<8x8x8xf32> to vector<64x8xf32>
    %138 = arith.truncf %137 : vector<64x8xf32> to vector<64x8xbf16>
    %c0_170 = arith.constant 0 : index
    %c48 = arith.constant 48 : index
    %139 = vector.load %arg14[%c0_170, %c48] : memref<128x72xbf16, #tpu.memory_space<vmem>>, vector<64x8xbf16>
    tpu.vector_store %arg14[%c0_170, %c48], %138 {strides = array<i32>} : memref<128x72xbf16, #tpu.memory_space<vmem>>, vector<64x8xbf16>,
    %c0_171 = arith.constant 0 : index
    %c2_172 = arith.constant 2 : index
    %c1_173 = arith.constant 1 : index
    %c0_174 = arith.constant 0 : index
    %140 = vector.load %arg13[%c0_171, %c2_172, %c1_173, %c0_174] : memref<2x10x10x8xf32, #tpu.memory_space<vmem>>, vector<1x8x8x8xf32>
    %141 = vector.shape_cast %140 : vector<1x8x8x8xf32> to vector<8x8x8xf32>
    %142 = vector.shape_cast %141 : vector<8x8x8xf32> to vector<64x8xf32>
    %143 = arith.truncf %142 : vector<64x8xf32> to vector<64x8xbf16>
    %c0_175 = arith.constant 0 : index
    %c56 = arith.constant 56 : index
    %144 = vector.load %arg14[%c0_175, %c56] : memref<128x72xbf16, #tpu.memory_space<vmem>>, vector<64x8xbf16>
    tpu.vector_store %arg14[%c0_175, %c56], %143 {strides = array<i32>} : memref<128x72xbf16, #tpu.memory_space<vmem>>, vector<64x8xbf16>,
    %c0_176 = arith.constant 0 : index
    %c2_177 = arith.constant 2 : index
    %c2_178 = arith.constant 2 : index
    %c0_179 = arith.constant 0 : index
    %145 = vector.load %arg13[%c0_176, %c2_177, %c2_178, %c0_179] : memref<2x10x10x8xf32, #tpu.memory_space<vmem>>, vector<1x8x8x8xf32>
    %146 = vector.shape_cast %145 : vector<1x8x8x8xf32> to vector<8x8x8xf32>
    %147 = vector.shape_cast %146 : vector<8x8x8xf32> to vector<64x8xf32>
    %148 = arith.truncf %147 : vector<64x8xf32> to vector<64x8xbf16>
    %c0_180 = arith.constant 0 : index
    %c64_181 = arith.constant 64 : index
    %149 = vector.load %arg14[%c0_180, %c64_181] : memref<128x72xbf16, #tpu.memory_space<vmem>>, vector<64x8xbf16>
    tpu.vector_store %arg14[%c0_180, %c64_181], %148 {strides = array<i32>} : memref<128x72xbf16, #tpu.memory_space<vmem>>, vector<64x8xbf16>,
    %c1_182 = arith.constant 1 : index
    %c0_183 = arith.constant 0 : index
    %c0_184 = arith.constant 0 : index
    %c0_185 = arith.constant 0 : index
    %150 = vector.load %arg13[%c1_182, %c0_183, %c0_184, %c0_185] : memref<2x10x10x8xf32, #tpu.memory_space<vmem>>, vector<1x8x8x8xf32>
    %151 = vector.shape_cast %150 : vector<1x8x8x8xf32> to vector<8x8x8xf32>
    %152 = vector.shape_cast %151 : vector<8x8x8xf32> to vector<64x8xf32>
    %153 = arith.truncf %152 : vector<64x8xf32> to vector<64x8xbf16>
    %c64_186 = arith.constant 64 : index
    %c0_187 = arith.constant 0 : index
    %154 = vector.load %arg14[%c64_186, %c0_187] : memref<128x72xbf16, #tpu.memory_space<vmem>>, vector<64x8xbf16>
    tpu.vector_store %arg14[%c64_186, %c0_187], %153 {strides = array<i32>} : memref<128x72xbf16, #tpu.memory_space<vmem>>, vector<64x8xbf16>,
    %c1_188 = arith.constant 1 : index
    %c0_189 = arith.constant 0 : index
    %c1_190 = arith.constant 1 : index
    %c0_191 = arith.constant 0 : index
    %155 = vector.load %arg13[%c1_188, %c0_189, %c1_190, %c0_191] : memref<2x10x10x8xf32, #tpu.memory_space<vmem>>, vector<1x8x8x8xf32>
    %156 = vector.shape_cast %155 : vector<1x8x8x8xf32> to vector<8x8x8xf32>
    %157 = vector.shape_cast %156 : vector<8x8x8xf32> to vector<64x8xf32>
    %158 = arith.truncf %157 : vector<64x8xf32> to vector<64x8xbf16>
    %c64_192 = arith.constant 64 : index
    %c8_193 = arith.constant 8 : index
    %159 = vector.load %arg14[%c64_192, %c8_193] : memref<128x72xbf16, #tpu.memory_space<vmem>>, vector<64x8xbf16>
    tpu.vector_store %arg14[%c64_192, %c8_193], %158 {strides = array<i32>} : memref<128x72xbf16, #tpu.memory_space<vmem>>, vector<64x8xbf16>,
    %c1_194 = arith.constant 1 : index
    %c0_195 = arith.constant 0 : index
    %c2_196 = arith.constant 2 : index
    %c0_197 = arith.constant 0 : index
    %160 = vector.load %arg13[%c1_194, %c0_195, %c2_196, %c0_197] : memref<2x10x10x8xf32, #tpu.memory_space<vmem>>, vector<1x8x8x8xf32>
    %161 = vector.shape_cast %160 : vector<1x8x8x8xf32> to vector<8x8x8xf32>
    %162 = vector.shape_cast %161 : vector<8x8x8xf32> to vector<64x8xf32>
    %163 = arith.truncf %162 : vector<64x8xf32> to vector<64x8xbf16>
    %c64_198 = arith.constant 64 : index
    %c16_199 = arith.constant 16 : index
    %164 = vector.load %arg14[%c64_198, %c16_199] : memref<128x72xbf16, #tpu.memory_space<vmem>>, vector<64x8xbf16>
    tpu.vector_store %arg14[%c64_198, %c16_199], %163 {strides = array<i32>} : memref<128x72xbf16, #tpu.memory_space<vmem>>, vector<64x8xbf16>,
    %c1_200 = arith.constant 1 : index
    %c1_201 = arith.constant 1 : index
    %c0_202 = arith.constant 0 : index
    %c0_203 = arith.constant 0 : index
    %165 = vector.load %arg13[%c1_200, %c1_201, %c0_202, %c0_203] : memref<2x10x10x8xf32, #tpu.memory_space<vmem>>, vector<1x8x8x8xf32>
    %166 = vector.shape_cast %165 : vector<1x8x8x8xf32> to vector<8x8x8xf32>
    %167 = vector.shape_cast %166 : vector<8x8x8xf32> to vector<64x8xf32>
    %168 = arith.truncf %167 : vector<64x8xf32> to vector<64x8xbf16>
    %c64_204 = arith.constant 64 : index
    %c24_205 = arith.constant 24 : index
    %169 = vector.load %arg14[%c64_204, %c24_205] : memref<128x72xbf16, #tpu.memory_space<vmem>>, vector<64x8xbf16>
    tpu.vector_store %arg14[%c64_204, %c24_205], %168 {strides = array<i32>} : memref<128x72xbf16, #tpu.memory_space<vmem>>, vector<64x8xbf16>,
    %c1_206 = arith.constant 1 : index
    %c1_207 = arith.constant 1 : index
    %c1_208 = arith.constant 1 : index
    %c0_209 = arith.constant 0 : index
    %170 = vector.load %arg13[%c1_206, %c1_207, %c1_208, %c0_209] : memref<2x10x10x8xf32, #tpu.memory_space<vmem>>, vector<1x8x8x8xf32>
    %171 = vector.shape_cast %170 : vector<1x8x8x8xf32> to vector<8x8x8xf32>
    %172 = vector.shape_cast %171 : vector<8x8x8xf32> to vector<64x8xf32>
    %173 = arith.truncf %172 : vector<64x8xf32> to vector<64x8xbf16>
    %c64_210 = arith.constant 64 : index
    %c32_211 = arith.constant 32 : index
    %174 = vector.load %arg14[%c64_210, %c32_211] : memref<128x72xbf16, #tpu.memory_space<vmem>>, vector<64x8xbf16>
    tpu.vector_store %arg14[%c64_210, %c32_211], %173 {strides = array<i32>} : memref<128x72xbf16, #tpu.memory_space<vmem>>, vector<64x8xbf16>,
    %c1_212 = arith.constant 1 : index
    %c1_213 = arith.constant 1 : index
    %c2_214 = arith.constant 2 : index
    %c0_215 = arith.constant 0 : index
    %175 = vector.load %arg13[%c1_212, %c1_213, %c2_214, %c0_215] : memref<2x10x10x8xf32, #tpu.memory_space<vmem>>, vector<1x8x8x8xf32>
    %176 = vector.shape_cast %175 : vector<1x8x8x8xf32> to vector<8x8x8xf32>
    %177 = vector.shape_cast %176 : vector<8x8x8xf32> to vector<64x8xf32>
    %178 = arith.truncf %177 : vector<64x8xf32> to vector<64x8xbf16>
    %c64_216 = arith.constant 64 : index
    %c40_217 = arith.constant 40 : index
    %179 = vector.load %arg14[%c64_216, %c40_217] : memref<128x72xbf16, #tpu.memory_space<vmem>>, vector<64x8xbf16>
    tpu.vector_store %arg14[%c64_216, %c40_217], %178 {strides = array<i32>} : memref<128x72xbf16, #tpu.memory_space<vmem>>, vector<64x8xbf16>,
    %c1_218 = arith.constant 1 : index
    %c2_219 = arith.constant 2 : index
    %c0_220 = arith.constant 0 : index
    %c0_221 = arith.constant 0 : index
    %180 = vector.load %arg13[%c1_218, %c2_219, %c0_220, %c0_221] : memref<2x10x10x8xf32, #tpu.memory_space<vmem>>, vector<1x8x8x8xf32>
    %181 = vector.shape_cast %180 : vector<1x8x8x8xf32> to vector<8x8x8xf32>
    %182 = vector.shape_cast %181 : vector<8x8x8xf32> to vector<64x8xf32>
    %183 = arith.truncf %182 : vector<64x8xf32> to vector<64x8xbf16>
    %c64_222 = arith.constant 64 : index
    %c48_223 = arith.constant 48 : index
    %184 = vector.load %arg14[%c64_222, %c48_223] : memref<128x72xbf16, #tpu.memory_space<vmem>>, vector<64x8xbf16>
    tpu.vector_store %arg14[%c64_222, %c48_223], %183 {strides = array<i32>} : memref<128x72xbf16, #tpu.memory_space<vmem>>, vector<64x8xbf16>,
    %c1_224 = arith.constant 1 : index
    %c2_225 = arith.constant 2 : index
    %c1_226 = arith.constant 1 : index
    %c0_227 = arith.constant 0 : index
    %185 = vector.load %arg13[%c1_224, %c2_225, %c1_226, %c0_227] : memref<2x10x10x8xf32, #tpu.memory_space<vmem>>, vector<1x8x8x8xf32>
    %186 = vector.shape_cast %185 : vector<1x8x8x8xf32> to vector<8x8x8xf32>
    %187 = vector.shape_cast %186 : vector<8x8x8xf32> to vector<64x8xf32>
    %188 = arith.truncf %187 : vector<64x8xf32> to vector<64x8xbf16>
    %c64_228 = arith.constant 64 : index
    %c56_229 = arith.constant 56 : index
    %189 = vector.load %arg14[%c64_228, %c56_229] : memref<128x72xbf16, #tpu.memory_space<vmem>>, vector<64x8xbf16>
    tpu.vector_store %arg14[%c64_228, %c56_229], %188 {strides = array<i32>} : memref<128x72xbf16, #tpu.memory_space<vmem>>, vector<64x8xbf16>,
    %c1_230 = arith.constant 1 : index
    %c2_231 = arith.constant 2 : index
    %c2_232 = arith.constant 2 : index
    %c0_233 = arith.constant 0 : index
    %190 = vector.load %arg13[%c1_230, %c2_231, %c2_232, %c0_233] : memref<2x10x10x8xf32, #tpu.memory_space<vmem>>, vector<1x8x8x8xf32>
    %191 = vector.shape_cast %190 : vector<1x8x8x8xf32> to vector<8x8x8xf32>
    %192 = vector.shape_cast %191 : vector<8x8x8xf32> to vector<64x8xf32>
    %193 = arith.truncf %192 : vector<64x8xf32> to vector<64x8xbf16>
    %c64_234 = arith.constant 64 : index
    %c64_235 = arith.constant 64 : index
    %194 = vector.load %arg14[%c64_234, %c64_235] : memref<128x72xbf16, #tpu.memory_space<vmem>>, vector<64x8xbf16>
    tpu.vector_store %arg14[%c64_234, %c64_235], %193 {strides = array<i32>} : memref<128x72xbf16, #tpu.memory_space<vmem>>, vector<64x8xbf16>,
    %c0_236 = arith.constant 0 : index
    %c0_237 = arith.constant 0 : index
    %195 = vector.load %arg14[%c0_236, %c0_237] : memref<128x72xbf16, #tpu.memory_space<vmem>>, vector<128x72xbf16>
    %c0_238 = arith.constant 0 : index
    %c0_239 = arith.constant 0 : index
    %196 = vector.load %arg5[%c0_238, %c0_239] : memref<72x8xbf16, #tpu.memory_space<vmem>>, vector<72x8xbf16>
    %cst_240 = arith.constant dense<0.000000e+00> : vector<128x8xf32>
    %197 = tpu.matmul %195, %196, %cst_240 {dimension_numbers = #tpu.dot_dimension_numbers<[1], [0], [0], [1], [0, 0, 1, 1], [], []>} : vector<128x72xbf16>, vector<72x8xbf16>, vector<128x8xf32> -> vector<128x8xf32>
    %c0_241 = arith.constant 0 : index
    %c0_242 = arith.constant 0 : index
    %198 = vector.load %arg6[%c0_241, %c0_242] : memref<1x8xf32, #tpu.memory_space<vmem>>, vector<1x8xf32>
    %199 = vector.broadcast %198 : vector<1x8xf32> to vector<128x8xf32>
    %200 = arith.mulf %197, %199 : vector<128x8xf32>
    %c0_243 = arith.constant 0 : index
    %c0_244 = arith.constant 0 : index
    %201 = vector.load %arg7[%c0_243, %c0_244] : memref<1x8xf32, #tpu.memory_space<vmem>>, vector<1x8xf32>
    %202 = vector.broadcast %201 : vector<1x8xf32> to vector<128x8xf32>
    %203 = arith.addf %200, %202 : vector<128x8xf32>
    %c0_245 = arith.constant 0 : index
    %c0_246 = arith.constant 0 : index
    %204 = vector.load %arg12[%c0_245, %c0_246] : memref<128x36xbf16, #tpu.memory_space<vmem>>, vector<128x4xbf16>
    %c0_247 = arith.constant 0 : index
    %c0_248 = arith.constant 0 : index
    %205 = vector.load %arg8[%c0_247, %c0_248] : memref<4x8xbf16, #tpu.memory_space<vmem>>, vector<4x8xbf16>
    %cst_249 = arith.constant dense<0.000000e+00> : vector<128x8xf32>
    %206 = tpu.matmul %204, %205, %cst_249 {dimension_numbers = #tpu.dot_dimension_numbers<[1], [0], [0], [1], [0, 0, 1, 1], [], []>} : vector<128x4xbf16>, vector<4x8xbf16>, vector<128x8xf32> -> vector<128x8xf32>
    %c0_250 = arith.constant 0 : index
    %c0_251 = arith.constant 0 : index
    %207 = vector.load %arg9[%c0_250, %c0_251] : memref<1x8xf32, #tpu.memory_space<vmem>>, vector<1x8xf32>
    %208 = vector.broadcast %207 : vector<1x8xf32> to vector<128x8xf32>
    %209 = arith.mulf %206, %208 : vector<128x8xf32>
    %c0_252 = arith.constant 0 : index
    %c0_253 = arith.constant 0 : index
    %210 = vector.load %arg10[%c0_252, %c0_253] : memref<1x8xf32, #tpu.memory_space<vmem>>, vector<1x8xf32>
    %211 = vector.broadcast %210 : vector<1x8xf32> to vector<128x8xf32>
    %212 = arith.addf %209, %211 : vector<128x8xf32>
    %213 = arith.addf %203, %212 : vector<128x8xf32>
    %cst_254 = arith.constant 0.000000e+00 : f32
    %214 = vector.broadcast %cst_254 : f32 to vector<128x8xf32>
    %215 = arith.maximumf %213, %214 : vector<128x8xf32>
    %216 = vector.shape_cast %215 : vector<128x8xf32> to vector<2x64x8xf32>
    %c0_255 = arith.constant 0 : index
    %c0_256 = arith.constant 0 : index
    %c0_257 = arith.constant 0 : index
    %217 = vector.load %arg11[%c0_255, %c0_256, %c0_257] : memref<2x64x8xf32, #tpu.memory_space<vmem>>, vector<2x64x8xf32>
    tpu.vector_store %arg11[%c0_255, %c0_256, %c0_257], %216 {strides = array<i32>} : memref<2x64x8xf32, #tpu.memory_space<vmem>>, vector<2x64x8xf32>,
    return
  }
  func.func @transform_0(%arg0: i32) -> (i32, i32, i32, i32, i32) {
    %c0_i32 = arith.constant 0 : i32
    %c0_i32_0 = arith.constant 0 : i32
    %c0_i32_1 = arith.constant 0 : i32
    %c0_i32_2 = arith.constant 0 : i32
    %c0_i32_3 = arith.constant 0 : i32
    return %arg0, %c0_i32, %c0_i32_0, %c0_i32_1, %c0_i32_2 : i32, i32, i32, i32, i32
  }
  func.func @transform_1(%arg0: i32) -> (i32, i32) {
    %c0_i32 = arith.constant 0 : i32
    %c0_i32_0 = arith.constant 0 : i32
    %c0_i32_1 = arith.constant 0 : i32
    return %c0_i32, %c0_i32_0 : i32, i32
  }
  func.func @transform_2(%arg0: i32) -> (i32, i32) {
    %c0_i32 = arith.constant 0 : i32
    %c0_i32_0 = arith.constant 0 : i32
    %c0_i32_1 = arith.constant 0 : i32
    return %c0_i32, %c0_i32_0 : i32, i32
  }
  func.func @transform_3(%arg0: i32) -> (i32, i32) {
    %c0_i32 = arith.constant 0 : i32
    %c0_i32_0 = arith.constant 0 : i32
    %c0_i32_1 = arith.constant 0 : i32
    return %c0_i32, %c0_i32_0 : i32, i32
  }
  func.func @transform_4(%arg0: i32) -> (i32, i32) {
    %c0_i32 = arith.constant 0 : i32
    %c0_i32_0 = arith.constant 0 : i32
    %c0_i32_1 = arith.constant 0 : i32
    return %c0_i32, %c0_i32_0 : i32, i32
  }
  func.func @transform_5(%arg0: i32) -> (i32, i32) {
    %c0_i32 = arith.constant 0 : i32
    %c0_i32_0 = arith.constant 0 : i32
    %c0_i32_1 = arith.constant 0 : i32
    return %c0_i32, %c0_i32_0 : i32, i32
  }
  func.func @transform_6(%arg0: i32) -> (i32, i32) {
    %c0_i32 = arith.constant 0 : i32
    %c0_i32_0 = arith.constant 0 : i32
    %c0_i32_1 = arith.constant 0 : i32
    return %c0_i32, %c0_i32_0 : i32, i32
  }
  func.func @transform_7(%arg0: i32) -> (i32, i32) {
    %c0_i32 = arith.constant 0 : i32
    %c0_i32_0 = arith.constant 0 : i32
    %c0_i32_1 = arith.constant 0 : i32
    return %c0_i32, %c0_i32_0 : i32, i32
  }
  func.func @transform_8(%arg0: i32) -> (i32, i32) {
    %c0_i32 = arith.constant 0 : i32
    %c0_i32_0 = arith.constant 0 : i32
    %c0_i32_1 = arith.constant 0 : i32
    return %c0_i32, %c0_i32_0 : i32, i32
  }
  func.func @transform_9(%arg0: i32) -> (i32, i32) {
    %c0_i32 = arith.constant 0 : i32
    %c0_i32_0 = arith.constant 0 : i32
    %c0_i32_1 = arith.constant 0 : i32
    return %c0_i32, %c0_i32_0 : i32, i32
  }
  func.func @transform_10(%arg0: i32) -> (i32, i32, i32) {
    %c0_i32 = arith.constant 0 : i32
    %c0_i32_0 = arith.constant 0 : i32
    %c0_i32_1 = arith.constant 0 : i32
    return %arg0, %c0_i32, %c0_i32_0 : i32, i32, i32
  }
}

</mosaic_0001>

<bundles_post_ra>
// kernel: tpu_custom_call.1
= control target key start
LH: loop header
LB: loop body
LE: loop exit
PB: predicated region body
PF: predicated region fallthrough
CT: control target
= control target key end

     0   :  { %s4096_s21 = smov 4   ;;  %s4097_s30 = smov 8   ;;  %vm77_vm0 = vcmask 27648   ;;  %vm1277_vm1 = vcmask 1041408   ;;  %vm142_vm2 = vcmask 60448   ;;  %vm208_vm3 = vcmask 93248   ;;  %s5598_s0 = inlined_call_operand.vmem [shape: f32[2,4,9,9,4], index: 0, kind: input, shape index: {}]   ;;  %s5599_s1 = inlined_call_operand.vmem [shape: bf16[36,8], index: 1, kind: input, shape index: {}]   ;;  %s5600_s7 = inlined_call_operand.vmem [shape: bf16[4,8], index: 7, kind: input, shape index: {}]   ;;  %s5601_s2 = inlined_call_operand.vmem [shape: f32[1,8], index: 2, kind: input, shape index: {}]   ;;  %s5602_s3 = inlined_call_operand.vmem [shape: f32[1,8], index: 3, kind: input, shape index: {}]   ;;  %s5603_s4 = inlined_call_operand.vmem [shape: bf16[72,8], index: 4, kind: input, shape index: {}]   ;;  %s5604_s8 = inlined_call_operand.vmem [shape: f32[1,8], index: 8, kind: input, shape index: {}]   ;;  %s5605_s5 = inlined_call_operand.vmem [shape: f32[1,8], index: 5, kind: input, shape index: {}]   ;;  %s5606_s9 = inlined_call_operand.vmem [shape: f32[1,8], index: 9, kind: input, shape index: {}]   ;;  %s5607_s6 = inlined_call_operand.vmem [shape: f32[1,8], index: 6, kind: input, shape index: {}]   ;;  %s5608_s10 = inlined_call_operand.vmem [shape: f32[2,64,8], index: 10, kind: output, shape index: {}]  }
   0x1   :  { %v88_v0 = vld [vmem:[%s5598_s0 + $0x20] sm:$0xff]  ;;  %v89_v2 = vld [vmem:[%s5598_s0 + $0x30] sm:$0xff]  ;;  %s4098_s28 = smov 12   ;;  %s4099_s18 = smov 16   ;;  %v4065_v58 = vld [vmem:[%s5599_s1 + $0x8] sm:$0xff]   ;;  %vm273_vm4 = vcmask 126048  }
   0x2   :  { %v86_v1 = vld [vmem:[%s5598_s0] sm:$0xff]  ;;  %v4173_v3 = vpack.c.bf16 %v88_v0, %v88_v0  ;;  %v87_v5 = vld [vmem:[%s5598_s0 + $0x10] sm:$0xff]  ;;  %v4181_v6 = vpack.c.bf16 %v89_v2, %v89_v2  ;;  %s4100_s29 = smov 20   ;;  %s4101_s13 = smov 24   ;;  %vm339_vm5 = vcmask 158848   ;;  %vm404_vm6 = vcmask 191648  }
   0x3   :  { %v3662_v4 = vpack.c.bf16 %v86_v1, %v86_v1  ;;  %v4183_v7 = vpack.c.bf16 %v87_v5, %v87_v5  ;;  %v3201_v8 = vld [vmem:[%s5598_s0 + $0xa0] sm:$0xff]  ;;  %v3200_v9 = vld [vmem:[%s5598_s0 + $0x90] sm:$0xff]  ;;  %s4102_s24 = smov 28   ;;  %s4103_s20 = smov 32   ;;  %vm470_vm7 = vcmask 224448   ;;  %vm536_vm8 = vcmask 257248  }
   0x4   :  { %122 = vrot.lane.b32.xlu1 %v4173_v3, %s4096_s21  ;;  %v4195_v10 = vpack.c.bf16 %v3201_v8, %v3201_v8  ;;  %v3670_v11 = vpack.c.bf16 %v3200_v9, %v3200_v9  ;;  %v3203_v12 = vld [vmem:[%s5598_s0 + $0xc0] sm:$0xff]  ;;  %v3202_v13 = vld [vmem:[%s5598_s0 + $0xb0] sm:$0xff]  ;;  %vm601_vm9 = vcmask 290048   ;;  %vm1252_vm10 = vcmask 293888   ;;  %s4108_s25 = smov 64  }
   0x5   :  { %118 = vrot.lane.b32.xlu0 %v3662_v4, %s4096_s21  ;;  %v4206_v14 = vpack.c.bf16 %v3203_v12, %v3203_v12  ;;  %v4208_v15 = vpack.c.bf16 %v3202_v13, %v3202_v13  ;;  %v218_v16 = vld [vmem:[%s5598_s0 + $0x11] sm:$0xff]  ;;  %v217_v17 = vld [vmem:[%s5598_s0 + $0x1] sm:$0xff]  ;;  %v4064_v55 = vld [vmem:[%s5599_s1 + $0x10] ss:$0 sps:$4 sm:$0x33]   ;;  %vm2953_vm11 = vcmask 31744  }
   0x6   :  { %v3178_v18 = vld [vmem:[%s5598_s0 + $0x1d0] sm:$0xff]  ;;  %v4223_v19 = vpack.c.bf16 %v218_v16, %v218_v16  ;;  %v3678_v20 = vpack.c.bf16 %v217_v17, %v217_v17  ;;  %v219_v24 = vld [vmem:[%s5598_s0 + $0x21] sm:$0xff]  ;;  %v1279_v57 = vsel %vm1277_vm1, %v4064_v55, 0  ;;  %4047 = vmatprep.subr.msk.bf16.mxu0 %vm1277_vm1, %v4064_v55  ;;  %4048 = vmatprep.subr.msk.bf16.mxu1 %vm1277_vm1, %v4064_v55  ;;  %vm1440_vm12 = vcmask 64512  }
   0x7   :  { %v220_v21 = vld [vmem:[%s5598_s0 + $0x31] sm:$0xff]  ;;  %v3656_v22 = vpack.c.bf16 %v3178_v18, %v3178_v18  ;;  %v3179_v26 = vld [vmem:[%s5598_s0 + $0x1e0] sm:$0xff]  ;;  %v4247_v31 = vpack.c.bf16 %v219_v24, %v219_v24  ;;  %3976 = vmatpush3.bf16.msra.mxu0 %v1279_v57  ;;  %4044 = vmatpush3.bf16.msra.mxu1 %v1279_v57  ;;  %vm1442_vm13 = vcmask 58368   ;;  %vm1539_vm14 = vcmask 60416  }
   0x8   :  { %124 = vrot.lane.b32.xlu1 %v4181_v6, %s4096_s21  ;;  %v3176_v23 = vld [vmem:[%s5598_s0 + $0x1b0] sm:$0xff]  ;;  %v3177_v27 = vld [vmem:[%s5598_s0 + $0x1c0] sm:$0xff]  ;;  %v3657_v28 = vpack.c.bf16 %v3179_v26, %v3179_v26  ;;  %v4245_v30 = vpack.c.bf16 %v220_v21, %v220_v21  ;;  %3977 = vmatprep.subr.bf16.mxu0 %v4065_v58  ;;  %vm1604_vm15 = vcmask 126016  }
   0x9   :  { %120 = vrot.lane.b32.xlu0 %v4183_v7, %s4096_s21  ;;  %v3654_v25 = vpack.c.bf16 %v3176_v23, %v3176_v23  ;;  %80 = vst.msk [vmem:[#allocation2 + $0x8] sm:$0xf] %vm77_vm0, %v3656_v22  ;;  %v3655_v29 = vpack.c.bf16 %v3177_v27, %v3177_v27  ;;  %v3225_v32 = vld [vmem:[%s5598_s0 + $0x130] sm:$0xff]  ;;  %v3224_v33 = vld [vmem:[%s5598_s0 + $0x120] sm:$0xff]  ;;  %4042 = vmatprep.subr.bf16.mxu1 %v4065_v58 }
   0xa   :  { %81 = vst.msk [vmem:[#allocation2 + $0xc] sm:$0xf] %vm77_vm0, %v3657_v28  ;;  %v3687_v34 = vpack.c.bf16 %v3225_v32, %v3225_v32  ;;  %v3686_v35 = vpack.c.bf16 %v3224_v33, %v3224_v33  ;;  %v3227_v36 = vld [vmem:[%s5598_s0 + $0x150] sm:$0xff]  ;;  %v3226_v37 = vld [vmem:[%s5598_s0 + $0x140] sm:$0xff] }
   0xb   :  { %78 = vst.msk [vmem:[#allocation2] sm:$0xf] %vm77_vm0, %v3654_v25  ;;  %79 = vst.msk [vmem:[#allocation2 + $0x4] sm:$0xf] %vm77_vm0, %v3655_v29  ;;  %v3689_v38 = vpack.c.bf16 %v3227_v36, %v3227_v36  ;;  %v3688_v39 = vpack.c.bf16 %v3226_v37, %v3226_v37  ;;  %v3241_v40 = vld [vmem:[%s5598_s0 + $0x131] sm:$0xff]  ;;  %v3240_v41 = vld [vmem:[%s5598_s0 + $0x121] sm:$0xff]  ;;  %3978 = vmatpush3.bf16.msra.mxu0 %v4065_v58  ;;  %4045 = vmatpush3.bf16.msra.mxu1 %v4065_v58 }
   0xc   :  { %186 = vrot.lane.b32.xlu1 %v4195_v10, %s4097_s30  ;;  %v3695_v42 = vpack.c.bf16 %v3241_v40, %v3241_v40  ;;  %v3694_v43 = vpack.c.bf16 %v3240_v41, %v3240_v41  ;;  %v3243_v44 = vld [vmem:[%s5598_s0 + $0x151] sm:$0xff]  ;;  %v3242_v45 = vld [vmem:[%s5598_s0 + $0x141] sm:$0xff] }
   0xd   :  { %184 = vrot.lane.b32.xlu0 %v3670_v11, %s4097_s30  ;;  %v3697_v46 = vpack.c.bf16 %v3243_v44, %v3243_v44  ;;  %v3696_v47 = vpack.c.bf16 %v3242_v45, %v3242_v45  ;;  %v3259_v48 = vld [vmem:[%s5598_s0 + $0x40] sm:$0xff]  ;;  %v3180_v51 = vld [vmem:[%s5598_s0 + $0x1f0] sm:$0xff] }
   0xe   :  { %v3705_v49 = vpack.c.bf16 %v3259_v48, %v3259_v48  ;;  %v3181_v50 = vld [vmem:[%s5598_s0 + $0x200] sm:$0xff]  ;;  %v3658_v53 = vpack.c.bf16 %v3180_v51, %v3180_v51  ;;  %v3275_v54 = vld [vmem:[%s5598_s0 + $0xd0] sm:$0xff] }
   0xf   :  { %v3659_v52 = vpack.c.bf16 %v3181_v50, %v3181_v50  ;;  %v3713_v56 = vpack.c.bf16 %v3275_v54, %v3275_v54  ;;  %v3183_v59 = vld [vmem:[%s5598_s0 + $0x220] sm:$0xff]  ;;  %v3182_v60 = vld [vmem:[%s5598_s0 + $0x210] sm:$0xff] }
  0x10   :  { %190 = vrot.lane.b32.xlu1 %v4206_v14, %s4097_s30  ;;  %82 = vst.msk [vmem:[#allocation2 + $0x10] sm:$0xf] %vm77_vm0, %v3658_v53  ;;  %v3661_v61 = vpack.c.bf16 %v3183_v59, %v3183_v59  ;;  %v3660_v62 = vpack.c.bf16 %v3182_v60, %v3182_v60  ;;  %v91_v63 = vld [vmem:[%s5598_s0 + $0x50] sm:$0xff]  ;;  %v4067_v0 = vld [vmem:[%s5599_s1] sm:$0xff]   ;;  %s4107_s1 = smov 56  }
  0x11   :  { %188 = vrot.lane.b32.xlu0 %v4208_v15, %s4097_s30  ;;  %83 = vst.msk [vmem:[#allocation2 + $0x14] sm:$0xf] %vm77_vm0, %v3659_v52  ;;  %v4342_v1 = vpack.c.bf16 %v91_v63, %v91_v63  ;;  %v3291_v2 = vld [vmem:[%s5598_s0 + $0x41] sm:$0xff]  ;;  %3979 = vmatprep.subr.bf16.mxu0 %v4067_v0  ;;  %v93_v4 = vld [vmem:[%s5598_s0 + $0x70] sm:$0xff] }
  0x12   :  { %85 = vst.msk [vmem:[#allocation2 + $0x1c] sm:$0xf] %vm77_vm0, %v3661_v61  ;;  %84 = vst.msk [vmem:[#allocation2 + $0x18] sm:$0xf] %vm77_vm0, %v3660_v62  ;;  %4043 = vmatprep.subr.bf16.mxu1 %v4067_v0  ;;  %3980 = vmatpush3.bf16.msra.mxu0 %v4067_v0  ;;  %v92_v5 = vld [vmem:[%s5598_s0 + $0x60] sm:$0xff]  ;;  %v3206_v13 = vld [vmem:[%s5598_s0 + $0xf0] sm:$0xff] }
  0x13   :  { %4046 = vmatpush3.bf16.msra.mxu1 %v4067_v0  ;;  %v2912_v8 = vld [vmem:[%s5600_s7] sm:$0x3]  ;;  %v222_v16 = vld [vmem:[%s5598_s0 + $0x51] sm:$0xff] }
  0x14   :  { %251 = vrot.lane.b32.xlu1 %v4223_v19, %s4098_s28  ;;  %v3205_v9 = vld [vmem:[%s5598_s0 + $0xe0] sm:$0xff]  ;;  %4050 = vmatprep.subr.msk.bf16.mxu0 %vm1277_vm1, %v2912_v8  ;;  %v3683_v17 = vpack.c.bf16 %v222_v16, %v222_v16  ;;  %v224_v18 = vld [vmem:[%s5598_s0 + $0x71] sm:$0xff] }
  0x15   :  { %249 = vrot.lane.b32.xlu0 %v3678_v20, %s4098_s28  ;;  %v3675_v11 = vpack.c.bf16 %v3205_v9, %v3205_v9  ;;  %v3207_v12 = vld [vmem:[%s5598_s0 + $0x100] sm:$0xff]  ;;  %v4392_v20 = vpack.c.bf16 %v224_v18, %v224_v18  ;;  %v3229_v22 = vld [vmem:[%s5598_s0 + $0x170] sm:$0xff] }
  0x16   :  { %v3228_v23 = vld [vmem:[%s5598_s0 + $0x160] sm:$0xff]  ;;  %v3691_v24 = vpack.c.bf16 %v3229_v22, %v3229_v22  ;;  %v3231_v26 = vld [vmem:[%s5598_s0 + $0x190] sm:$0xff] }
  0x17   :  { %v3690_v25 = vpack.c.bf16 %v3228_v23, %v3228_v23  ;;  %v3230_v27 = vld [vmem:[%s5598_s0 + $0x180] sm:$0xff]  ;;  %v3693_v28 = vpack.c.bf16 %v3231_v26, %v3231_v26  ;;  %v3279_v40 = vld [vmem:[%s5598_s0 + $0x110] sm:$0xff] }
  0x18   :  { %255 = vrot.lane.b32.xlu1 %v4245_v30, %s4098_s28  ;;  %v3692_v29 = vpack.c.bf16 %v3230_v27, %v3230_v27  ;;  %v3717_v41 = vpack.c.bf16 %v3279_v40, %v3279_v40  ;;  %v3295_v44 = vld [vmem:[%s5598_s0 + $0x81] sm:$0xff]  ;;  %v3321_v48 = vld [vmem:[%s5598_s0 + $0x250] sm:$0xff] }
  0x19   :  { %253 = vrot.lane.b32.xlu0 %v4247_v31, %s4098_s28  ;;  %v3305_v50 = vld [vmem:[%s5598_s0 + $0x400] sm:$0xff]  ;;  %v3304_v51 = vld [vmem:[%s5598_s0 + $0x3f0] sm:$0xff]  ;;  %v4476_v60 = vpack.c.bf16 %v3321_v48, %v3321_v48 }
  0x1a   :  { %v3727_v54 = vpack.c.bf16 %v3305_v50, %v3305_v50  ;;  %v3726_v55 = vpack.c.bf16 %v3304_v51, %v3304_v51  ;;  %v3306_v57 = vld [vmem:[%s5598_s0 + $0x410] sm:$0xff]  ;;  %v3322_v63 = vld [vmem:[%s5598_s0 + $0x260] sm:$0xff] }
  0x1b   :  { %v3728_v59 = vpack.c.bf16 %v3306_v57, %v3306_v57  ;;  %v3323_v62 = vld [vmem:[%s5598_s0 + $0x270] sm:$0xff]  ;;  %v3352_v18 = vld [vmem:[%s5598_s0 + $0x241] sm:$0xff] }
  0x1c   :  { %317 = vrot.lane.b32.xlu1 %v3687_v34, %s4099_s18  ;;  %v3247_v34 = vld [vmem:[%s5598_s0 + $0x191] sm:$0xff]  ;;  %652 = vst.msk [vmem:[#allocation2 + $0x24] sm:$0xf] %vm77_vm0, %v3727_v54  ;;  %651 = vst.msk [vmem:[#allocation2 + $0x20] sm:$0xf] %vm77_vm0, %v3726_v55  ;;  %v3750_v22 = vpack.c.bf16 %v3352_v18, %v3352_v18  ;;  %v3386_v48 = vld [vmem:[%s5598_s0 + $0x381] sm:$0xff] }
  0x1d   :  { %315 = vrot.lane.b32.xlu0 %v3686_v35, %s4099_s18  ;;  %v3246_v35 = vld [vmem:[%s5598_s0 + $0x181] sm:$0xff]  ;;  %v3701_v36 = vpack.c.bf16 %v3247_v34, %v3247_v34  ;;  %653 = vst.msk [vmem:[#allocation2 + $0x28] sm:$0xf] %vm77_vm0, %v3728_v59  ;;  %v3355_v23 = vld [vmem:[%s5598_s0 + $0x271] sm:$0xff] }
  0x1e   :  { %v3700_v37 = vpack.c.bf16 %v3246_v35, %v3246_v35  ;;  %v4551_v27 = vpack.c.bf16 %v3355_v23, %v3355_v23  ;;  %v3371_v35 = vld [vmem:[%s5598_s0 + $0x390] sm:$0xff]  ;;  %v3403_v55 = vld [vmem:[%s5598_s0 + $0x280] sm:$0xff] }
  0x1f   :  { %v3327_v23 = vld [vmem:[%s5598_s0 + $0x2b0] sm:$0xff] }
  0x20   :  { %321 = vrot.lane.b32.xlu1 %v3689_v38, %s4099_s18  ;;  %v3263_v38 = vld [vmem:[%s5598_s0 + $0x80] sm:$0xff] }
  0x21   :  { %319 = vrot.lane.b32.xlu0 %v3688_v39, %s4099_s18  ;;  %v3709_v39 = vpack.c.bf16 %v3263_v38, %v3263_v38 }
  0x24   :  { %382 = vrot.lane.b32.xlu1 %v3695_v42, %s4100_s29 }
  0x25   :  { %380 = vrot.lane.b32.xlu0 %v3694_v43, %s4100_s29 }
  0x28   :  { %386 = vrot.lane.b32.xlu1 %v3697_v46, %s4100_s29 }
  0x29   :  { %384 = vrot.lane.b32.xlu0 %v3696_v47, %s4100_s29  ;;  %v3725_v47 = vpack.c.bf16 %v3295_v44, %v3295_v44 }
  0x2c   :  { %448 = vrot.lane.b32.xlu1 %v4173_v3, %s4101_s13  ;;  %v3721_v3 = vpack.c.bf16 %v3291_v2, %v3291_v2  ;;  %v4493_v2 = vpack.c.bf16 %v3323_v62, %v3323_v62  ;;  %v3309_v62 = vld [vmem:[%s5598_s0 + $0x440] sm:$0xff] }
  0x2d   :  { %446 = vrot.lane.b32.xlu0 %v4183_v7, %s4101_s13  ;;  %v3668_v7 = vpack.c.bf16 %v92_v5, %v92_v5  ;;  %v3336_v5 = vld [vmem:[%s5598_s0 + $0x2d0] sm:$0xff] }
  0x2e   :  { %v3742_v9 = vpack.c.bf16 %v3336_v5, %v3336_v5 }
  0x30   :  { %452 = vrot.lane.b32.xlu1 %v3705_v49, %s4101_s13 }
  0x31   :  { %450 = vrot.lane.b32.xlu0 %v4181_v6, %s4101_s13  ;;  %v3669_v6 = vpack.c.bf16 %v93_v4, %v93_v4  ;;  %v3337_v4 = vld [vmem:[%s5598_s0 + $0x2e0] sm:$0xff] }
  0x34   :  { %514 = vrot.lane.b32.xlu1 %v4208_v15, %s4102_s24  ;;  %v3676_v15 = vpack.c.bf16 %v3206_v13, %v3206_v13 }
  0x35   :  { %512 = vrot.lane.b32.xlu0 %v4195_v10, %s4102_s24  ;;  %v4367_v10 = vsel %vm1277_vm1, %v2912_v8, 0  ;;  %v4509_v8 = vpack.c.bf16 %v3337_v4, %v3337_v4  ;;  %vm2749_vm1 = vcmask 1043456  }
  0x38   :  { %518 = vrot.lane.b32.xlu1 %v3713_v56, %s4102_s24 }
  0x39   :  { %516 = vrot.lane.b32.xlu0 %v4206_v14, %s4102_s24  ;;  %v3677_v14 = vpack.c.bf16 %v3207_v12, %v3207_v12  ;;  %v3338_v12 = vld [vmem:[%s5598_s0 + $0x2f0] sm:$0xff] }
  0x3a   :  { %v4524_v16 = vpack.c.bf16 %v3338_v12, %v3338_v12 }
  0x3c   :  { %579 = vrot.lane.b32.xlu1 %v4247_v31, %s4103_s20  ;;  %v3244_v31 = vld [vmem:[%s5598_s0 + $0x161] sm:$0xff] }
  0x3d   :  { %577 = vrot.lane.b32.xlu0 %v4223_v19, %s4103_s20  ;;  %v223_v19 = vld [vmem:[%s5598_s0 + $0x61] sm:$0xff]  ;;  %v3698_v33 = vpack.c.bf16 %v3244_v31, %v3244_v31 }
  0x3e   :  { %v3684_v21 = vpack.c.bf16 %v223_v19, %v223_v19 }
  0x40   :  { %128 = vrot.lane.b32.xlu1 %v4342_v1, %s4096_s21 }
  0x41   :  { %126 = vrot.lane.b32.xlu0 %v3705_v49, %s4096_s21  ;;  %v3320_v49 = vld [vmem:[%s5598_s0 + $0x240] sm:$0xff] }
  0x42   :  { %v3734_v61 = vpack.c.bf16 %v3320_v49, %v3320_v49 }
  0x44   :  { %583 = vrot.lane.b32.xlu1 %v3721_v3, %s4103_s20 }
  0x45   :  { %581 = vrot.lane.b32.xlu0 %v4245_v30, %s4103_s20  ;;  %v3245_v30 = vld [vmem:[%s5598_s0 + $0x171] sm:$0xff] }
  0x46   :  { %v3699_v32 = vpack.c.bf16 %v3245_v30, %v3245_v30  ;;  %v3368_v30 = vld [vmem:[%s5598_s0 + $0x360] sm:$0xff] }
  0x47   :  { %v3758_v34 = vpack.c.bf16 %v3368_v30, %v3368_v30 }
  0x48   :  { %132 = vrot.lane.b32.xlu1 %v3669_v6, %s4096_s21 }
  0x49   :  { %130 = vrot.lane.b32.xlu0 %v3668_v7, %s4096_s21 }
  0x4c   :  { %194 = vrot.lane.b32.xlu1 %v3675_v11, %s4097_s30 }
  0x4d   :  { %192 = vrot.lane.b32.xlu0 %v3713_v56, %s4097_s30  ;;  %v3307_v56 = vld [vmem:[%s5598_s0 + $0x420] sm:$0xff] }
  0x4e   :  { %v3729_v58 = vpack.c.bf16 %v3307_v56, %v3307_v56 }
  0x50   :  { %198 = vrot.lane.b32.xlu1 %v3677_v14, %s4097_s30  ;;  %654 = vst.msk [vmem:[#allocation2 + $0x2c] sm:$0xf] %vm77_vm0, %v3729_v58  ;;  %v3777_v58 = vpack.c.bf16 %v3403_v55, %v3403_v55 }
  0x51   :  { %196 = vrot.lane.b32.xlu0 %v3676_v15, %s4097_s30 }
  0x54   :  { %259 = vrot.lane.b32.xlu1 %v3683_v17, %s4098_s28 }
  0x55   :  { %257 = vrot.lane.b32.xlu0 %v3721_v3, %s4098_s28  ;;  %v4495_v3 = vpack.c.bf16 %v3322_v63, %v3322_v63  ;;  %v3731_v63 = vpack.c.bf16 %v3309_v62, %v3309_v62 }
  0x57   :  { %656 = vst.msk [vmem:[#allocation2 + $0x34] sm:$0xf] %vm77_vm0, %v3731_v63 }
  0x58   :  { %263 = vrot.lane.b32.xlu1 %v4392_v20, %s4098_s28 }
  0x59   :  { %261 = vrot.lane.b32.xlu0 %v3684_v21, %s4098_s28 }
  0x5c   :  { %325 = vrot.lane.b32.xlu1 %v3691_v24, %s4099_s18  ;;  %v3354_v24 = vld [vmem:[%s5598_s0 + $0x261] sm:$0xff] }
  0x5d   :  { %323 = vrot.lane.b32.xlu0 %v3690_v25, %s4099_s18 }
  0x60   :  { %329 = vrot.lane.b32.xlu1 %v3693_v28, %s4099_s18  ;;  %v4553_v28 = vpack.c.bf16 %v3354_v24, %v3354_v24 }
  0x61   :  { %327 = vrot.lane.b32.xlu0 %v3692_v29, %s4099_s18  ;;  %v3369_v29 = vld [vmem:[%s5598_s0 + $0x370] sm:$0xff] }
  0x64   :  { %390 = vrot.lane.b32.xlu1 %v3699_v32, %s4100_s29 }
  0x65   :  { %388 = vrot.lane.b32.xlu0 %v3698_v33, %s4100_s29  ;;  %v3759_v33 = vpack.c.bf16 %v3369_v29, %v3369_v29 }
  0x68   :  { %394 = vrot.lane.b32.xlu1 %v3701_v36, %s4100_s29  ;;  %v3370_v36 = vld [vmem:[%s5598_s0 + $0x380] sm:$0xff] }
  0x69   :  { %392 = vrot.lane.b32.xlu0 %v3700_v37, %s4100_s29  ;;  %v3760_v40 = vpack.c.bf16 %v3370_v36, %v3370_v36 }
  0x6c   :  { %456 = vrot.lane.b32.xlu1 %v3668_v7, %s4101_s13 }
  0x6d   :  { %454 = vrot.lane.b32.xlu0 %v4342_v1, %s4101_s13 }
  0x70   :  { %460 = vrot.lane.b32.xlu1 %v3709_v39, %s4101_s13  ;;  %v3761_v39 = vpack.c.bf16 %v3371_v35, %v3371_v35 }
  0x71   :  { %458 = vrot.lane.b32.xlu0 %v3669_v6, %s4101_s13 }
  0x74   :  { %522 = vrot.lane.b32.xlu1 %v3676_v15, %s4102_s24 }
  0x75   :  { %520 = vrot.lane.b32.xlu0 %v3675_v11, %s4102_s24  ;;  %v3339_v11 = vld [vmem:[%s5598_s0 + $0x300] sm:$0xff] }
  0x76   :  { %v123_v42 = vpop.permute.xlu1 %122  ;;  %v4522_v15 = vpack.c.bf16 %v3339_v11, %v3339_v11 }
  0x77   :  { %v119_v43 = vpop.permute.xlu0 %118  ;;  %145 = vst.msk [vmem:[#allocation2 + $0x8] sm:$0xf] %vm142_vm2, %v123_v42  ;;  %v3384_v42 = vld [vmem:[%s5598_s0 + $0x361] sm:$0xff] }
  0x78   :  { %143 = vst.msk [vmem:[#allocation2] sm:$0xf] %vm142_vm2, %v119_v43  ;;  %526 = vrot.lane.b32.xlu1 %v3717_v41, %s4102_s24  ;;  %v3385_v41 = vld [vmem:[%s5598_s0 + $0x371] sm:$0xff] }
  0x79   :  { %524 = vrot.lane.b32.xlu0 %v3677_v14, %s4102_s24 }
  0x7a   :  { %v125_v45 = vpop.permute.xlu1 %124 }
  0x7b   :  { %v121_v46 = vpop.permute.xlu0 %120  ;;  %146 = vst.msk [vmem:[#allocation2 + $0xc] sm:$0xf] %vm142_vm2, %v125_v45  ;;  %v3767_v45 = vpack.c.bf16 %v3385_v41, %v3385_v41 }
  0x7c   :  { %144 = vst.msk [vmem:[#allocation2 + $0x4] sm:$0xf] %vm142_vm2, %v121_v46  ;;  %587 = vrot.lane.b32.xlu1 %v3684_v21, %s4103_s20  ;;  %v3766_v46 = vpack.c.bf16 %v3384_v42, %v3384_v42 }
  0x7d   :  { %585 = vrot.lane.b32.xlu0 %v3683_v17, %s4103_s20  ;;  %v3353_v17 = vld [vmem:[%s5598_s0 + $0x251] sm:$0xff] }
  0x7e   :  { %v187_v52 = vpop.permute.xlu1 %186  ;;  %v4538_v21 = vpack.c.bf16 %v3353_v17, %v3353_v17  ;;  %v3435_v17 = vld [vmem:[%s5598_s0 + $0x281] sm:$0xff] }
  0x7f   :  { %v185_v53 = vpop.permute.xlu0 %184  ;;  %210 = vst.msk [vmem:[#allocation2 + $0x4] sm:$0xf] %vm208_vm3, %v187_v52  ;;  %v3768_v52 = vpack.c.bf16 %v3386_v48, %v3386_v48  ;;  %v3373_v48 = vld [vmem:[%s5598_s0 + $0x3b0] sm:$0xff] }
  0x80   :  { %209 = vst.msk [vmem:[#allocation2] sm:$0xf] %vm208_vm3, %v185_v53  ;;  %591 = vrot.lane.b32.xlu1 %v3725_v47, %s4103_s20  ;;  %v3387_v47 = vld [vmem:[%s5598_s0 + $0x391] sm:$0xff] }
  0x81   :  { %589 = vrot.lane.b32.xlu0 %v4392_v20, %s4103_s20  ;;  %v3769_v51 = vpack.c.bf16 %v3387_v47, %v3387_v47 }
  0x82   :  { %v191_v0 = vpop.permute.xlu1 %190 }
  0x83   :  { %v189_v1 = vpop.permute.xlu0 %188  ;;  %212 = vst.msk [vmem:[#allocation2 + $0xc] sm:$0xf] %vm208_vm3, %v191_v0 }
  0x84   :  { %211 = vst.msk [vmem:[#allocation2 + $0x8] sm:$0xf] %vm208_vm3, %v189_v1  ;;  %694 = vrot.lane.b32.xlu1 %v4476_v60, %s4096_s21 }
  0x85   :  { %692 = vrot.lane.b32.xlu0 %v3734_v61, %s4096_s21 }
  0x86   :  { %v252_v6 = vpop.permute.xlu1 %251 }
  0x87   :  { %v250_v7 = vpop.permute.xlu0 %249  ;;  %275 = vst.msk [vmem:[#allocation2 + $0x4] sm:$0xf] %vm273_vm4, %v252_v6 }
  0x88   :  { %274 = vst.msk [vmem:[#allocation2] sm:$0xf] %vm273_vm4, %v250_v7  ;;  %698 = vrot.lane.b32.xlu1 %v4493_v2, %s4096_s21 }
  0x89   :  { %696 = vrot.lane.b32.xlu0 %v4495_v3, %s4096_s21 }
  0x8a   :  { %v256_v13 = vpop.permute.xlu1 %255 }
  0x8b   :  { %v254_v14 = vpop.permute.xlu0 %253  ;;  %277 = vst.msk [vmem:[#allocation2 + $0xc] sm:$0xf] %vm273_vm4, %v256_v13 }
  0x8c   :  { %276 = vst.msk [vmem:[#allocation2 + $0x8] sm:$0xf] %vm273_vm4, %v254_v14  ;;  %759 = vrot.lane.b32.xlu1 %v4509_v8, %s4097_s30  ;;  %v3310_v14 = vld [vmem:[%s5598_s0 + $0x450] sm:$0xff] }
  0x8d   :  { %757 = vrot.lane.b32.xlu0 %v3742_v9, %s4097_s30  ;;  %v3311_v9 = vld [vmem:[%s5598_s0 + $0x460] sm:$0xff] }
  0x8e   :  { %v318_v19 = vpop.permute.xlu1 %317  ;;  %v3733_v13 = vpack.c.bf16 %v3311_v9, %v3311_v9 }
  0x8f   :  { %v316_v20 = vpop.permute.xlu0 %315  ;;  %341 = vst.msk [vmem:[#allocation2 + $0x4] sm:$0xf] %vm339_vm5, %v318_v19 }
  0x90   :  { %340 = vst.msk [vmem:[#allocation2] sm:$0xf] %vm339_vm5, %v316_v20  ;;  %763 = vrot.lane.b32.xlu1 %v4522_v15, %s4097_s30 }
  0x91   :  { %761 = vrot.lane.b32.xlu0 %v4524_v16, %s4097_s30  ;;  %658 = vst.msk [vmem:[#allocation2 + $0x3c] sm:$0xf] %vm77_vm0, %v3733_v13 }
  0x92   :  { %v322_v25 = vpop.permute.xlu1 %321 }
  0x93   :  { %v320_v26 = vpop.permute.xlu0 %319  ;;  %343 = vst.msk [vmem:[#allocation2 + $0xc] sm:$0xf] %vm339_vm5, %v322_v25 }
  0x94   :  { %342 = vst.msk [vmem:[#allocation2 + $0x8] sm:$0xf] %vm339_vm5, %v320_v26  ;;  %823 = vrot.lane.b32.xlu1 %v4538_v21, %s4098_s28  ;;  %v3326_v26 = vld [vmem:[%s5598_s0 + $0x2a0] sm:$0xff] }
  0x95   :  { %821 = vrot.lane.b32.xlu0 %v3750_v22, %s4098_s28 }
  0x96   :  { %v383_v31 = vpop.permute.xlu1 %382 }
  0x97   :  { %v381_v32 = vpop.permute.xlu0 %380  ;;  %406 = vst.msk [vmem:[#allocation2 + $0x4] sm:$0xf] %vm404_vm6, %v383_v31 }
  0x98   :  { %405 = vst.msk [vmem:[#allocation2] sm:$0xf] %vm404_vm6, %v381_v32  ;;  %827 = vrot.lane.b32.xlu1 %v4551_v27, %s4098_s28  ;;  %v4687_v32 = vpack.c.bf16 %v3326_v26, %v3326_v26  ;;  %v3439_v26 = vld [vmem:[%s5598_s0 + $0x2c1] sm:$0xff] }
  0x99   :  { %825 = vrot.lane.b32.xlu0 %v4553_v28, %s4098_s28 }
  0x9a   :  { %v387_v37 = vpop.permute.xlu1 %386 }
  0x9b   :  { %v385_v38 = vpop.permute.xlu0 %384  ;;  %408 = vst.msk [vmem:[#allocation2 + $0xc] sm:$0xf] %vm404_vm6, %v387_v37 }
  0x9c   :  { %407 = vst.msk [vmem:[#allocation2 + $0x8] sm:$0xf] %vm404_vm6, %v385_v38  ;;  %888 = vrot.lane.b32.xlu1 %v3759_v33, %s4099_s18  ;;  %v3357_v38 = vld [vmem:[%s5598_s0 + $0x291] sm:$0xff] }
  0x9d   :  { %886 = vrot.lane.b32.xlu0 %v3758_v34, %s4099_s18  ;;  %v3343_v34 = vld [vmem:[%s5598_s0 + $0x340] sm:$0xff]  ;;  %v4721_v42 = vpack.c.bf16 %v3357_v38, %v3357_v38 }
  0x9e   :  { %v449_v43 = vpop.permute.xlu1 %448  ;;  %v4708_v37 = vpack.c.bf16 %v3343_v34, %v3343_v34  ;;  %v4104_v34 = vmov 0.0  }
  0x9f   :  { %v447_v44 = vpop.permute.xlu0 %446  ;;  %472 = vst.msk [vmem:[#allocation2 + $0x4] sm:$0xf] %vm470_vm7, %v449_v43  ;;  %v3359_v43 = vld [vmem:[%s5598_s0 + $0x2b1] sm:$0xff] }
  0xa0   :  { %471 = vst.msk [vmem:[#allocation2] sm:$0xf] %vm470_vm7, %v447_v44  ;;  %892 = vrot.lane.b32.xlu1 %v3761_v39, %s4099_s18  ;;  %v4735_v47 = vpack.c.bf16 %v3359_v43, %v3359_v43 }
  0xa1   :  { %890 = vrot.lane.b32.xlu0 %v3760_v40, %s4099_s18  ;;  %1448 = vst.msk [vmem:[#allocation3 + $0x30] sm:$0xff] %vm1440_vm12, %v4104_v34  ;;  %1441 = vst.msk [vmem:[#allocation3] sm:$0xff] %vm1440_vm12, %v4104_v34 }
  0xa2   :  { %v453_v49 = vpop.permute.xlu1 %452  ;;  %1449 = vst.msk [vmem:[#allocation3 + $0x38] sm:$0x3] %vm1442_vm13, %v4104_v34  ;;  %1443 = vst.msk [vmem:[#allocation3 + $0x8] sm:$0x3] %vm1442_vm13, %v4104_v34 }
  0xa3   :  { %v451_v50 = vpop.permute.xlu0 %450  ;;  %474 = vst.msk [vmem:[#allocation2 + $0xc] sm:$0xf] %vm470_vm7, %v453_v49 }
  0xa4   :  { %473 = vst.msk [vmem:[#allocation2 + $0x8] sm:$0xf] %vm470_vm7, %v451_v50  ;;  %952 = vrot.lane.b32.xlu1 %v3767_v45, %s4100_s29 }
  0xa5   :  { %950 = vrot.lane.b32.xlu0 %v3766_v46, %s4100_s29  ;;  %v3358_v46 = vld [vmem:[%s5598_s0 + $0x2a1] sm:$0xff]  ;;  %1444 = vst.msk [vmem:[#allocation3 + $0x10] sm:$0xff] %vm1440_vm12, %v4104_v34  ;;  %1446 = vst.msk [vmem:[#allocation3 + $0x20] sm:$0xff] %vm1440_vm12, %v4104_v34 }
  0xa6   :  { %v515_v53 = vpop.permute.xlu1 %514  ;;  %1445 = vst.msk [vmem:[#allocation3 + $0x18] sm:$0x3] %vm1442_vm13, %v4104_v34  ;;  %1447 = vst.msk [vmem:[#allocation3 + $0x28] sm:$0x3] %vm1442_vm13, %v4104_v34 }
  0xa7   :  { %v513_v54 = vpop.permute.xlu0 %512  ;;  %538 = vst.msk [vmem:[#allocation2 + $0x4] sm:$0xf] %vm536_vm8, %v515_v53  ;;  %v3763_v53 = vpack.c.bf16 %v3373_v48, %v3373_v48 }
  0xa8   :  { %537 = vst.msk [vmem:[#allocation2] sm:$0xf] %vm536_vm8, %v513_v54  ;;  %956 = vrot.lane.b32.xlu1 %v3769_v51, %s4100_s29  ;;  %v4741_v51 = vpack.c.bf16 %v3358_v46, %v3358_v46  ;;  %v3375_v54 = vld [vmem:[%s5598_s0 + $0x3d0] sm:$0xff] }
  0xa9   :  { %954 = vrot.lane.b32.xlu0 %v3768_v52, %s4100_s29  ;;  %v3372_v52 = vld [vmem:[%s5598_s0 + $0x3a0] sm:$0xff]  ;;  %1450 = vst.msk [vmem:[#allocation3 + $0x40] sm:$0xff] %vm1440_vm12, %v4104_v34  ;;  %1452 = vst.msk [vmem:[#allocation3 + $0x50] sm:$0xff] %vm1440_vm12, %v4104_v34 }
  0xaa   :  { %v519_v56 = vpop.permute.xlu1 %518  ;;  %1451 = vst.msk [vmem:[#allocation3 + $0x48] sm:$0x3] %vm1442_vm13, %v4104_v34  ;;  %1453 = vst.msk [vmem:[#allocation3 + $0x58] sm:$0x3] %vm1442_vm13, %v4104_v34  ;;  %v1548_v38 = vld [vmem:[#allocation3 + $0x1] sm:$0xff] }
  0xab   :  { %v517_v57 = vpop.permute.xlu0 %516  ;;  %540 = vst.msk [vmem:[#allocation2 + $0xc] sm:$0xf] %vm536_vm8, %v519_v56 }
  0xac   :  { %539 = vst.msk [vmem:[#allocation2 + $0x8] sm:$0xf] %vm536_vm8, %v517_v57  ;;  %1017 = vrot.lane.b32.xlu1 %v4495_v3, %s4101_s13  ;;  %v3762_v57 = vpack.c.bf16 %v3372_v52, %v3372_v52 }
  0xad   :  { %1015 = vrot.lane.b32.xlu0 %v4476_v60, %s4101_s13  ;;  %v3419_v60 = vld [vmem:[%s5598_s0 + $0x310] sm:$0xff]  ;;  %1454 = vst.msk [vmem:[#allocation3 + $0x60] sm:$0xff] %vm1440_vm12, %v4104_v34  ;;  %1456 = vst.msk [vmem:[#allocation3 + $0x70] sm:$0xff] %vm1440_vm12, %v4104_v34 }
  0xae   :  { %v580_v59 = vpop.permute.xlu1 %579  ;;  %v4631_v3 = vpack.c.bf16 %v3419_v60, %v3419_v60  ;;  %1455 = vst.msk [vmem:[#allocation3 + $0x68] sm:$0x3] %vm1442_vm13, %v4104_v34  ;;  %1457 = vst.msk [vmem:[#allocation3 + $0x78] sm:$0x3] %vm1442_vm13, %v4104_v34 }
  0xaf   :  { %v578_v61 = vpop.permute.xlu0 %577  ;;  %603 = vst.msk [vmem:[#allocation2 + $0x4] sm:$0xf] %vm601_vm9, %v580_v59  ;;  %v3765_v59 = vpack.c.bf16 %v3375_v54, %v3375_v54 }
  0xb0   :  { %602 = vst.msk [vmem:[#allocation2] sm:$0xf] %vm601_vm9, %v578_v61  ;;  %1021 = vrot.lane.b32.xlu1 %v3777_v58, %s4101_s13  ;;  %v3389_v61 = vld [vmem:[%s5598_s0 + $0x3b1] sm:$0xff] }
  0xb1   :  { %1019 = vrot.lane.b32.xlu0 %v4493_v2, %s4101_s13  ;;  %v3308_v2 = vld [vmem:[%s5598_s0 + $0x430] sm:$0xff]  ;;  %1458 = vst.msk [vmem:[#allocation3 + $0x80] sm:$0xff] %vm1440_vm12, %v4104_v34  ;;  %1460 = vst.msk [vmem:[#allocation3 + $0x90] sm:$0xff] %vm1440_vm12, %v4104_v34 }
  0xb2   :  { %v129_v0 = vpop.permute.xlu1 %128  ;;  %v3730_v4 = vpack.c.bf16 %v3308_v2, %v3308_v2  ;;  %v3391_v2 = vld [vmem:[%s5598_s0 + $0x3d1] sm:$0xff]  ;;  %1459 = vst.msk [vmem:[#allocation3 + $0x88] sm:$0x3] %vm1442_vm13, %v4104_v34  ;;  %1461 = vst.msk [vmem:[#allocation3 + $0x98] sm:$0x3] %vm1442_vm13, %v4104_v34 }
  0xb3   :  { %v127_v1 = vpop.permute.xlu0 %126  ;;  %148 = vst.msk [vmem:[#allocation2 + $0x14] sm:$0xf] %vm142_vm2, %v129_v0  ;;  %v3388_v0 = vld [vmem:[%s5598_s0 + $0x3a1] sm:$0xff] }
  0xb4   :  { %147 = vst.msk [vmem:[#allocation2 + $0x10] sm:$0xf] %vm142_vm2, %v127_v1  ;;  %1082 = vrot.lane.b32.xlu1 %v4524_v16, %s4102_s24  ;;  %v3732_v16 = vpack.c.bf16 %v3310_v14, %v3310_v14  ;;  %v3771_v1 = vpack.c.bf16 %v3389_v61, %v3389_v61 }
  0xb5   :  { %1080 = vrot.lane.b32.xlu0 %v4509_v8, %s4102_s24  ;;  %655 = vst.msk [vmem:[#allocation2 + $0x30] sm:$0xf] %vm77_vm0, %v3730_v4  ;;  %v3325_v8 = vld [vmem:[%s5598_s0 + $0x290] sm:$0xff] }
  0xb6   :  { %v584_v5 = vpop.permute.xlu1 %583  ;;  %657 = vst.msk [vmem:[#allocation2 + $0x38] sm:$0xf] %vm77_vm0, %v3732_v16  ;;  %vm1669_vm0 = vcmask 191616  }
  0xb7   :  { %v582_v6 = vpop.permute.xlu0 %581  ;;  %v4066_v7 = vld [vmem:[#allocation2] sm:$0xff]   ;;  %605 = vst.msk [vmem:[#allocation2 + $0xc] sm:$0xf] %vm601_vm9, %v584_v5  ;;  %v3770_v5 = vpack.c.bf16 %v3388_v0, %v3388_v0 }
  0xb8   :  { %604 = vst.msk [vmem:[#allocation2 + $0x8] sm:$0xf] %vm601_vm9, %v582_v6  ;;  %3981 = vmatprep.mubr.msk.bf16.mxu0 %vm1252_vm10, %v4066_v7  ;;  %1086 = vrot.lane.b32.xlu1 %v4631_v3, %s4102_s24  ;;  %v4069_v22 = vld [vmem:[#allocation2] sm:$0xff]   ;;  %v3773_v7 = vpack.c.bf16 %v3391_v2, %v3391_v2 }
  0xb9   :  { %1084 = vrot.lane.b32.xlu0 %v4522_v15, %s4102_s24  ;;  %v4654_v15 = vpack.c.bf16 %v3325_v8, %v3325_v8  ;;  %v3390_v6 = vld [vmem:[%s5598_s0 + $0x3c1] sm:$0xff]  ;;  %1462 = vst.msk [vmem:[#allocation3 + $0xa0] sm:$0xff] %vm1440_vm12, %v4104_v34  ;;  %1464 = vst.msk [vmem:[#allocation3 + $0xb0] sm:$0xff] %vm1440_vm12, %v4104_v34 }
  0xba   :  { %v133_v11 = vpop.permute.xlu1 %132  ;;  %1463 = vst.msk [vmem:[#allocation3 + $0xa8] sm:$0x3] %vm1442_vm13, %v4104_v34  ;;  %1465 = vst.msk [vmem:[#allocation3 + $0xb8] sm:$0x3] %vm1442_vm13, %v4104_v34 }
  0xbb   :  { %v131_v12 = vpop.permute.xlu0 %130  ;;  %150 = vst.msk [vmem:[#allocation2 + $0x1c] sm:$0xf] %vm142_vm2, %v133_v11  ;;  %v3772_v11 = vpack.c.bf16 %v3390_v6, %v3390_v6 }
  0xbc   :  { %149 = vst.msk [vmem:[#allocation2 + $0x18] sm:$0xf] %vm142_vm2, %v131_v12  ;;  %1146 = vrot.lane.b32.xlu1 %v4553_v28, %s4103_s20  ;;  %v4680_v28 = vpack.c.bf16 %v3327_v23, %v3327_v23  ;;  %v3407_v12 = vld [vmem:[%s5598_s0 + $0x2c0] sm:$0xff] }
  0xbd   :  { %1144 = vrot.lane.b32.xlu0 %v4538_v21, %s4103_s20  ;;  %v3793_v21 = vpack.c.bf16 %v3435_v17, %v3435_v17  ;;  %v3781_v16 = vpack.c.bf16 %v3407_v12, %v3407_v12  ;;  %1466 = vst.msk [vmem:[#allocation3 + $0xc0] sm:$0xff] %vm1440_vm12, %v4104_v34  ;;  %1468 = vst.msk [vmem:[#allocation3 + $0xd0] sm:$0xff] %vm1440_vm12, %v4104_v34 }
  0xbe   :  { %v195_v18 = vpop.permute.xlu1 %194  ;;  %1467 = vst.msk [vmem:[#allocation3 + $0xc8] sm:$0x3] %vm1442_vm13, %v4104_v34  ;;  %1469 = vst.msk [vmem:[#allocation3 + $0xd8] sm:$0x3] %vm1442_vm13, %v4104_v34 }
  0xbf   :  { %v193_v19 = vpop.permute.xlu0 %192  ;;  %v4068_v20 = vld [vmem:[#allocation2 + $0x8] sm:$0xff]   ;;  %214 = vst.msk [vmem:[#allocation2 + $0x14] sm:$0xf] %vm208_vm3, %v195_v18 }
  0xc0   :  { %213 = vst.msk [vmem:[#allocation2 + $0x10] sm:$0xf] %vm208_vm3, %v193_v19  ;;  %3982 = vmatmul.mubr.msk.bf16.vlgmr.msra.gmra.mxu0 %vm1252_vm10, %v4068_v20  ;;  %702 = vrot.lane.b32.xlu1 %v4654_v15, %s4096_s21  ;;  %v4070_v31 = vld [vmem:[#allocation2 + $0x8] sm:$0xff]   ;;  %v3423_v19 = vld [vmem:[%s5598_s0 + $0x350] sm:$0xff] }
  0xc1   :  { %4025 = vmatprep.mubr.msk.bf16.mxu0 %vm2953_vm11, %v4069_v22  ;;  %4024 = vmatpush3.bf16.msra.mxu0 %v4367_v10  ;;  %v3341_v10 = vld [vmem:[%s5598_s0 + $0x320] sm:$0xff]  ;;  %1470 = vst.msk [vmem:[#allocation3 + $0xe0] sm:$0xff] %vm1440_vm12, %v4104_v34  ;;  %1472 = vst.msk [vmem:[#allocation3 + $0xf0] sm:$0xff] %vm1440_vm12, %v4104_v34 }
  0xc2   :  { %v199_v24 = vpop.permute.xlu1 %198  ;;  %700 = vrot.lane.b32.xlu0 %v3777_v58, %s4096_s21  ;;  %v4694_v33 = vpack.c.bf16 %v3341_v10, %v3341_v10  ;;  %v3374_v58 = vld [vmem:[%s5598_s0 + $0x3c0] sm:$0xff]  ;;  %1471 = vst.msk [vmem:[#allocation3 + $0xe8] sm:$0x3] %vm1442_vm13, %v4104_v34  ;;  %1473 = vst.msk [vmem:[#allocation3 + $0xf8] sm:$0x3] %vm1442_vm13, %v4104_v34 }
  0xc3   :  { %v197_v25 = vpop.permute.xlu0 %196  ;;  %216 = vst.msk [vmem:[#allocation2 + $0x1c] sm:$0xf] %vm208_vm3, %v199_v24  ;;  %v3764_v63 = vpack.c.bf16 %v3374_v58, %v3374_v58 }
  0xc4   :  { %215 = vst.msk [vmem:[#allocation2 + $0x18] sm:$0xf] %vm208_vm3, %v197_v25  ;;  %1150 = vrot.lane.b32.xlu1 %v3793_v21, %s4103_s20 }
  0xc5   :  { %1474 = vst.msk [vmem:[#allocation3 + $0x100] sm:$0xff] %vm1440_vm12, %v4104_v34  ;;  %1476 = vst.msk [vmem:[#allocation3 + $0x110] sm:$0xff] %vm1440_vm12, %v4104_v34 }
  0xc6   :  { %v260_v29 = vpop.permute.xlu1 %259  ;;  %1148 = vrot.lane.b32.xlu0 %v4551_v27, %s4103_s20  ;;  %v3342_v27 = vld [vmem:[%s5598_s0 + $0x330] sm:$0xff]  ;;  %1475 = vst.msk [vmem:[#allocation3 + $0x108] sm:$0x3] %vm1442_vm13, %v4104_v34  ;;  %1477 = vst.msk [vmem:[#allocation3 + $0x118] sm:$0x3] %vm1442_vm13, %v4104_v34 }
  0xc7   :  { %v258_v30 = vpop.permute.xlu0 %257  ;;  %279 = vst.msk [vmem:[#allocation2 + $0x14] sm:$0xf] %vm273_vm4, %v260_v29  ;;  %v4715_v41 = vpack.c.bf16 %v3342_v27, %v3342_v27 }
  0xc8   :  { %278 = vst.msk [vmem:[#allocation2 + $0x10] sm:$0xf] %vm273_vm4, %v258_v30  ;;  %4026 = vmatmul.mubr.msk.bf16.vlgmr.msra.gmra.mxu0 %vm2953_vm11, %v4070_v31  ;;  %706 = vrot.lane.b32.xlu1 %v4680_v28, %s4096_s21  ;;  %v3797_v31 = vpack.c.bf16 %v3439_v26, %v3439_v26 }
  0xc9   :  { %1478 = vst.msk [vmem:[#allocation3 + $0x120] sm:$0xff] %vm1440_vm12, %v4104_v34  ;;  %1480 = vst.msk [vmem:[#allocation3 + $0x130] sm:$0xff] %vm1440_vm12, %v4104_v34 }
  0xca   :  { %v264_v35 = vpop.permute.xlu1 %263  ;;  %704 = vrot.lane.b32.xlu0 %v4687_v32, %s4096_s21  ;;  %1479 = vst.msk [vmem:[#allocation3 + $0x128] sm:$0x3] %vm1442_vm13, %v4104_v34  ;;  %1481 = vst.msk [vmem:[#allocation3 + $0x138] sm:$0x3] %vm1442_vm13, %v4104_v34 }
  0xcb   :  { %v262_v36 = vpop.permute.xlu0 %261  ;;  %281 = vst.msk [vmem:[#allocation2 + $0x1c] sm:$0xf] %vm273_vm4, %v264_v35 }
  0xcc   :  { %280 = vst.msk [vmem:[#allocation2 + $0x18] sm:$0xf] %vm273_vm4, %v262_v36  ;;  %767 = vrot.lane.b32.xlu1 %v4694_v33, %s4097_s30 }
  0xce   :  { %v326_v39 = vpop.permute.xlu1 %325  ;;  %765 = vrot.lane.b32.xlu0 %v4631_v3, %s4097_s30 }
  0xcf   :  { %v324_v40 = vpop.permute.xlu0 %323  ;;  %345 = vst.msk [vmem:[#allocation2 + $0x14] sm:$0xf] %vm339_vm5, %v326_v39  ;;  %v3806_v39 = vpack.c.bf16 %v1548_v38, %v1548_v38  ;;  %v1499_v38 = vld [vmem:[#allocation3] sm:$0xff] }
  0xd0   :  { %344 = vst.msk [vmem:[#allocation2 + $0x10] sm:$0xf] %vm339_vm5, %v324_v40  ;;  %771 = vrot.lane.b32.xlu1 %v4708_v37, %s4097_s30 }
  0xd2   :  { %v330_v44 = vpop.permute.xlu1 %329  ;;  %769 = vrot.lane.b32.xlu0 %v4715_v41, %s4097_s30 }
  0xd3   :  { %v328_v45 = vpop.permute.xlu0 %327  ;;  %347 = vst.msk [vmem:[#allocation2 + $0x1c] sm:$0xf] %vm339_vm5, %v330_v44 }
  0xd4   :  { %346 = vst.msk [vmem:[#allocation2 + $0x18] sm:$0xf] %vm339_vm5, %v328_v45  ;;  %831 = vrot.lane.b32.xlu1 %v4721_v42, %s4098_s28 }
  0xd6   :  { %v391_v49 = vpop.permute.xlu1 %390  ;;  %829 = vrot.lane.b32.xlu0 %v3793_v21, %s4098_s28 }
  0xd7   :  { %v389_v50 = vpop.permute.xlu0 %388  ;;  %410 = vst.msk [vmem:[#allocation2 + $0x14] sm:$0xf] %vm404_vm6, %v391_v49 }
  0xd8   :  { %409 = vst.msk [vmem:[#allocation2 + $0x10] sm:$0xf] %vm404_vm6, %v389_v50  ;;  %835 = vrot.lane.b32.xlu1 %v4735_v47, %s4098_s28 }
  0xda   :  { %v395_v55 = vpop.permute.xlu1 %394  ;;  %833 = vrot.lane.b32.xlu0 %v4741_v51, %s4098_s28 }
  0xdb   :  { %v393_v56 = vpop.permute.xlu0 %392  ;;  %412 = vst.msk [vmem:[#allocation2 + $0x1c] sm:$0xf] %vm404_vm6, %v395_v55 }
  0xdc   :  { %411 = vst.msk [vmem:[#allocation2 + $0x18] sm:$0xf] %vm404_vm6, %v393_v56  ;;  %896 = vrot.lane.b32.xlu1 %v3763_v53, %s4099_s18 }
  0xde   :  { %v457_v62 = vpop.permute.xlu1 %456  ;;  %894 = vrot.lane.b32.xlu0 %v3762_v57, %s4099_s18 }
  0xdf   :  { %v455_v60 = vpop.permute.xlu0 %454  ;;  %476 = vst.msk [vmem:[#allocation2 + $0x14] sm:$0xf] %vm470_vm7, %v457_v62 }
  0xe0   :  { %475 = vst.msk [vmem:[#allocation2 + $0x10] sm:$0xf] %vm470_vm7, %v455_v60  ;;  %900 = vrot.lane.b32.xlu1 %v3765_v59, %s4099_s18 }
  0xe2   :  { %v461_v3 = vpop.permute.xlu1 %460  ;;  %898 = vrot.lane.b32.xlu0 %v3764_v63, %s4099_s18 }
  0xe3   :  { %v459_v4 = vpop.permute.xlu0 %458  ;;  %478 = vst.msk [vmem:[#allocation2 + $0x1c] sm:$0xf] %vm470_vm7, %v461_v3 }
  0xe4   :  { %477 = vst.msk [vmem:[#allocation2 + $0x18] sm:$0xf] %vm470_vm7, %v459_v4  ;;  %960 = vrot.lane.b32.xlu1 %v3771_v1, %s4100_s29 }
  0xe6   :  { %v523_v8 = vpop.permute.xlu1 %522  ;;  %958 = vrot.lane.b32.xlu0 %v3770_v5, %s4100_s29 }
  0xe7   :  { %v521_v9 = vpop.permute.xlu0 %520  ;;  %542 = vst.msk [vmem:[#allocation2 + $0x14] sm:$0xf] %vm536_vm8, %v523_v8 }
  0xe8   :  { %541 = vst.msk [vmem:[#allocation2 + $0x10] sm:$0xf] %vm536_vm8, %v521_v9  ;;  %964 = vrot.lane.b32.xlu1 %v3773_v7, %s4100_s29 }
  0xea   :  { %v527_v13 = vpop.permute.xlu1 %526  ;;  %962 = vrot.lane.b32.xlu0 %v3772_v11, %s4100_s29 }
  0xeb   :  { %v525_v14 = vpop.permute.xlu0 %524  ;;  %544 = vst.msk [vmem:[#allocation2 + $0x1c] sm:$0xf] %vm536_vm8, %v527_v13 }
  0xec   :  { %543 = vst.msk [vmem:[#allocation2 + $0x18] sm:$0xf] %vm536_vm8, %v525_v14  ;;  %1025 = vrot.lane.b32.xlu1 %v4687_v32, %s4101_s13 }
  0xee   :  { %v588_v17 = vpop.permute.xlu1 %587  ;;  %1023 = vrot.lane.b32.xlu0 %v4654_v15, %s4101_s13  ;;  %v3789_v15 = vpack.c.bf16 %v3423_v19, %v3423_v19 }
  0xef   :  { %v586_v18 = vpop.permute.xlu0 %585  ;;  %607 = vst.msk [vmem:[#allocation2 + $0x14] sm:$0xf] %vm601_vm9, %v588_v17 }
  0xf0   :  { %606 = vst.msk [vmem:[#allocation2 + $0x10] sm:$0xf] %vm601_vm9, %v586_v18  ;;  %1029 = vrot.lane.b32.xlu1 %v3781_v16, %s4101_s13 }
  0xf2   :  { %v592_v20 = vpop.permute.xlu1 %591  ;;  %1027 = vrot.lane.b32.xlu0 %v4680_v28, %s4101_s13 }
  0xf3   :  { %v590_v22 = vpop.permute.xlu0 %589  ;;  %609 = vst.msk [vmem:[#allocation2 + $0x1c] sm:$0xf] %vm601_vm9, %v592_v20 }
  0xf4   :  { %608 = vst.msk [vmem:[#allocation2 + $0x18] sm:$0xf] %vm601_vm9, %v590_v22  ;;  %1090 = vrot.lane.b32.xlu1 %v4715_v41, %s4102_s24 }
  0xf6   :  { %1088 = vrot.lane.b32.xlu0 %v4694_v33, %s4102_s24  ;;  %v695_v23 = vpop.permute.xlu1 %694 }
  0xf7   :  { %v4071_v21 = vld [vmem:[#allocation2 + $0x10] sm:$0xff]   ;;  %v693_v24 = vpop.permute.xlu0 %692  ;;  %717 = vst.msk [vmem:[#allocation2 + $0x24] sm:$0xf] %vm142_vm2, %v695_v23 }
  0xf8   :  { %v4072_v25 = vld [vmem:[#allocation2 + $0x10] sm:$0xff]   ;;  %716 = vst.msk [vmem:[#allocation2 + $0x20] sm:$0xf] %vm142_vm2, %v693_v24  ;;  %3985 = vmatprep.mubr.msk.bf16.mxu1 %vm1252_vm10, %v4071_v21  ;;  %1094 = vrot.lane.b32.xlu1 %v3789_v15, %s4102_s24 }
  0xf9   :  { %4029 = vmatprep.mubr.msk.bf16.mxu0 %vm2953_vm11, %v4072_v25 }
  0xfa   :  { %1092 = vrot.lane.b32.xlu0 %v4708_v37, %s4102_s24  ;;  %v699_v10 = vpop.permute.xlu1 %698 }
  0xfb   :  { %v4073_v28 = vld [vmem:[#allocation2 + $0x18] sm:$0xff]   ;;  %v697_v29 = vpop.permute.xlu0 %696  ;;  %719 = vst.msk [vmem:[#allocation2 + $0x2c] sm:$0xf] %vm142_vm2, %v699_v10 }
  0xfc   :  { %v4074_v30 = vld [vmem:[#allocation2 + $0x18] sm:$0xff]   ;;  %718 = vst.msk [vmem:[#allocation2 + $0x28] sm:$0xf] %vm142_vm2, %v697_v29  ;;  %3986 = vmatmul.mubr.msk.bf16.vlgmr.msra.gmra.mxu1 %vm1252_vm10, %v4073_v28  ;;  %1154 = vrot.lane.b32.xlu1 %v4741_v51, %s4103_s20 }
  0xfd   :  { %4030 = vmatmul.mubr.msk.bf16.gmra.mxu0 %vm2953_vm11, %v4074_v30 }
  0xfe   :  { %1152 = vrot.lane.b32.xlu0 %v4721_v42, %s4103_s20  ;;  %v760_v32 = vpop.permute.xlu1 %759  ;;  %v1613_v42 = vld [vmem:[#allocation3 + $0x2] sm:$0xff] }
  0xff   :  { %v758_v33 = vpop.permute.xlu0 %757  ;;  %782 = vst.msk [vmem:[#allocation2 + $0x24] sm:$0xf] %vm208_vm3, %v760_v32  ;;  %v3814_v43 = vpack.c.bf16 %v1613_v42, %v1613_v42 }
 0x100   :  { %781 = vst.msk [vmem:[#allocation2 + $0x20] sm:$0xf] %vm208_vm3, %v758_v33  ;;  %1158 = vrot.lane.b32.xlu1 %v3797_v31, %s4103_s20 }
 0x102   :  { %1156 = vrot.lane.b32.xlu0 %v4735_v47, %s4103_s20  ;;  %v764_v35 = vpop.permute.xlu1 %763 }
 0x103   :  { %v762_v36 = vpop.permute.xlu0 %761  ;;  %784 = vst.msk [vmem:[#allocation2 + $0x2c] sm:$0xf] %vm208_vm3, %v764_v35 }
 0x104   :  { %783 = vst.msk [vmem:[#allocation2 + $0x28] sm:$0xf] %vm208_vm3, %v762_v36 }
 0x106   :  { %v824_v27 = vpop.permute.xlu1 %823  ;;  %1580 = vrot.lane.b32.xlu0 %v3806_v39, %s4097_s30  ;;  %v3798_v39 = vpack.c.bf16 %v1499_v38, %v1499_v38 }
 0x107   :  { %v822_v37 = vpop.permute.xlu0 %821  ;;  %846 = vst.msk [vmem:[#allocation2 + $0x24] sm:$0xf] %vm273_vm4, %v824_v27 }
 0x108   :  { %845 = vst.msk [vmem:[#allocation2 + $0x20] sm:$0xf] %vm273_vm4, %v822_v37 }
 0x109   :  { %1540 = vst.msk [vmem:[#allocation4] sm:$0xf] %vm1539_vm14, %v3798_v39 }
 0x10a   :  { %v828_v40 = vpop.permute.xlu1 %827  ;;  %1645 = vrot.lane.b32.xlu0 %v3814_v43, %s4099_s18  ;;  %v4943_v43 = vld [vmem:[%s5601_s2] ss:$0 sm:$0xff]  ;;  %s4105_s2 = smov 40  }
 0x10b   :  { %v826_v41 = vpop.permute.xlu0 %825  ;;  %848 = vst.msk [vmem:[#allocation2 + $0x2c] sm:$0xf] %vm273_vm4, %v828_v40 }
 0x10c   :  { %847 = vst.msk [vmem:[#allocation2 + $0x28] sm:$0xf] %vm273_vm4, %v826_v41 }
 0x10e   :  { %v889_v44 = vpop.permute.xlu1 %888 }
 0x10f   :  { %v887_v45 = vpop.permute.xlu0 %886  ;;  %911 = vst.msk [vmem:[#allocation2 + $0x24] sm:$0xf] %vm339_vm5, %v889_v44 }
 0x110   :  { %910 = vst.msk [vmem:[#allocation2 + $0x20] sm:$0xf] %vm339_vm5, %v887_v45  ;;  %v4950_v45 = vld [vmem:[%s5602_s3] ss:$0 sm:$0xff]  ;;  %s4106_s3 = smov 48  }
 0x112   :  { %v893_v46 = vpop.permute.xlu1 %892 }
 0x113   :  { %v891_v47 = vpop.permute.xlu0 %890  ;;  %913 = vst.msk [vmem:[#allocation2 + $0x2c] sm:$0xf] %vm339_vm5, %v893_v46 }
 0x114   :  { %912 = vst.msk [vmem:[#allocation2 + $0x28] sm:$0xf] %vm339_vm5, %v891_v47 }
 0x116   :  { %v953_v48 = vpop.permute.xlu1 %952 }
 0x117   :  { %v951_v49 = vpop.permute.xlu0 %950  ;;  %975 = vst.msk [vmem:[#allocation2 + $0x24] sm:$0xf] %vm404_vm6, %v953_v48 }
 0x118   :  { %974 = vst.msk [vmem:[#allocation2 + $0x20] sm:$0xf] %vm404_vm6, %v951_v49 }
 0x11a   :  { %v957_v50 = vpop.permute.xlu1 %956 }
 0x11b   :  { %v955_v51 = vpop.permute.xlu0 %954  ;;  %977 = vst.msk [vmem:[#allocation2 + $0x2c] sm:$0xf] %vm404_vm6, %v957_v50 }
 0x11c   :  { %976 = vst.msk [vmem:[#allocation2 + $0x28] sm:$0xf] %vm404_vm6, %v955_v51 }
 0x11e   :  { %v1018_v52 = vpop.permute.xlu1 %1017 }
 0x11f   :  { %v1016_v53 = vpop.permute.xlu0 %1015  ;;  %1040 = vst.msk [vmem:[#allocation2 + $0x24] sm:$0xf] %vm470_vm7, %v1018_v52 }
 0x120   :  { %1039 = vst.msk [vmem:[#allocation2 + $0x20] sm:$0xf] %vm470_vm7, %v1016_v53 }
 0x122   :  { %v1022_v54 = vpop.permute.xlu1 %1021 }
 0x123   :  { %v1020_v55 = vpop.permute.xlu0 %1019  ;;  %1042 = vst.msk [vmem:[#allocation2 + $0x2c] sm:$0xf] %vm470_vm7, %v1022_v54 }
 0x124   :  { %1041 = vst.msk [vmem:[#allocation2 + $0x28] sm:$0xf] %vm470_vm7, %v1020_v55 }
 0x126   :  { %v1083_v56 = vpop.permute.xlu1 %1082 }
 0x127   :  { %v1081_v57 = vpop.permute.xlu0 %1080  ;;  %1105 = vst.msk [vmem:[#allocation2 + $0x24] sm:$0xf] %vm536_vm8, %v1083_v56 }
 0x128   :  { %1104 = vst.msk [vmem:[#allocation2 + $0x20] sm:$0xf] %vm536_vm8, %v1081_v57 }
 0x12a   :  { %v1087_v58 = vpop.permute.xlu1 %1086 }
 0x12b   :  { %1107 = vst.msk [vmem:[#allocation2 + $0x2c] sm:$0xf] %vm536_vm8, %v1087_v58  ;;  %v1085_v59 = vpop.permute.xlu0 %1084 }
 0x12c   :  { %1106 = vst.msk [vmem:[#allocation2 + $0x28] sm:$0xf] %vm536_vm8, %v1085_v59 }
 0x12e   :  { %v1147_v61 = vpop.permute.xlu1 %1146 }
 0x12f   :  { %1169 = vst.msk [vmem:[#allocation2 + $0x24] sm:$0xf] %vm601_vm9, %v1147_v61  ;;  %v1145_v62 = vpop.permute.xlu0 %1144 }
 0x130   :  { %1168 = vst.msk [vmem:[#allocation2 + $0x20] sm:$0xf] %vm601_vm9, %v1145_v62 }
 0x132   :  { %v703_v60 = vpop.permute.xlu1 %702 }
 0x133   :  { %721 = vst.msk [vmem:[#allocation2 + $0x34] sm:$0xf] %vm142_vm2, %v703_v60 }
 0x134   :  { %v701_v63 = vpop.permute.xlu0 %700 }
 0x135   :  { %720 = vst.msk [vmem:[#allocation2 + $0x30] sm:$0xf] %vm142_vm2, %v701_v63 }
 0x136   :  { %v1151_v0 = vpop.permute.xlu1 %1150 }
 0x137   :  { %1171 = vst.msk [vmem:[#allocation2 + $0x2c] sm:$0xf] %vm601_vm9, %v1151_v0  ;;  %v4075_v1 = vld [vmem:[#allocation2 + $0x20] sm:$0xff]  }
 0x138   :  { %v1149_v2 = vpop.permute.xlu0 %1148  ;;  %v4076_v3 = vld [vmem:[#allocation2 + $0x20] sm:$0xff]   ;;  %3989 = vmatprep.mubr.msk.bf16.mxu1 %vm1252_vm10, %v4075_v1 }
 0x139   :  { %1170 = vst.msk [vmem:[#allocation2 + $0x28] sm:$0xf] %vm601_vm9, %v1149_v2  ;;  %4033 = vmatprep.mubr.msk.bf16.mxu0 %vm2953_vm11, %v4076_v3 }
 0x13a   :  { %v707_v4 = vpop.permute.xlu1 %706 }
 0x13b   :  { %723 = vst.msk [vmem:[#allocation2 + $0x3c] sm:$0xf] %vm142_vm2, %v707_v4 }
 0x13c   :  { %v705_v5 = vpop.permute.xlu0 %704 }
 0x13d   :  { %722 = vst.msk [vmem:[#allocation2 + $0x38] sm:$0xf] %vm142_vm2, %v705_v5  ;;  %vm1734_vm2 = vcmask 257216  }
 0x13e   :  { %v768_v6 = vpop.permute.xlu1 %767 }
 0x13f   :  { %786 = vst.msk [vmem:[#allocation2 + $0x34] sm:$0xf] %vm208_vm3, %v768_v6 }
 0x140   :  { %v766_v7 = vpop.permute.xlu0 %765  ;;  %v4077_v8 = vld [vmem:[#allocation2 + $0x28] sm:$0xff]  }
 0x141   :  { %785 = vst.msk [vmem:[#allocation2 + $0x30] sm:$0xf] %vm208_vm3, %v766_v7  ;;  %v4078_v9 = vld [vmem:[#allocation2 + $0x28] sm:$0xff]   ;;  %3990 = vmatmul.mubr.msk.bf16.gmra.mxu1 %vm1252_vm10, %v4077_v8 }
 0x142   :  { %v772_v11 = vpop.permute.xlu1 %771  ;;  %4034 = vmatmul.mubr.msk.bf16.gmra.mxu0 %vm2953_vm11, %v4078_v9 }
 0x143   :  { %788 = vst.msk [vmem:[#allocation2 + $0x3c] sm:$0xf] %vm208_vm3, %v772_v11 }
 0x144   :  { %v770_v12 = vpop.permute.xlu0 %769 }
 0x145   :  { %787 = vst.msk [vmem:[#allocation2 + $0x38] sm:$0xf] %vm208_vm3, %v770_v12  ;;  %vm1799_vm3 = vcmask 322816  }
 0x146   :  { %v832_v13 = vpop.permute.xlu1 %831 }
 0x147   :  { %850 = vst.msk [vmem:[#allocation2 + $0x34] sm:$0xf] %vm273_vm4, %v832_v13 }
 0x148   :  { %v830_v14 = vpop.permute.xlu0 %829 }
 0x149   :  { %849 = vst.msk [vmem:[#allocation2 + $0x30] sm:$0xf] %vm273_vm4, %v830_v14 }
 0x14a   :  { %v836_v16 = vpop.permute.xlu1 %835 }
 0x14b   :  { %852 = vst.msk [vmem:[#allocation2 + $0x3c] sm:$0xf] %vm273_vm4, %v836_v16 }
 0x14c   :  { %v834_v17 = vpop.permute.xlu0 %833 }
 0x14d   :  { %851 = vst.msk [vmem:[#allocation2 + $0x38] sm:$0xf] %vm273_vm4, %v834_v17  ;;  %vm1864_vm4 = vcmask 388416  }
 0x14e   :  { %v897_v18 = vpop.permute.xlu1 %896 }
 0x14f   :  { %915 = vst.msk [vmem:[#allocation2 + $0x34] sm:$0xf] %vm339_vm5, %v897_v18 }
 0x150   :  { %v895_v19 = vpop.permute.xlu0 %894 }
 0x151   :  { %914 = vst.msk [vmem:[#allocation2 + $0x30] sm:$0xf] %vm339_vm5, %v895_v19 }
 0x152   :  { %v901_v20 = vpop.permute.xlu1 %900 }
 0x153   :  { %917 = vst.msk [vmem:[#allocation2 + $0x3c] sm:$0xf] %vm339_vm5, %v901_v20 }
 0x154   :  { %v899_v22 = vpop.permute.xlu0 %898 }
 0x155   :  { %916 = vst.msk [vmem:[#allocation2 + $0x38] sm:$0xf] %vm339_vm5, %v899_v22  ;;  %vm1930_vm5 = vcmask 454016  }
 0x156   :  { %v961_v15 = vpop.permute.xlu1 %960 }
 0x157   :  { %979 = vst.msk [vmem:[#allocation2 + $0x34] sm:$0xf] %vm404_vm6, %v961_v15 }
 0x158   :  { %v959_v21 = vpop.permute.xlu0 %958 }
 0x159   :  { %978 = vst.msk [vmem:[#allocation2 + $0x30] sm:$0xf] %vm404_vm6, %v959_v21 }
 0x15a   :  { %v965_v23 = vpop.permute.xlu1 %964 }
 0x15b   :  { %981 = vst.msk [vmem:[#allocation2 + $0x3c] sm:$0xf] %vm404_vm6, %v965_v23 }
 0x15c   :  { %v963_v24 = vpop.permute.xlu0 %962 }
 0x15d   :  { %980 = vst.msk [vmem:[#allocation2 + $0x38] sm:$0xf] %vm404_vm6, %v963_v24  ;;  %vm1995_vm6 = vcmask 519616  }
 0x15e   :  { %v1026_v25 = vpop.permute.xlu1 %1025 }
 0x15f   :  { %1044 = vst.msk [vmem:[#allocation2 + $0x34] sm:$0xf] %vm470_vm7, %v1026_v25 }
 0x160   :  { %v1024_v26 = vpop.permute.xlu0 %1023 }
 0x161   :  { %1043 = vst.msk [vmem:[#allocation2 + $0x30] sm:$0xf] %vm470_vm7, %v1024_v26 }
 0x162   :  { %v1030_v28 = vpop.permute.xlu1 %1029 }
 0x163   :  { %1046 = vst.msk [vmem:[#allocation2 + $0x3c] sm:$0xf] %vm470_vm7, %v1030_v28 }
 0x164   :  { %v1028_v10 = vpop.permute.xlu0 %1027 }
 0x165   :  { %1045 = vst.msk [vmem:[#allocation2 + $0x38] sm:$0xf] %vm470_vm7, %v1028_v10  ;;  %vm2060_vm7 = vcmask 585216  }
 0x166   :  { %v1091_v29 = vpop.permute.xlu1 %1090 }
 0x167   :  { %1109 = vst.msk [vmem:[#allocation2 + $0x34] sm:$0xf] %vm536_vm8, %v1091_v29 }
 0x168   :  { %v1089_v30 = vpop.permute.xlu0 %1088 }
 0x169   :  { %1108 = vst.msk [vmem:[#allocation2 + $0x30] sm:$0xf] %vm536_vm8, %v1089_v30 }
 0x16a   :  { %v1095_v31 = vpop.permute.xlu1 %1094 }
 0x16b   :  { %1111 = vst.msk [vmem:[#allocation2 + $0x3c] sm:$0xf] %vm536_vm8, %v1095_v31 }
 0x16c   :  { %v1093_v32 = vpop.permute.xlu0 %1092 }
 0x16d   :  { %1110 = vst.msk [vmem:[#allocation2 + $0x38] sm:$0xf] %vm536_vm8, %v1093_v32  ;;  %vm2724_vm8 = vcmask 588800  }
 0x16e   :  { %v1155_v33 = vpop.permute.xlu1 %1154 }
 0x16f   :  { %1173 = vst.msk [vmem:[#allocation2 + $0x34] sm:$0xf] %vm601_vm9, %v1155_v33 }
 0x170   :  { %v1153_v34 = vpop.permute.xlu0 %1152 }
 0x171   :  { %1172 = vst.msk [vmem:[#allocation2 + $0x30] sm:$0xf] %vm601_vm9, %v1153_v34 }
 0x172   :  { %v1159_v35 = vpop.permute.xlu1 %1158 }
 0x173   :  { %1175 = vst.msk [vmem:[#allocation2 + $0x3c] sm:$0xf] %vm601_vm9, %v1159_v35 }
 0x174   :  { %v1157_v36 = vpop.permute.xlu0 %1156 }
 0x175   :  { %1174 = vst.msk [vmem:[#allocation2 + $0x38] sm:$0xf] %vm601_vm9, %v1157_v36 }
 0x178   :  { %v4079_v27 = vld [vmem:[#allocation2 + $0x30] sm:$0xff]   ;;  %v1581_v41 = vpop.permute.xlu0 %1580 }
 0x179   :  { %v4080_v37 = vld [vmem:[#allocation2 + $0x30] sm:$0xff]   ;;  %3993 = vmatprep.mubr.msk.bf16.mxu1 %vm1252_vm10, %v4079_v27  ;;  %1605 = vst.msk [vmem:[#allocation4] sm:$0xf] %vm1604_vm15, %v1581_v41 }
 0x17a   :  { %4037 = vmatprep.mubr.msk.bf16.mxu0 %vm2953_vm11, %v4080_v37 }
 0x17c   :  { %v4081_v40 = vld [vmem:[#allocation2 + $0x38] sm:$0xff]   ;;  %v1646_v46 = vpop.permute.xlu0 %1645 }
 0x17d   :  { %v4082_v42 = vld [vmem:[#allocation2 + $0x38] sm:$0xff]   ;;  %3994 = vmatmul.mubr.msk.bf16.gmra.mxu1 %vm1252_vm10, %v4081_v40  ;;  %1670 = vst.msk [vmem:[#allocation4] sm:$0xf] %vm1669_vm0, %v1646_v46 }
 0x17e   :  { %4038 = vmatmul.mubr.msk.bf16.gmra.mxu0 %vm2953_vm11, %v4082_v42 }
 0x180   :  { %v3983_v44 = vpop.f32.mrf.mxu0 }
 0x181   :  { %v1387_v47 = vmul.f32 %v3983_v44, %v4943_v43 }
 0x182   :  { %v1315_v48 = vpop.f32.mrf.mxu0 }
 0x183   :  { %v1410_v49 = vadd.f32 %v4950_v45, %v1387_v47  ;;  %v1385_v50 = vmul.f32 %v4943_v43, %v1315_v48 }
 0x184   :  { %v3984_v51 = vpop.f32.mrf.mxu0 }
 0x185   :  { %v1426_v52 = vmax.f32 %v1410_v49, 0.0  ;;  %v1408_v53 = vadd.f32 %v4950_v45, %v1385_v50  ;;  %v1388_v54 = vmul.f32 %v3984_v51, %v4943_v43  ;;  %v4083_v51 = vld [vmem:[%s5603_s4 + $0x20] ss:$0 sps:$4 sm:$0xff]  }
 0x186   :  { %v1318_v55 = vpop.f32.mrf.mxu0  ;;  %4049 = vmatprep.subr.msk.bf16.mxu1 %vm2749_vm1, %v4083_v51 }
 0x187   :  { %1485 = vst.msk [vmem:[#allocation3 + $0x31] sm:$0xff] %vm1440_vm12, %v1426_v52  ;;  %v1424_v56 = vmax.f32 %v1408_v53, 0.0  ;;  %v1411_v57 = vadd.f32 %v4950_v45, %v1388_v54  ;;  %v1386_v58 = vmul.f32 %v4943_v43, %v1318_v55  ;;  %v2751_v55 = vsel %vm2749_vm1, %v4083_v51, 0 }
 0x188   :  { %3998 = vmatpush3.bf16.msra.mxu1 %v2751_v55 }
 0x189   :  { %1483 = vst.msk [vmem:[#allocation3 + $0x11] sm:$0xff] %vm1440_vm12, %v1424_v56  ;;  %v1427_v59 = vmax.f32 %v1411_v57, 0.0  ;;  %v1409_v61 = vadd.f32 %v4950_v45, %v1386_v58  ;;  %v4084_v56 = vld [vmem:[%s5603_s4 + $0x18] sm:$0xff]  }
 0x18a   :  { %3999 = vmatprep.subr.bf16.mxu1 %v4084_v56 }
 0x18b   :  { %1486 = vst.msk [vmem:[#allocation3 + $0x41] sm:$0xff] %vm1440_vm12, %v1427_v59  ;;  %v1425_v62 = vmax.f32 %v1409_v61, 0.0  ;;  %v4085_v61 = vld [vmem:[%s5603_s4 + $0x10] sm:$0xff]  }
 0x18c   :  { %4000 = vmatpush3.bf16.msra.mxu1 %v4084_v56 }
 0x18d   :  { %1484 = vst.msk [vmem:[#allocation3 + $0x21] sm:$0xff] %vm1440_vm12, %v1425_v62  ;;  %4001 = vmatprep.subr.bf16.mxu1 %v4085_v61 }
 0x18e   :  { %v1680_v60 = vld [vmem:[#allocation3 + $0x30] sm:$0xff] }
 0x18f   :  { %v1551_v63 = vld [vmem:[#allocation3 + $0x31] sm:$0xff]  ;;  %v3824_v0 = vpack.c.bf16 %v1680_v60, %v1680_v60 }
 0x190   :  { %v3809_v1 = vpack.c.bf16 %v1551_v63, %v1551_v63  ;;  %v1616_v2 = vld [vmem:[#allocation3 + $0x32] sm:$0xff]  ;;  %4002 = vmatpush3.bf16.msra.mxu1 %v4085_v61 }
 0x191   :  { %v1678_v3 = vld [vmem:[#allocation3 + $0x10] sm:$0xff]  ;;  %1714 = vrot.lane.b32.xlu0 %v3824_v0, %s4101_s13  ;;  %1543 = vst.msk [vmem:[#allocation4 + $0xc] sm:$0xf] %vm1539_vm14, %v3824_v0  ;;  %v3817_v6 = vpack.c.bf16 %v1616_v2, %v1616_v2 }
 0x192   :  { %1586 = vrot.lane.b32.xlu1 %v3809_v1, %s4097_s30  ;;  %v3822_v4 = vpack.c.bf16 %v1678_v3, %v1678_v3  ;;  %v1876_v5 = vld [vmem:[#allocation3 + $0x40] sm:$0xff]  ;;  %v1549_v35 = vld [vmem:[#allocation3 + $0x11] sm:$0xff] }
 0x193   :  { %v4968_v7 = vpack.c.bf16 %v1876_v5, %v1876_v5  ;;  %v3807_v37 = vpack.c.bf16 %v1549_v35, %v1549_v35  ;;  %v1614_v38 = vld [vmem:[#allocation3 + $0x12] sm:$0xff]  ;;  %v1941_v46 = vld [vmem:[#allocation3 + $0x41] sm:$0xff] }
 0x194   :  { %1541 = vst.msk [vmem:[#allocation4 + $0x4] sm:$0xf] %vm1539_vm14, %v3822_v4  ;;  %v1679_v8 = vld [vmem:[#allocation3 + $0x20] sm:$0xff]  ;;  %v3815_v39 = vpack.c.bf16 %v1614_v38, %v1614_v38  ;;  %v3856_v47 = vpack.c.bf16 %v1941_v46, %v1941_v46  ;;  %v1946_v38 = vld [vmem:[#allocation3 + $0x91] sm:$0xff] }
 0x195   :  { %1779 = vrot.lane.b32.xlu0 %v3809_v1, %s4103_s20  ;;  %v4973_v9 = vpack.c.bf16 %v1679_v8, %v1679_v8  ;;  %1544 = vst.msk [vmem:[#allocation4 + $0x10] sm:$0xf] %vm1539_vm14, %v4968_v7  ;;  %v1811_v48 = vld [vmem:[#allocation3 + $0x42] sm:$0xff] }
 0x196   :  { %1651 = vrot.lane.b32.xlu1 %v3817_v6, %s4099_s18  ;;  %v3841_v49 = vpack.c.bf16 %v1811_v48, %v1811_v48  ;;  %v1550_v52 = vld [vmem:[#allocation3 + $0x21] sm:$0xff] }
 0x197   :  { %1542 = vst.msk [vmem:[#allocation4 + $0x8] sm:$0xf] %vm1539_vm14, %v4973_v9  ;;  %v3808_v58 = vpack.c.bf16 %v1550_v52, %v1550_v52  ;;  %v1615_v59 = vld [vmem:[#allocation3 + $0x22] sm:$0xff] }
 0x198   :  { %v3816_v63 = vpack.c.bf16 %v1615_v59, %v1615_v59 }
 0x199   :  { %1844 = vrot.lane.b32.xlu0 %v3817_v6, %s4105_s2 }
 0x19a   :  { %1908 = vrot.lane.b32.xlu1 %v3824_v0, %s4106_s3 }
 0x19e   :  { %1973 = vrot.lane.b32.xlu1 %v3809_v1, %s4107_s1 }
 0x1a2   :  { %2038 = vrot.lane.b32.xlu1 %v3817_v6, %s4108_s25 }
 0x1bc   :  { %v3987_v11 = vpop.f32.mrf.mxu1 }
 0x1bd   :  { %v1391_v12 = vmul.f32 %v3987_v11, %v4943_v43 }
 0x1be   :  { %v1331_v13 = vpop.f32.mrf.mxu1 }
 0x1bf   :  { %v1414_v14 = vadd.f32 %v4950_v45, %v1391_v12  ;;  %v1389_v16 = vmul.f32 %v4943_v43, %v1331_v13 }
 0x1c0   :  { %v3988_v17 = vpop.f32.mrf.mxu1 }
 0x1c1   :  { %v1430_v18 = vmax.f32 %v1414_v14, 0.0  ;;  %v1412_v19 = vadd.f32 %v4950_v45, %v1389_v16  ;;  %v1392_v20 = vmul.f32 %v3988_v17, %v4943_v43  ;;  %v4087_v16 = vld [vmem:[%s5603_s4] sm:$0xff]  }
 0x1c2   :  { %v1334_v22 = vpop.f32.mrf.mxu1 }
 0x1c3   :  { %1489 = vst.msk [vmem:[#allocation3 + $0x71] sm:$0xff] %vm1440_vm12, %v1430_v18  ;;  %v1428_v15 = vmax.f32 %v1412_v19, 0.0  ;;  %v1415_v21 = vadd.f32 %v4950_v45, %v1392_v20  ;;  %v1390_v23 = vmul.f32 %v4943_v43, %v1334_v22 }
 0x1c5   :  { %1487 = vst.msk [vmem:[#allocation3 + $0x51] sm:$0xff] %vm1440_vm12, %v1428_v15  ;;  %v1431_v24 = vmax.f32 %v1415_v21, 0.0  ;;  %v1413_v25 = vadd.f32 %v4950_v45, %v1390_v23 }
 0x1c7   :  { %1490 = vst.msk [vmem:[#allocation3 + $0x81] sm:$0xff] %vm1440_vm12, %v1431_v24  ;;  %v1429_v26 = vmax.f32 %v1413_v25, 0.0 }
 0x1c9   :  { %1488 = vst.msk [vmem:[#allocation3 + $0x61] sm:$0xff] %vm1440_vm12, %v1429_v26 }
 0x1ca   :  { %v1684_v28 = vld [vmem:[#allocation3 + $0x70] sm:$0xff] }
 0x1cb   :  { %v1555_v10 = vld [vmem:[#allocation3 + $0x71] sm:$0xff]  ;;  %v4995_v29 = vpack.c.bf16 %v1684_v28, %v1684_v28 }
 0x1cc   :  { %v4997_v30 = vpack.c.bf16 %v1555_v10, %v1555_v10  ;;  %v1620_v31 = vld [vmem:[#allocation3 + $0x72] sm:$0xff] }
 0x1cd   :  { %v1877_v32 = vld [vmem:[#allocation3 + $0x50] sm:$0xff]  ;;  %1722 = vrot.lane.b32.xlu0 %v4995_v29, %s4101_s13  ;;  %1547 = vst.msk [vmem:[#allocation4 + $0x1c] sm:$0xf] %vm1539_vm14, %v4995_v29  ;;  %v5005_v34 = vpack.c.bf16 %v1620_v31, %v1620_v31 }
 0x1ce   :  { %1594 = vrot.lane.b32.xlu1 %v4997_v30, %s4097_s30  ;;  %v3849_v33 = vpack.c.bf16 %v1877_v32, %v1877_v32  ;;  %v1942_v40 = vld [vmem:[#allocation3 + $0x51] sm:$0xff]  ;;  %v1685_v50 = vld [vmem:[#allocation3 + $0x80] sm:$0xff] }
 0x1cf   :  { %v3857_v41 = vpack.c.bf16 %v1942_v40, %v1942_v40  ;;  %v1812_v42 = vld [vmem:[#allocation3 + $0x52] sm:$0xff]  ;;  %v5041_v53 = vpack.c.bf16 %v1685_v50, %v1685_v50  ;;  %v1750_v54 = vld [vmem:[#allocation3 + $0x81] sm:$0xff] }
 0x1d0   :  { %1545 = vst.msk [vmem:[#allocation4 + $0x14] sm:$0xf] %vm1539_vm14, %v3849_v33  ;;  %v1683_v36 = vld [vmem:[#allocation3 + $0x60] sm:$0xff]  ;;  %v3842_v44 = vpack.c.bf16 %v1812_v42, %v1812_v42  ;;  %v5049_v57 = vpack.c.bf16 %v1750_v54, %v1750_v54 }
 0x1d1   :  { %1787 = vrot.lane.b32.xlu0 %v4997_v30, %s4103_s20  ;;  %v5012_v27 = vpack.c.bf16 %v1683_v36, %v1683_v36  ;;  %v1748_v20 = vld [vmem:[#allocation3 + $0x61] sm:$0xff]  ;;  %v1881_v36 = vld [vmem:[#allocation3 + $0x90] sm:$0xff] }
 0x1d2   :  { %1659 = vrot.lane.b32.xlu1 %v5005_v34, %s4099_s18  ;;  %v3835_v23 = vpack.c.bf16 %v1748_v20, %v1748_v20  ;;  %v1813_v25 = vld [vmem:[#allocation3 + $0x62] sm:$0xff] }
 0x1d3   :  { %1546 = vst.msk [vmem:[#allocation4 + $0x18] sm:$0xf] %vm1539_vm14, %v5012_v27  ;;  %v3843_v31 = vpack.c.bf16 %v1813_v25, %v1813_v25  ;;  %v2070_v40 = vld [vmem:[#allocation3 + $0xa0] sm:$0xff] }
 0x1d5   :  { %1710 = vrot.lane.b32.xlu0 %v3822_v4, %s4101_s13  ;;  %v4086_v4 = vld [vmem:[%s5603_s4 + $0x8] sm:$0xff]  }
 0x1d6   :  { %1582 = vrot.lane.b32.xlu1 %v3807_v37, %s4097_s30  ;;  %4003 = vmatprep.subr.bf16.mxu1 %v4086_v4 }
 0x1d7   :  { %4004 = vmatpush3.bf16.msra.mxu1 %v4086_v4 }
 0x1d8   :  { %4005 = vmatprep.subr.bf16.mxu1 %v4087_v16 }
 0x1d9   :  { %1775 = vrot.lane.b32.xlu0 %v3807_v37, %s4103_s20  ;;  %v3853_v37 = vpack.c.bf16 %v1881_v36, %v1881_v36 }
 0x1da   :  { %1647 = vrot.lane.b32.xlu1 %v3815_v39, %s4099_s18 }
 0x1db   :  { %4006 = vmatpush3.bf16.msra.mxu1 %v4087_v16 }
 0x1dd   :  { %1840 = vrot.lane.b32.xlu0 %v3815_v39, %s4105_s2  ;;  %v3861_v39 = vpack.c.bf16 %v1946_v38, %v1946_v38 }
 0x1de   :  { %1912 = vrot.lane.b32.xlu1 %v3849_v33, %s4106_s3 }
 0x1e1   :  { %1718 = vrot.lane.b32.xlu0 %v3849_v33, %s4101_s13  ;;  %v1815_v33 = vld [vmem:[#allocation3 + $0x82] sm:$0xff] }
 0x1e2   :  { %1977 = vrot.lane.b32.xlu1 %v3857_v41, %s4107_s1  ;;  %v3845_v35 = vpack.c.bf16 %v1815_v33, %v1815_v33 }
 0x1e5   :  { %1783 = vrot.lane.b32.xlu0 %v3857_v41, %s4103_s20 }
 0x1e6   :  { %1590 = vrot.lane.b32.xlu1 %v3857_v41, %s4097_s30  ;;  %v3870_v41 = vpack.c.bf16 %v2070_v40, %v2070_v40 }
 0x1e8   :  { %2110 = vst.msk [vmem:[#allocation4 + $0x20] sm:$0xf] %vm1539_vm14, %v3870_v41 }
 0x1e9   :  { %1848 = vrot.lane.b32.xlu0 %v3842_v44, %s4105_s2 }
 0x1ea   :  { %2042 = vrot.lane.b32.xlu1 %v3842_v44, %s4108_s25 }
 0x1ed   :  { %1910 = vrot.lane.b32.xlu0 %v4968_v7, %s4106_s3 }
 0x1ee   :  { %1655 = vrot.lane.b32.xlu1 %v3842_v44, %s4099_s18  ;;  %v2118_v44 = vld [vmem:[#allocation3 + $0xa1] sm:$0xff] }
 0x1f1   :  { %1975 = vrot.lane.b32.xlu0 %v3856_v47, %s4107_s1 }
 0x1f2   :  { %1716 = vrot.lane.b32.xlu1 %v4968_v7, %s4101_s13 }
 0x1f5   :  { %1588 = vrot.lane.b32.xlu0 %v3856_v47, %s4097_s30 }
 0x1f6   :  { %1781 = vrot.lane.b32.xlu1 %v3856_v47, %s4103_s20 }
 0x1f9   :  { %2040 = vrot.lane.b32.xlu0 %v3841_v49, %s4108_s25 }
 0x1fa   :  { %1846 = vrot.lane.b32.xlu1 %v3841_v49, %s4105_s2 }
 0x1fd   :  { %1653 = vrot.lane.b32.xlu0 %v3841_v49, %s4099_s18  ;;  %v3878_v49 = vpack.c.bf16 %v2118_v44, %v2118_v44 }
 0x1fe   :  { %1724 = vrot.lane.b32.xlu1 %v5041_v53, %s4101_s13 }
 0x201   :  { %1584 = vrot.lane.b32.xlu0 %v3808_v58, %s4097_s30  ;;  %v3991_v62 = vpop.f32.mrf.mxu1 }
 0x202   :  { %1789 = vrot.lane.b32.xlu1 %v5049_v57, %s4103_s20  ;;  %v1395_v0 = vmul.f32 %v3991_v62, %v4943_v43 }
 0x203   :  { %v1347_v1 = vpop.f32.mrf.mxu1 }
 0x204   :  { %v1587_v60 = vpop.permute.xlu1 %1586  ;;  %v1418_v2 = vadd.f32 %v4950_v45, %v1395_v0  ;;  %v1393_v3 = vmul.f32 %v4943_v43, %v1347_v1 }
 0x205   :  { %1608 = vst.msk [vmem:[#allocation4 + $0xc] sm:$0xf] %vm1604_vm15, %v1587_v60  ;;  %1649 = vrot.lane.b32.xlu0 %v3816_v63, %s4099_s18  ;;  %v3992_v5 = vpop.f32.mrf.mxu1 }
 0x206   :  { %1712 = vrot.lane.b32.xlu1 %v4973_v9, %s4101_s13  ;;  %v1434_v7 = vmax.f32 %v1418_v2, 0.0  ;;  %v1416_v8 = vadd.f32 %v4950_v45, %v1393_v3  ;;  %v1396_v11 = vmul.f32 %v3992_v5, %v4943_v43 }
 0x207   :  { %v1350_v12 = vpop.f32.mrf.mxu1 }
 0x208   :  { %v1652_v6 = vpop.permute.xlu1 %1651  ;;  %1493 = vst.msk [vmem:[#allocation3 + $0xd1] sm:$0xff] %vm1440_vm12, %v1434_v7  ;;  %v1432_v13 = vmax.f32 %v1416_v8, 0.0  ;;  %v1394_v14 = vmul.f32 %v4943_v43, %v1350_v12  ;;  %v1419_v17 = vadd.f32 %v4950_v45, %v1396_v11 }
 0x209   :  { %1673 = vst.msk [vmem:[#allocation4 + $0xc] sm:$0xf] %vm1669_vm0, %v1652_v6  ;;  %1906 = vrot.lane.b32.xlu0 %v4973_v9, %s4106_s3 }
 0x20a   :  { %1777 = vrot.lane.b32.xlu1 %v3808_v58, %s4103_s20  ;;  %1491 = vst.msk [vmem:[#allocation3 + $0xb1] sm:$0xff] %vm1440_vm12, %v1432_v13  ;;  %v1417_v18 = vadd.f32 %v4950_v45, %v1394_v14  ;;  %v1435_v19 = vmax.f32 %v1419_v17, 0.0 }
 0x20c   :  { %v1433_v9 = vmax.f32 %v1417_v18, 0.0  ;;  %1494 = vst.msk [vmem:[#allocation3 + $0xe1] sm:$0xff] %vm1440_vm12, %v1435_v19  ;;  %v5127_v42 = vpop.permute.xlu1 %1908 }
 0x20d   :  { %1971 = vrot.lane.b32.xlu0 %v3808_v58, %s4107_s1 }
 0x20e   :  { %1842 = vrot.lane.b32.xlu1 %v3816_v63, %s4105_s2  ;;  %1492 = vst.msk [vmem:[#allocation3 + $0xc1] sm:$0xff] %vm1440_vm12, %v1433_v9 }
 0x20f   :  { %v2249_v22 = vld [vmem:[#allocation3 + $0xd0] sm:$0xff] }
 0x210   :  { %v5088_v15 = vpack.c.bf16 %v2249_v22, %v2249_v22  ;;  %v5134_v48 = vpop.permute.xlu1 %1973  ;;  %v2121_v51 = vld [vmem:[#allocation3 + $0xd1] sm:$0xff] }
 0x211   :  { %2036 = vrot.lane.b32.xlu0 %v3816_v63, %s4108_s25  ;;  %v2247_v21 = vld [vmem:[#allocation3 + $0xb0] sm:$0xff]  ;;  %v5147_v55 = vpack.c.bf16 %v2121_v51, %v2121_v51 }
 0x212   :  { %1720 = vrot.lane.b32.xlu1 %v5012_v27, %s4101_s13  ;;  %v5090_v24 = vpack.c.bf16 %v2247_v21, %v2247_v21  ;;  %2113 = vst.msk [vmem:[#allocation4 + $0x2c] sm:$0xf] %vm1539_vm14, %v5088_v15  ;;  %v2119_v46 = vld [vmem:[#allocation3 + $0xb1] sm:$0xff] }
 0x213   :  { %v2250_v26 = vld [vmem:[#allocation3 + $0xe0] sm:$0xff]  ;;  %v5138_v50 = vpack.c.bf16 %v2119_v46, %v2119_v46  ;;  %v2185_v0 = vld [vmem:[#allocation3 + $0xd2] sm:$0xff] }
 0x214   :  { %2111 = vst.msk [vmem:[#allocation4 + $0x24] sm:$0xf] %vm1539_vm14, %v5090_v24  ;;  %v5098_v10 = vpack.c.bf16 %v2250_v26, %v2250_v26  ;;  %v5145_v54 = vpop.permute.xlu1 %2038  ;;  %v5168_v8 = vpack.c.bf16 %v2185_v0, %v2185_v0 }
 0x215   :  { %1592 = vrot.lane.b32.xlu0 %v3835_v23, %s4097_s30  ;;  %v2248_v28 = vld [vmem:[#allocation3 + $0xc0] sm:$0xff] }
 0x216   :  { %1785 = vrot.lane.b32.xlu1 %v3835_v23, %s4103_s20  ;;  %v5100_v32 = vpack.c.bf16 %v2248_v28, %v2248_v28  ;;  %2114 = vst.msk [vmem:[#allocation4 + $0x30] sm:$0xf] %vm1539_vm14, %v5098_v10  ;;  %v2120_v52 = vld [vmem:[#allocation3 + $0xc1] sm:$0xff] }
 0x217   :  { %v5149_v56 = vpack.c.bf16 %v2120_v52, %v2120_v52  ;;  %v2184_v1 = vld [vmem:[#allocation3 + $0xc2] sm:$0xff] }
 0x218   :  { %2112 = vst.msk [vmem:[#allocation4 + $0x28] sm:$0xf] %vm1539_vm14, %v5100_v32  ;;  %v5170_v11 = vpack.c.bf16 %v2184_v1, %v2184_v1 }
 0x219   :  { %1657 = vrot.lane.b32.xlu0 %v3843_v31, %s4099_s18 }
 0x21a   :  { %1850 = vrot.lane.b32.xlu1 %v3843_v31, %s4105_s2 }
 0x21d   :  { %1852 = vrot.lane.b32.xlu0 %v5005_v34, %s4105_s2 }
 0x21e   :  { %1854 = vrot.lane.b32.xlu1 %v3845_v35, %s4105_s2 }
 0x221   :  { %1914 = vrot.lane.b32.xlu0 %v5012_v27, %s4106_s3  ;;  %v5125_v27 = vpop.permute.xlu0 %1714 }
 0x222   :  { %1916 = vrot.lane.b32.xlu1 %v4995_v29, %s4106_s3  ;;  %v2011_v29 = vld [vmem:[#allocation3 + $0x92] sm:$0xff] }
 0x225   :  { %1918 = vrot.lane.b32.xlu0 %v5041_v53, %s4106_s3  ;;  %v5132_v47 = vpop.permute.xlu0 %1779 }
 0x226   :  { %1920 = vrot.lane.b32.xlu1 %v3853_v37, %s4106_s3 }
 0x229   :  { %1979 = vrot.lane.b32.xlu0 %v3835_v23, %s4107_s1  ;;  %v5143_v53 = vpop.permute.xlu0 %1844 }
 0x22a   :  { %1981 = vrot.lane.b32.xlu1 %v4997_v30, %s4107_s1  ;;  %v3869_v30 = vpack.c.bf16 %v2011_v29, %v2011_v29 }
 0x22d   :  { %1983 = vrot.lane.b32.xlu0 %v5049_v57, %s4107_s1  ;;  %v2183_v57 = vld [vmem:[#allocation3 + $0xb2] sm:$0xff] }
 0x22e   :  { %1985 = vrot.lane.b32.xlu1 %v3861_v39, %s4107_s1  ;;  %v5157_v60 = vpack.c.bf16 %v2183_v57, %v2183_v57 }
 0x231   :  { %2044 = vrot.lane.b32.xlu0 %v3843_v31, %s4108_s25 }
 0x232   :  { %2046 = vrot.lane.b32.xlu1 %v5005_v34, %s4108_s25  ;;  %v2182_v34 = vld [vmem:[#allocation3 + $0xa2] sm:$0xff] }
 0x233   :  { %v3886_v58 = vpack.c.bf16 %v2182_v34, %v2182_v34 }
 0x235   :  { %2048 = vrot.lane.b32.xlu0 %v3845_v35, %s4108_s25  ;;  %v2314_v35 = vld [vmem:[#allocation3 + $0xe1] sm:$0xff] }
 0x236   :  { %2050 = vrot.lane.b32.xlu1 %v3869_v30, %s4108_s25  ;;  %v3905_v39 = vpack.c.bf16 %v2314_v35, %v2314_v35  ;;  %v2378_v30 = vld [vmem:[#allocation3 + $0xe2] sm:$0xff] }
 0x239   :  { %2150 = vrot.lane.b32.xlu0 %v3878_v49, %s4097_s30  ;;  %v5223_v49 = vpack.c.bf16 %v2378_v30, %v2378_v30  ;;  %v2511_v30 = vld [vmem:[#allocation3 + $0x131] sm:$0xff] }
 0x23a   :  { %2152 = vrot.lane.b32.xlu1 %v5138_v50, %s4097_s30 }
 0x23d   :  { %2154 = vrot.lane.b32.xlu0 %v5149_v56, %s4097_s30  ;;  %v3995_v59 = vpop.f32.mrf.mxu1 }
 0x23e   :  { %2156 = vrot.lane.b32.xlu1 %v5147_v55, %s4097_s30  ;;  %v1399_v63 = vmul.f32 %v3995_v59, %v4943_v43 }
 0x23f   :  { %v5155_v61 = vpop.permute.xlu0 %1722  ;;  %v1363_v2 = vpop.f32.mrf.mxu1 }
 0x240   :  { %v1595_v62 = vpop.permute.xlu1 %1594  ;;  %v1422_v3 = vadd.f32 %v4950_v45, %v1399_v63  ;;  %v1397_v4 = vmul.f32 %v4943_v43, %v1363_v2 }
 0x241   :  { %1612 = vst.msk [vmem:[#allocation4 + $0x1c] sm:$0xf] %vm1604_vm15, %v1595_v62  ;;  %2214 = vrot.lane.b32.xlu0 %v3886_v58, %s4099_s18  ;;  %v3996_v5 = vpop.f32.mrf.mxu1 }
 0x242   :  { %2216 = vrot.lane.b32.xlu1 %v5157_v60, %s4099_s18  ;;  %v1438_v12 = vmax.f32 %v1422_v3, 0.0  ;;  %v1420_v13 = vadd.f32 %v4950_v45, %v1397_v4  ;;  %v1400_v14 = vmul.f32 %v3996_v5, %v4943_v43 }
 0x243   :  { %v5166_v6 = vpop.permute.xlu0 %1787  ;;  %v1366_v16 = vpop.f32.mrf.mxu1 }
 0x244   :  { %v1660_v7 = vpop.permute.xlu1 %1659  ;;  %1497 = vst.msk [vmem:[#allocation3 + $0x111] sm:$0xff] %vm1440_vm12, %v1438_v12  ;;  %v1436_v17 = vmax.f32 %v1420_v13, 0.0  ;;  %v1398_v18 = vmul.f32 %v4943_v43, %v1366_v16  ;;  %v1423_v19 = vadd.f32 %v4950_v45, %v1400_v14 }
 0x245   :  { %1677 = vst.msk [vmem:[#allocation4 + $0x1c] sm:$0xf] %vm1669_vm0, %v1660_v7  ;;  %2218 = vrot.lane.b32.xlu0 %v5170_v11, %s4099_s18 }
 0x246   :  { %2220 = vrot.lane.b32.xlu1 %v5168_v8, %s4099_s18  ;;  %1495 = vst.msk [vmem:[#allocation3 + $0xf1] sm:$0xff] %vm1440_vm12, %v1436_v17  ;;  %v1421_v22 = vadd.f32 %v4950_v45, %v1398_v18  ;;  %v1439_v21 = vmax.f32 %v1423_v19, 0.0 }
 0x247   :  { %v1711_v9 = vpop.permute.xlu0 %1710 }
 0x248   :  { %v1583_v20 = vpop.permute.xlu1 %1582  ;;  %1735 = vst.msk [vmem:[#allocation4] sm:$0xf] %vm1734_vm2, %v1711_v9  ;;  %v1437_v43 = vmax.f32 %v1421_v22, 0.0 }
 0x249   :  { %1606 = vst.msk [vmem:[#allocation4 + $0x4] sm:$0xf] %vm1604_vm15, %v1583_v20  ;;  %2279 = vrot.lane.b32.xlu0 %v5090_v24, %s4101_s13 }
 0x24a   :  { %2281 = vrot.lane.b32.xlu1 %v5100_v32, %s4101_s13  ;;  %1498 = vst.msk [vmem:[#allocation3 + $0x121] sm:$0xff] %vm1440_vm12, %v1439_v21  ;;  %1496 = vst.msk [vmem:[#allocation3 + $0x101] sm:$0xff] %vm1440_vm12, %v1437_v43 }
 0x24b   :  { %v1776_v23 = vpop.permute.xlu0 %1775  ;;  %v2253_v45 = vld [vmem:[#allocation3 + $0x110] sm:$0xff] }
 0x24c   :  { %v1648_v25 = vpop.permute.xlu1 %1647  ;;  %1800 = vst.msk [vmem:[#allocation4] sm:$0xf] %vm1799_vm3, %v1776_v23  ;;  %v5198_v24 = vpack.c.bf16 %v2253_v45, %v2253_v45  ;;  %v2125_v3 = vld [vmem:[#allocation3 + $0x111] sm:$0xff] }
 0x24d   :  { %1671 = vst.msk [vmem:[#allocation4 + $0x4] sm:$0xf] %vm1669_vm0, %v1648_v25  ;;  %2283 = vrot.lane.b32.xlu0 %v5088_v15, %s4101_s13  ;;  %v2443_v26 = vld [vmem:[#allocation3 + $0xf0] sm:$0xff] }
 0x24e   :  { %2285 = vrot.lane.b32.xlu1 %v5098_v10, %s4101_s13  ;;  %v5200_v33 = vpack.c.bf16 %v2443_v26, %v2443_v26  ;;  %2117 = vst.msk [vmem:[#allocation4 + $0x3c] sm:$0xf] %vm1539_vm14, %v5198_v24  ;;  %v2571_v63 = vld [vmem:[#allocation3 + $0xf2] sm:$0xff] }
 0x24f   :  { %v1841_v28 = vpop.permute.xlu0 %1840  ;;  %v5268_v2 = vpack.c.bf16 %v2571_v63, %v2571_v63 }
 0x250   :  { %v1913_v31 = vpop.permute.xlu1 %1912  ;;  %1865 = vst.msk [vmem:[#allocation4] sm:$0xf] %vm1864_vm4, %v1841_v28 }
 0x251   :  { %2343 = vrot.lane.b32.xlu0 %v5138_v50, %s4103_s20  ;;  %2115 = vst.msk [vmem:[#allocation4 + $0x34] sm:$0xf] %vm1539_vm14, %v5200_v33  ;;  %v2252_v36 = vld [vmem:[#allocation3 + $0x100] sm:$0xff] }
 0x252   :  { %2345 = vrot.lane.b32.xlu1 %v5149_v56, %s4103_s20  ;;  %v5211_v40 = vpack.c.bf16 %v2252_v36, %v2252_v36  ;;  %v2124_v4 = vld [vmem:[#allocation3 + $0x101] sm:$0xff]  ;;  %v2447_v36 = vld [vmem:[#allocation3 + $0x130] sm:$0xff] }
 0x253   :  { %v1719_v37 = vpop.permute.xlu0 %1718  ;;  %v2188_v12 = vld [vmem:[#allocation3 + $0x102] sm:$0xff] }
 0x254   :  { %v1978_v38 = vpop.permute.xlu1 %1977  ;;  %2116 = vst.msk [vmem:[#allocation4 + $0x38] sm:$0xf] %vm1539_vm14, %v5211_v40  ;;  %v5309_v17 = vpack.c.bf16 %v2188_v12, %v2188_v12  ;;  %v2382_v28 = vld [vmem:[#allocation3 + $0x122] sm:$0xff] }
 0x255   :  { %2347 = vrot.lane.b32.xlu0 %v5147_v55, %s4103_s20  ;;  %v3917_v35 = vpack.c.bf16 %v2382_v28, %v2382_v28 }
 0x256   :  { %2349 = vrot.lane.b32.xlu1 %v3905_v39, %s4103_s20 }
 0x257   :  { %v1784_v41 = vpop.permute.xlu0 %1783 }
 0x258   :  { %v1591_v29 = vpop.permute.xlu1 %1590 }
 0x259   :  { %1610 = vst.msk [vmem:[#allocation4 + $0x14] sm:$0xf] %vm1604_vm15, %v1591_v29  ;;  %2407 = vrot.lane.b32.xlu0 %v5157_v60, %s4105_s2 }
 0x25a   :  { %2409 = vrot.lane.b32.xlu1 %v5170_v11, %s4105_s2 }
 0x25b   :  { %v1849_v44 = vpop.permute.xlu0 %1848 }
 0x25c   :  { %v2043_v46 = vpop.permute.xlu1 %2042 }
 0x25d   :  { %2411 = vrot.lane.b32.xlu0 %v5168_v8, %s4105_s2 }
 0x25e   :  { %2413 = vrot.lane.b32.xlu1 %v5223_v49, %s4105_s2 }
 0x25f   :  { %v1911_v51 = vpop.permute.xlu0 %1910 }
 0x260   :  { %v1656_v50 = vpop.permute.xlu1 %1655 }
 0x261   :  { %1675 = vst.msk [vmem:[#allocation4 + $0x14] sm:$0xf] %vm1669_vm0, %v1656_v50  ;;  %2472 = vrot.lane.b32.xlu0 %v5100_v32, %s4106_s3 }
 0x262   :  { %2474 = vrot.lane.b32.xlu1 %v5088_v15, %s4106_s3  ;;  %v2507_v15 = vld [vmem:[#allocation3 + $0xf1] sm:$0xff] }
 0x263   :  { %v1976_v52 = vpop.permute.xlu0 %1975  ;;  %v5245_v62 = vpack.c.bf16 %v2507_v15, %v2507_v15 }
 0x264   :  { %v1717_v34 = vpop.permute.xlu1 %1716 }
 0x265   :  { %1738 = vst.msk [vmem:[#allocation4 + $0xc] sm:$0xf] %vm1734_vm2, %v1717_v34  ;;  %2476 = vrot.lane.b32.xlu0 %v5098_v10, %s4106_s3 }
 0x266   :  { %2478 = vrot.lane.b32.xlu1 %v5200_v33, %s4106_s3 }
 0x267   :  { %v1589_v58 = vpop.permute.xlu0 %1588 }
 0x268   :  { %v1782_v57 = vpop.permute.xlu1 %1781  ;;  %1609 = vst.msk [vmem:[#allocation4 + $0x10] sm:$0xf] %vm1604_vm15, %v1589_v58 }
 0x269   :  { %1803 = vst.msk [vmem:[#allocation4 + $0xc] sm:$0xf] %vm1799_vm3, %v1782_v57  ;;  %2536 = vrot.lane.b32.xlu0 %v5149_v56, %s4107_s1 }
 0x26a   :  { %2538 = vrot.lane.b32.xlu1 %v5147_v55, %s4107_s1 }
 0x26b   :  { %v2041_v59 = vpop.permute.xlu0 %2040 }
 0x26c   :  { %v1847_v32 = vpop.permute.xlu1 %1846 }
 0x26d   :  { %1868 = vst.msk [vmem:[#allocation4 + $0xc] sm:$0xf] %vm1864_vm4, %v1847_v32  ;;  %2540 = vrot.lane.b32.xlu0 %v3905_v39, %s4107_s1 }
 0x26e   :  { %1934 = vst.msk [vmem:[#allocation4 + $0xc] sm:$0xf] %vm1930_vm5, %v1913_v31  ;;  %2542 = vrot.lane.b32.xlu1 %v5245_v62, %s4107_s1 }
 0x26f   :  { %1999 = vst.msk [vmem:[#allocation4 + $0xc] sm:$0xf] %vm1995_vm6, %v1978_v38  ;;  %v1654_v55 = vpop.permute.xlu0 %1653 }
 0x270   :  { %2064 = vst.msk [vmem:[#allocation4 + $0xc] sm:$0xf] %vm2060_vm7, %v2043_v46  ;;  %v1725_v10 = vpop.permute.xlu1 %1724 }
 0x271   :  { %1742 = vst.msk [vmem:[#allocation4 + $0x1c] sm:$0xf] %vm1734_vm2, %v1725_v10  ;;  %2600 = vrot.lane.b32.xlu0 %v5170_v11, %s4108_s25  ;;  %v5284_v11 = vpack.c.bf16 %v2124_v4, %v2124_v4 }
 0x272   :  { %1674 = vst.msk [vmem:[#allocation4 + $0x10] sm:$0xf] %vm1669_vm0, %v1654_v55  ;;  %2602 = vrot.lane.b32.xlu1 %v5168_v8, %s4108_s25  ;;  %v5282_v8 = vpack.c.bf16 %v2125_v3, %v2125_v3 }
 0x273   :  { %1739 = vst.msk [vmem:[#allocation4 + $0x10] sm:$0xf] %vm1734_vm2, %v1719_v37  ;;  %v1585_v60 = vpop.permute.xlu0 %1584 }
 0x274   :  { %1804 = vst.msk [vmem:[#allocation4 + $0x10] sm:$0xf] %vm1799_vm3, %v1784_v41  ;;  %v1790_v56 = vpop.permute.xlu1 %1789 }
 0x275   :  { %1869 = vst.msk [vmem:[#allocation4 + $0x10] sm:$0xf] %vm1864_vm4, %v1849_v44  ;;  %2158 = vrot.lane.b32.xlu0 %v3905_v39, %s4097_s30  ;;  %v3925_v39 = vpack.c.bf16 %v2447_v36, %v2447_v36 }
 0x276   :  { %1807 = vst.msk [vmem:[#allocation4 + $0x1c] sm:$0xf] %vm1799_vm3, %v1790_v56  ;;  %2160 = vrot.lane.b32.xlu1 %v5245_v62, %s4097_s30 }
 0x277   :  { %1607 = vst.msk [vmem:[#allocation4 + $0x8] sm:$0xf] %vm1604_vm15, %v1585_v60  ;;  %v1650_v1 = vpop.permute.xlu0 %1649 }
 0x278   :  { %v1713_v0 = vpop.permute.xlu1 %1712  ;;  %1672 = vst.msk [vmem:[#allocation4 + $0x8] sm:$0xf] %vm1669_vm0, %v1650_v1 }
 0x279   :  { %1736 = vst.msk [vmem:[#allocation4 + $0x4] sm:$0xf] %vm1734_vm2, %v1713_v0  ;;  %1737 = vst.msk [vmem:[#allocation4 + $0x8] sm:$0xf] %vm1734_vm2, %v5125_v27  ;;  %2604 = vrot.lane.b32.xlu0 %v5223_v49, %s4108_s25 }
 0x27a   :  { %2606 = vrot.lane.b32.xlu1 %v5268_v2, %s4108_s25  ;;  %1802 = vst.msk [vmem:[#allocation4 + $0x8] sm:$0xf] %vm1799_vm3, %v5132_v47 }
 0x27b   :  { %1867 = vst.msk [vmem:[#allocation4 + $0x8] sm:$0xf] %vm1864_vm4, %v5143_v53  ;;  %v1907_v7 = vpop.permute.xlu0 %1906  ;;  %v2189_v53 = vld [vmem:[#allocation3 + $0x112] sm:$0xff] }
 0x27c   :  { %v1778_v5 = vpop.permute.xlu1 %1777  ;;  %1933 = vst.msk [vmem:[#allocation4 + $0x8] sm:$0xf] %vm1930_vm5, %v1911_v51  ;;  %1931 = vst.msk [vmem:[#allocation4] sm:$0xf] %vm1930_vm5, %v1907_v7  ;;  %v5307_v16 = vpack.c.bf16 %v2189_v53, %v2189_v53  ;;  %v2575_v51 = vld [vmem:[#allocation3 + $0x132] sm:$0xff] }
 0x27d   :  { %1801 = vst.msk [vmem:[#allocation4 + $0x4] sm:$0xf] %vm1799_vm3, %v1778_v5  ;;  %2162 = vrot.lane.b32.xlu0 %v5284_v11, %s4097_s30  ;;  %v3941_v58 = vpack.c.bf16 %v2575_v51, %v2575_v51 }
 0x27e   :  { %1998 = vst.msk [vmem:[#allocation4 + $0x8] sm:$0xf] %vm1995_vm6, %v1976_v52  ;;  %2164 = vrot.lane.b32.xlu1 %v5282_v8, %s4097_s30 }
 0x27f   :  { %2063 = vst.msk [vmem:[#allocation4 + $0x8] sm:$0xf] %vm2060_vm7, %v2041_v59  ;;  %v1972_v47 = vpop.permute.xlu0 %1971 }
 0x280   :  { %v1843_v27 = vpop.permute.xlu1 %1842  ;;  %1996 = vst.msk [vmem:[#allocation4] sm:$0xf] %vm1995_vm6, %v1972_v47 }
 0x281   :  { %1866 = vst.msk [vmem:[#allocation4 + $0x4] sm:$0xf] %vm1864_vm4, %v1843_v27  ;;  %2222 = vrot.lane.b32.xlu0 %v5223_v49, %s4099_s18 }
 0x282   :  { %1932 = vst.msk [vmem:[#allocation4 + $0x4] sm:$0xf] %vm1930_vm5, %v5127_v42  ;;  %2224 = vrot.lane.b32.xlu1 %v5268_v2, %s4099_s18 }
 0x283   :  { %1997 = vst.msk [vmem:[#allocation4 + $0x4] sm:$0xf] %vm1995_vm6, %v5134_v48  ;;  %v2037_v14 = vpop.permute.xlu0 %2036 }
 0x284   :  { %2062 = vst.msk [vmem:[#allocation4 + $0x4] sm:$0xf] %vm2060_vm7, %v5145_v54  ;;  %v1721_v13 = vpop.permute.xlu1 %1720  ;;  %2061 = vst.msk [vmem:[#allocation4] sm:$0xf] %vm2060_vm7, %v2037_v14  ;;  %v2254_v54 = vld [vmem:[#allocation3 + $0x120] sm:$0xff] }
 0x285   :  { %1740 = vst.msk [vmem:[#allocation4 + $0x14] sm:$0xf] %vm1734_vm2, %v1721_v13  ;;  %2226 = vrot.lane.b32.xlu0 %v5309_v17, %s4099_s18  ;;  %v3901_v9 = vpack.c.bf16 %v2254_v54, %v2254_v54 }
 0x286   :  { %2228 = vrot.lane.b32.xlu1 %v5307_v16, %s4099_s18  ;;  %v4089_v22 = vld [vmem:[#allocation4 + $0x8] sm:$0xff]  }
 0x287   :  { %v1593_v48 = vpop.permute.xlu0 %1592 }
 0x288   :  { %v1786_v42 = vpop.permute.xlu1 %1785  ;;  %1611 = vst.msk [vmem:[#allocation4 + $0x18] sm:$0xf] %vm1604_vm15, %v1593_v48 }
 0x289   :  { %1805 = vst.msk [vmem:[#allocation4 + $0x14] sm:$0xf] %vm1799_vm3, %v1786_v42  ;;  %2287 = vrot.lane.b32.xlu0 %v5200_v33, %s4101_s13 }
 0x28a   :  { %2289 = vrot.lane.b32.xlu1 %v5211_v40, %s4101_s13 }
 0x28b   :  { %v1658_v19 = vpop.permute.xlu0 %1657  ;;  %v4088_v20 = vld [vmem:[#allocation4] sm:$0xff]  }
 0x28c   :  { %v1851_v18 = vpop.permute.xlu1 %1850  ;;  %1676 = vst.msk [vmem:[#allocation4 + $0x18] sm:$0xf] %vm1669_vm0, %v1658_v19  ;;  %4007 = vmatprep.mubr.msk.bf16.mxu1 %vm2724_vm8, %v4088_v20 }
 0x28d   :  { %1870 = vst.msk [vmem:[#allocation4 + $0x14] sm:$0xf] %vm1864_vm4, %v1851_v18  ;;  %2291 = vrot.lane.b32.xlu0 %v5198_v24, %s4101_s13  ;;  %4008 = vmatmul.mubr.msk.bf16.vlgmr.msra.gmra.mxu1 %vm2724_vm8, %v4089_v22 }
 0x28e   :  { %1741 = vst.msk [vmem:[#allocation4 + $0x18] sm:$0xf] %vm1734_vm2, %v5155_v61  ;;  %2293 = vrot.lane.b32.xlu1 %v3901_v9, %s4101_s13  ;;  %v2318_v61 = vld [vmem:[#allocation3 + $0x121] sm:$0xff] }
 0x28f   :  { %1806 = vst.msk [vmem:[#allocation4 + $0x18] sm:$0xf] %vm1799_vm3, %v5166_v6  ;;  %v1853_v43 = vpop.permute.xlu0 %1852  ;;  %v3909_v6 = vpack.c.bf16 %v2318_v61, %v2318_v61 }
 0x290   :  { %v1855_v21 = vpop.permute.xlu1 %1854  ;;  %1871 = vst.msk [vmem:[#allocation4 + $0x18] sm:$0xf] %vm1864_vm4, %v1853_v43 }
 0x291   :  { %1872 = vst.msk [vmem:[#allocation4 + $0x1c] sm:$0xf] %vm1864_vm4, %v1855_v21  ;;  %2351 = vrot.lane.b32.xlu0 %v5245_v62, %s4103_s20 }
 0x292   :  { %2353 = vrot.lane.b32.xlu1 %v5284_v11, %s4103_s20 }
 0x293   :  { %v1915_v25 = vpop.permute.xlu0 %1914 }
 0x294   :  { %v1917_v23 = vpop.permute.xlu1 %1916  ;;  %1935 = vst.msk [vmem:[#allocation4 + $0x10] sm:$0xf] %vm1930_vm5, %v1915_v25 }
 0x295   :  { %1936 = vst.msk [vmem:[#allocation4 + $0x14] sm:$0xf] %vm1930_vm5, %v1917_v23  ;;  %2355 = vrot.lane.b32.xlu0 %v5282_v8, %s4103_s20 }
 0x296   :  { %2357 = vrot.lane.b32.xlu1 %v3909_v6, %s4103_s20 }
 0x297   :  { %v1919_v26 = vpop.permute.xlu0 %1918 }
 0x298   :  { %v1921_v45 = vpop.permute.xlu1 %1920  ;;  %1937 = vst.msk [vmem:[#allocation4 + $0x18] sm:$0xf] %vm1930_vm5, %v1919_v26 }
 0x299   :  { %1938 = vst.msk [vmem:[#allocation4 + $0x1c] sm:$0xf] %vm1930_vm5, %v1921_v45  ;;  %2415 = vrot.lane.b32.xlu0 %v5268_v2, %s4105_s2 }
 0x29a   :  { %2417 = vrot.lane.b32.xlu1 %v5309_v17, %s4105_s2 }
 0x29b   :  { %v1980_v33 = vpop.permute.xlu0 %1979 }
 0x29c   :  { %v1982_v31 = vpop.permute.xlu1 %1981  ;;  %2000 = vst.msk [vmem:[#allocation4 + $0x10] sm:$0xf] %vm1995_vm6, %v1980_v33 }
 0x29d   :  { %2001 = vst.msk [vmem:[#allocation4 + $0x14] sm:$0xf] %vm1995_vm6, %v1982_v31  ;;  %2419 = vrot.lane.b32.xlu0 %v5307_v16, %s4105_s2 }
 0x29e   :  { %2421 = vrot.lane.b32.xlu1 %v3917_v35, %s4105_s2 }
 0x29f   :  { %v1984_v38 = vpop.permute.xlu0 %1983 }
 0x2a0   :  { %v1986_v37 = vpop.permute.xlu1 %1985  ;;  %2002 = vst.msk [vmem:[#allocation4 + $0x18] sm:$0xf] %vm1995_vm6, %v1984_v38 }
 0x2a1   :  { %2003 = vst.msk [vmem:[#allocation4 + $0x1c] sm:$0xf] %vm1995_vm6, %v1986_v37  ;;  %2480 = vrot.lane.b32.xlu0 %v5211_v40, %s4106_s3 }
 0x2a2   :  { %2482 = vrot.lane.b32.xlu1 %v5198_v24, %s4106_s3  ;;  %v3933_v24 = vpack.c.bf16 %v2511_v30, %v2511_v30 }
 0x2a3   :  { %v2045_v29 = vpop.permute.xlu0 %2044 }
 0x2a4   :  { %v2047_v41 = vpop.permute.xlu1 %2046  ;;  %2065 = vst.msk [vmem:[#allocation4 + $0x10] sm:$0xf] %vm2060_vm7, %v2045_v29 }
 0x2a5   :  { %2066 = vst.msk [vmem:[#allocation4 + $0x14] sm:$0xf] %vm2060_vm7, %v2047_v41  ;;  %2484 = vrot.lane.b32.xlu0 %v3901_v9, %s4106_s3 }
 0x2a6   :  { %2486 = vrot.lane.b32.xlu1 %v3925_v39, %s4106_s3 }
 0x2a7   :  { %v2049_v46 = vpop.permute.xlu0 %2048 }
 0x2a8   :  { %v2051_v44 = vpop.permute.xlu1 %2050  ;;  %2067 = vst.msk [vmem:[#allocation4 + $0x18] sm:$0xf] %vm2060_vm7, %v2049_v46 }
 0x2a9   :  { %2068 = vst.msk [vmem:[#allocation4 + $0x1c] sm:$0xf] %vm2060_vm7, %v2051_v44  ;;  %2544 = vrot.lane.b32.xlu0 %v5284_v11, %s4107_s1 }
 0x2aa   :  { %2546 = vrot.lane.b32.xlu1 %v5282_v8, %s4107_s1 }
 0x2ab   :  { %v2151_v49 = vpop.permute.xlu0 %2150 }
 0x2ac   :  { %v2153_v40 = vpop.permute.xlu1 %2152  ;;  %v4090_v50 = vld [vmem:[#allocation4 + $0x10] sm:$0xff]   ;;  %2174 = vst.msk [vmem:[#allocation4 + $0x20] sm:$0xf] %vm1604_vm15, %v2151_v49 }
 0x2ad   :  { %2175 = vst.msk [vmem:[#allocation4 + $0x24] sm:$0xf] %vm1604_vm15, %v2153_v40  ;;  %2548 = vrot.lane.b32.xlu0 %v3909_v6, %s4107_s1  ;;  %4011 = vmatprep.mubr.msk.bf16.mxu1 %vm2724_vm8, %v4090_v50 }
 0x2ae   :  { %2550 = vrot.lane.b32.xlu1 %v3933_v24, %s4107_s1 }
 0x2af   :  { %v2155_v34 = vpop.permute.xlu0 %2154 }
 0x2b0   :  { %v2157_v52 = vpop.permute.xlu1 %2156  ;;  %v4091_v57 = vld [vmem:[#allocation4 + $0x18] sm:$0xff]   ;;  %2176 = vst.msk [vmem:[#allocation4 + $0x28] sm:$0xf] %vm1604_vm15, %v2155_v34 }
 0x2b1   :  { %2177 = vst.msk [vmem:[#allocation4 + $0x2c] sm:$0xf] %vm1604_vm15, %v2157_v52  ;;  %2608 = vrot.lane.b32.xlu0 %v5309_v17, %s4108_s25  ;;  %4012 = vmatmul.mubr.msk.bf16.gmra.mxu1 %vm2724_vm8, %v4091_v57 }
 0x2b2   :  { %2610 = vrot.lane.b32.xlu1 %v5307_v16, %s4108_s25 }
 0x2b3   :  { %v2215_v32 = vpop.permute.xlu0 %2214 }
 0x2b4   :  { %v2217_v15 = vpop.permute.xlu1 %2216  ;;  %2238 = vst.msk [vmem:[#allocation4 + $0x20] sm:$0xf] %vm1669_vm0, %v2215_v32 }
 0x2b5   :  { %2239 = vst.msk [vmem:[#allocation4 + $0x24] sm:$0xf] %vm1669_vm0, %v2217_v15  ;;  %2612 = vrot.lane.b32.xlu0 %v3917_v35, %s4108_s25  ;;  %v4027_v15 = vpop.f32.mrf.mxu0 }
 0x2b6   :  { %2614 = vrot.lane.b32.xlu1 %v3941_v58, %s4108_s25 }
 0x2b7   :  { %v2219_v62 = vpop.permute.xlu0 %2218  ;;  %v3015_v32 = vpop.f32.mrf.mxu0 }
 0x2b8   :  { %v2221_v59 = vpop.permute.xlu1 %2220  ;;  %2240 = vst.msk [vmem:[#allocation4 + $0x28] sm:$0xf] %vm1669_vm0, %v2219_v62 }
 0x2b9   :  { %2241 = vst.msk [vmem:[#allocation4 + $0x2c] sm:$0xf] %vm1669_vm0, %v2221_v59  ;;  %v5453_v59 = vld [vmem:[%s5604_s8] ss:$0 sm:$0xff]  ;;  %v4028_v62 = vpop.f32.mrf.mxu0 }
 0x2bb   :  { %v2280_v55 = vpop.permute.xlu0 %2279 }
 0x2bc   :  { %v2282_v10 = vpop.permute.xlu1 %2281  ;;  %2303 = vst.msk [vmem:[#allocation4 + $0x20] sm:$0xf] %vm1734_vm2, %v2280_v55  ;;  %v3087_v55 = vmul.f32 %v4027_v15, %v5453_v59 }
 0x2bd   :  { %2304 = vst.msk [vmem:[#allocation4 + $0x24] sm:$0xf] %vm1734_vm2, %v2282_v10  ;;  %v5458_v10 = vld [vmem:[%s5605_s5] ss:$0 sm:$0xff] }
 0x2bf   :  { %v2284_v60 = vpop.permute.xlu0 %2283 }
 0x2c0   :  { %v2286_v56 = vpop.permute.xlu1 %2285  ;;  %2305 = vst.msk [vmem:[#allocation4 + $0x28] sm:$0xf] %vm1734_vm2, %v2284_v60  ;;  %v3085_v60 = vmul.f32 %v5453_v59, %v3015_v32 }
 0x2c1   :  { %2306 = vst.msk [vmem:[#allocation4 + $0x2c] sm:$0xf] %vm1734_vm2, %v2286_v56  ;;  %v5464_v56 = vld [vmem:[%s5606_s9] ss:$0 sm:$0xff] }
 0x2c3   :  { %v2344_v0 = vpop.permute.xlu0 %2343 }
 0x2c4   :  { %v2346_v63 = vpop.permute.xlu1 %2345  ;;  %2367 = vst.msk [vmem:[#allocation4 + $0x20] sm:$0xf] %vm1799_vm3, %v2344_v0  ;;  %v5470_v0 = vld [vmem:[%s5607_s6] ss:$0 sm:$0xff] }
 0x2c5   :  { %2368 = vst.msk [vmem:[#allocation4 + $0x24] sm:$0xf] %vm1799_vm3, %v2346_v63 }
 0x2c7   :  { %v2348_v2 = vpop.permute.xlu0 %2347 }
 0x2c8   :  { %v2350_v1 = vpop.permute.xlu1 %2349  ;;  %2369 = vst.msk [vmem:[#allocation4 + $0x28] sm:$0xf] %vm1799_vm3, %v2348_v2  ;;  %v3088_v2 = vmul.f32 %v4028_v62, %v5453_v59 }
 0x2c9   :  { %2370 = vst.msk [vmem:[#allocation4 + $0x2c] sm:$0xf] %vm1799_vm3, %v2350_v1 }
 0x2cb   :  { %v2408_v4 = vpop.permute.xlu0 %2407 }
 0x2cc   :  { %v2410_v3 = vpop.permute.xlu1 %2409  ;;  %2431 = vst.msk [vmem:[#allocation4 + $0x20] sm:$0xf] %vm1864_vm4, %v2408_v4 }
 0x2cd   :  { %2432 = vst.msk [vmem:[#allocation4 + $0x24] sm:$0xf] %vm1864_vm4, %v2410_v3  ;;  %v3018_v3 = vpop.f32.mrf.mxu0 }
 0x2cf   :  { %v2412_v7 = vpop.permute.xlu0 %2411 }
 0x2d0   :  { %v2414_v5 = vpop.permute.xlu1 %2413  ;;  %2433 = vst.msk [vmem:[#allocation4 + $0x28] sm:$0xf] %vm1864_vm4, %v2412_v7 }
 0x2d1   :  { %2434 = vst.msk [vmem:[#allocation4 + $0x2c] sm:$0xf] %vm1864_vm4, %v2414_v5  ;;  %v3110_v5 = vadd.f32 %v5464_v56, %v3087_v55 }
 0x2d3   :  { %v2473_v11 = vpop.permute.xlu0 %2472 }
 0x2d4   :  { %v2475_v8 = vpop.permute.xlu1 %2474  ;;  %2496 = vst.msk [vmem:[#allocation4 + $0x20] sm:$0xf] %vm1930_vm5, %v2473_v11  ;;  %v3108_v11 = vadd.f32 %v5464_v56, %v3085_v60 }
 0x2d5   :  { %2497 = vst.msk [vmem:[#allocation4 + $0x24] sm:$0xf] %vm1930_vm5, %v2475_v8 }
 0x2d7   :  { %v2477_v47 = vpop.permute.xlu0 %2476 }
 0x2d8   :  { %v2479_v27 = vpop.permute.xlu1 %2478  ;;  %2498 = vst.msk [vmem:[#allocation4 + $0x28] sm:$0xf] %vm1930_vm5, %v2477_v47  ;;  %v3086_v47 = vmul.f32 %v5453_v59, %v3018_v3 }
 0x2d9   :  { %2499 = vst.msk [vmem:[#allocation4 + $0x2c] sm:$0xf] %vm1930_vm5, %v2479_v27 }
 0x2db   :  { %v2537_v12 = vpop.permute.xlu0 %2536 }
 0x2dc   :  { %v2539_v53 = vpop.permute.xlu1 %2538  ;;  %2560 = vst.msk [vmem:[#allocation4 + $0x20] sm:$0xf] %vm1995_vm6, %v2537_v12 }
 0x2dd   :  { %2561 = vst.msk [vmem:[#allocation4 + $0x24] sm:$0xf] %vm1995_vm6, %v2539_v53 }
 0x2df   :  { %v2541_v14 = vpop.permute.xlu0 %2540 }
 0x2e0   :  { %v2543_v13 = vpop.permute.xlu1 %2542  ;;  %2562 = vst.msk [vmem:[#allocation4 + $0x28] sm:$0xf] %vm1995_vm6, %v2541_v14  ;;  %v3111_v14 = vadd.f32 %v5464_v56, %v3088_v2 }
 0x2e1   :  { %2563 = vst.msk [vmem:[#allocation4 + $0x2c] sm:$0xf] %vm1995_vm6, %v2543_v13 }
 0x2e3   :  { %v2601_v17 = vpop.permute.xlu0 %2600 }
 0x2e4   :  { %v2603_v16 = vpop.permute.xlu1 %2602  ;;  %2624 = vst.msk [vmem:[#allocation4 + $0x20] sm:$0xf] %vm2060_vm7, %v2601_v17 }
 0x2e5   :  { %2625 = vst.msk [vmem:[#allocation4 + $0x24] sm:$0xf] %vm2060_vm7, %v2603_v16 }
 0x2e7   :  { %v2159_v48 = vpop.permute.xlu0 %2158 }
 0x2e8   :  { %v2161_v42 = vpop.permute.xlu1 %2160  ;;  %2178 = vst.msk [vmem:[#allocation4 + $0x30] sm:$0xf] %vm1604_vm15, %v2159_v48 }
 0x2e9   :  { %2179 = vst.msk [vmem:[#allocation4 + $0x34] sm:$0xf] %vm1604_vm15, %v2161_v42 }
 0x2eb   :  { %v2605_v18 = vpop.permute.xlu0 %2604 }
 0x2ec   :  { %v2607_v54 = vpop.permute.xlu1 %2606  ;;  %v4092_v19 = vld [vmem:[#allocation4 + $0x20] sm:$0xff]   ;;  %2626 = vst.msk [vmem:[#allocation4 + $0x28] sm:$0xf] %vm2060_vm7, %v2605_v18  ;;  %v3109_v18 = vadd.f32 %v5464_v56, %v3086_v47 }
 0x2ed   :  { %2627 = vst.msk [vmem:[#allocation4 + $0x2c] sm:$0xf] %vm2060_vm7, %v2607_v54  ;;  %4015 = vmatprep.mubr.msk.bf16.mxu1 %vm2724_vm8, %v4092_v19 }
 0x2ef   :  { %v2163_v20 = vpop.permute.xlu0 %2162 }
 0x2f0   :  { %v2165_v9 = vpop.permute.xlu1 %2164  ;;  %2180 = vst.msk [vmem:[#allocation4 + $0x38] sm:$0xf] %vm1604_vm15, %v2163_v20 }
 0x2f1   :  { %2181 = vst.msk [vmem:[#allocation4 + $0x3c] sm:$0xf] %vm1604_vm15, %v2165_v9 }
 0x2f3   :  { %v2223_v21 = vpop.permute.xlu0 %2222 }
 0x2f4   :  { %v2225_v22 = vpop.permute.xlu1 %2224  ;;  %v4093_v43 = vld [vmem:[#allocation4 + $0x28] sm:$0xff]   ;;  %2242 = vst.msk [vmem:[#allocation4 + $0x30] sm:$0xf] %vm1669_vm0, %v2223_v21 }
 0x2f5   :  { %2243 = vst.msk [vmem:[#allocation4 + $0x34] sm:$0xf] %vm1669_vm0, %v2225_v22  ;;  %4016 = vmatmul.mubr.msk.bf16.gmra.mxu1 %vm2724_vm8, %v4093_v43 }
 0x2f7   :  { %v2227_v23 = vpop.permute.xlu0 %2226 }
 0x2f8   :  { %v2229_v61 = vpop.permute.xlu1 %2228  ;;  %2244 = vst.msk [vmem:[#allocation4 + $0x38] sm:$0xf] %vm1669_vm0, %v2227_v23 }
 0x2f9   :  { %2245 = vst.msk [vmem:[#allocation4 + $0x3c] sm:$0xf] %vm1669_vm0, %v2229_v61  ;;  %v4031_v61 = vpop.f32.mrf.mxu0 }
 0x2fb   :  { %v2288_v6 = vpop.permute.xlu0 %2287  ;;  %v3031_v23 = vpop.f32.mrf.mxu0 }
 0x2fc   :  { %v2290_v25 = vpop.permute.xlu1 %2289  ;;  %2307 = vst.msk [vmem:[#allocation4 + $0x30] sm:$0xf] %vm1734_vm2, %v2288_v6  ;;  %v3091_v6 = vmul.f32 %v4031_v61, %v5453_v59 }
 0x2fd   :  { %2308 = vst.msk [vmem:[#allocation4 + $0x34] sm:$0xf] %vm1734_vm2, %v2290_v25  ;;  %v4032_v25 = vpop.f32.mrf.mxu0 }
 0x2ff   :  { %v2292_v26 = vpop.permute.xlu0 %2291 }
 0x300   :  { %v2294_v45 = vpop.permute.xlu1 %2293  ;;  %2309 = vst.msk [vmem:[#allocation4 + $0x38] sm:$0xf] %vm1734_vm2, %v2292_v26 }
 0x301   :  { %2310 = vst.msk [vmem:[#allocation4 + $0x3c] sm:$0xf] %vm1734_vm2, %v2294_v45  ;;  %v3089_v45 = vmul.f32 %v5453_v59, %v3031_v23 }
 0x303   :  { %v2352_v31 = vpop.permute.xlu0 %2351 }
 0x304   :  { %v2354_v28 = vpop.permute.xlu1 %2353  ;;  %2371 = vst.msk [vmem:[#allocation4 + $0x30] sm:$0xf] %vm1799_vm3, %v2352_v31  ;;  %v3092_v31 = vmul.f32 %v4032_v25, %v5453_v59 }
 0x305   :  { %2372 = vst.msk [vmem:[#allocation4 + $0x34] sm:$0xf] %vm1799_vm3, %v2354_v28 }
 0x307   :  { %v2356_v35 = vpop.permute.xlu0 %2355 }
 0x308   :  { %v2358_v33 = vpop.permute.xlu1 %2357  ;;  %2373 = vst.msk [vmem:[#allocation4 + $0x38] sm:$0xf] %vm1799_vm3, %v2356_v35 }
 0x309   :  { %2374 = vst.msk [vmem:[#allocation4 + $0x3c] sm:$0xf] %vm1799_vm3, %v2358_v33  ;;  %v3034_v33 = vpop.f32.mrf.mxu0 }
 0x30b   :  { %v2416_v37 = vpop.permute.xlu0 %2415  ;;  %v4035_v60 = vpop.f32.mrf.mxu0 }
 0x30c   :  { %v2418_v36 = vpop.permute.xlu1 %2417  ;;  %2435 = vst.msk [vmem:[#allocation4 + $0x30] sm:$0xf] %vm1864_vm4, %v2416_v37  ;;  %v3095_v2 = vmul.f32 %v4035_v60, %v5453_v59 }
 0x30d   :  { %2436 = vst.msk [vmem:[#allocation4 + $0x34] sm:$0xf] %vm1864_vm4, %v2418_v36  ;;  %v3114_v36 = vadd.f32 %v5464_v56, %v3091_v6 }
 0x30f   :  { %v2420_v39 = vpop.permute.xlu0 %2419 }
 0x310   :  { %v2422_v38 = vpop.permute.xlu1 %2421  ;;  %2437 = vst.msk [vmem:[#allocation4 + $0x38] sm:$0xf] %vm1864_vm4, %v2420_v39  ;;  %v3112_v39 = vadd.f32 %v5464_v56, %v3089_v45 }
 0x311   :  { %2438 = vst.msk [vmem:[#allocation4 + $0x3c] sm:$0xf] %vm1864_vm4, %v2422_v38 }
 0x313   :  { %v2481_v29 = vpop.permute.xlu0 %2480 }
 0x314   :  { %v2483_v41 = vpop.permute.xlu1 %2482  ;;  %2500 = vst.msk [vmem:[#allocation4 + $0x30] sm:$0xf] %vm1930_vm5, %v2481_v29  ;;  %v3090_v29 = vmul.f32 %v5453_v59, %v3034_v33 }
 0x315   :  { %2501 = vst.msk [vmem:[#allocation4 + $0x34] sm:$0xf] %vm1930_vm5, %v2483_v41 }
 0x317   :  { %v2485_v44 = vpop.permute.xlu0 %2484 }
 0x318   :  { %v2487_v30 = vpop.permute.xlu1 %2486  ;;  %2502 = vst.msk [vmem:[#allocation4 + $0x38] sm:$0xf] %vm1930_vm5, %v2485_v44 }
 0x319   :  { %2503 = vst.msk [vmem:[#allocation4 + $0x3c] sm:$0xf] %vm1930_vm5, %v2487_v30 }
 0x31b   :  { %v2545_v24 = vpop.permute.xlu0 %2544 }
 0x31c   :  { %v2547_v46 = vpop.permute.xlu1 %2546  ;;  %2564 = vst.msk [vmem:[#allocation4 + $0x30] sm:$0xf] %vm1995_vm6, %v2545_v24  ;;  %v3115_v24 = vadd.f32 %v5464_v56, %v3092_v31 }
 0x31d   :  { %2565 = vst.msk [vmem:[#allocation4 + $0x34] sm:$0xf] %vm1995_vm6, %v2547_v46 }
 0x31f   :  { %v2549_v49 = vpop.permute.xlu0 %2548 }
 0x320   :  { %v2551_v40 = vpop.permute.xlu1 %2550  ;;  %2566 = vst.msk [vmem:[#allocation4 + $0x38] sm:$0xf] %vm1995_vm6, %v2549_v49 }
 0x321   :  { %2567 = vst.msk [vmem:[#allocation4 + $0x3c] sm:$0xf] %vm1995_vm6, %v2551_v40 }
 0x323   :  { %v2609_v51 = vpop.permute.xlu0 %2608 }
 0x324   :  { %v2611_v50 = vpop.permute.xlu1 %2610  ;;  %2628 = vst.msk [vmem:[#allocation4 + $0x30] sm:$0xf] %vm2060_vm7, %v2609_v51 }
 0x325   :  { %2629 = vst.msk [vmem:[#allocation4 + $0x34] sm:$0xf] %vm2060_vm7, %v2611_v50 }
 0x327   :  { %v2613_v34 = vpop.permute.xlu0 %2612 }
 0x328   :  { %v2615_v52 = vpop.permute.xlu1 %2614  ;;  %2630 = vst.msk [vmem:[#allocation4 + $0x38] sm:$0xf] %vm2060_vm7, %v2613_v34  ;;  %v3113_v34 = vadd.f32 %v5464_v56, %v3090_v29 }
 0x329   :  { %2631 = vst.msk [vmem:[#allocation4 + $0x3c] sm:$0xf] %vm2060_vm7, %v2615_v52 }
 0x32c   :  { %v4094_v57 = vld [vmem:[#allocation4 + $0x30] sm:$0xff]  }
 0x32d   :  { %4019 = vmatprep.mubr.msk.bf16.mxu1 %vm2724_vm8, %v4094_v57 }
 0x330   :  { %v4095_v58 = vld [vmem:[#allocation4 + $0x38] sm:$0xff]  }
 0x331   :  { %4020 = vmatmul.mubr.msk.bf16.gmra.mxu1 %vm2724_vm8, %v4095_v58 }
 0x34d   :  { %v4009_v63 = vpop.f32.mrf.mxu1 }
 0x34e   :  { %v2859_v1 = vmul.f32 %v4009_v63, %v5458_v10  ;;  %v3047_v63 = vpop.f32.mrf.mxu0 }
 0x34f   :  { %v2787_v4 = vpop.f32.mrf.mxu1  ;;  %v3093_v3 = vmul.f32 %v5453_v59, %v3047_v63 }
 0x350   :  { %v2882_v7 = vadd.f32 %v5470_v0, %v2859_v1  ;;  %v2857_v8 = vmul.f32 %v5458_v10, %v2787_v4  ;;  %v4036_v1 = vpop.f32.mrf.mxu0 }
 0x351   :  { %v4010_v27 = vpop.f32.mrf.mxu1 }
 0x352   :  { %v3126_v53 = vadd.f32 %v3110_v5, %v2882_v7  ;;  %v2880_v12 = vadd.f32 %v5470_v0, %v2857_v8  ;;  %v2860_v13 = vmul.f32 %v4010_v27, %v5458_v10  ;;  %v3096_v7 = vmul.f32 %v4036_v1, %v5453_v59  ;;  %v3050_v8 = vpop.f32.mrf.mxu0 }
 0x353   :  { %v2790_v16 = vpop.f32.mrf.mxu1  ;;  %v3118_v27 = vadd.f32 %v5464_v56, %v3095_v2 }
 0x354   :  { %v3142_v17 = vmax.f32 %v3126_v53, 0.0  ;;  %v3124_v42 = vadd.f32 %v3108_v11, %v2880_v12  ;;  %v2883_v48 = vadd.f32 %v5470_v0, %v2860_v13  ;;  %v2858_v54 = vmul.f32 %v5458_v10, %v2790_v16  ;;  %v4039_v45 = vpop.f32.mrf.mxu0 }
 0x355   :  { %v3116_v12 = vadd.f32 %v5464_v56, %v3093_v3  ;;  %v3099_v31 = vmul.f32 %v4039_v45, %v5453_v59 }
 0x356   :  { %3158 = vst.msk [vmem:[%s5608_s10 + $0x10] sm:$0xff] %vm1440_vm12, %v3142_v17  ;;  %v3140_v19 = vmax.f32 %v3124_v42, 0.0  ;;  %v3127_v9 = vadd.f32 %v3111_v14, %v2883_v48  ;;  %v2881_v20 = vadd.f32 %v5470_v0, %v2858_v54  ;;  %v3094_v14 = vmul.f32 %v5453_v59, %v3050_v8 }
 0x357   :  { %v3119_v48 = vadd.f32 %v5464_v56, %v3096_v7 }
 0x358   :  { %3156 = vst.msk [vmem:[%s5608_s10] sm:$0xff] %vm1440_vm12, %v3140_v19  ;;  %v3143_v22 = vmax.f32 %v3127_v9, 0.0  ;;  %v3125_v21 = vadd.f32 %v3109_v18, %v2881_v20 }
 0x35a   :  { %3159 = vst.msk [vmem:[%s5608_s10 + $0x18] sm:$0xff] %vm1440_vm12, %v3143_v22  ;;  %v3141_v43 = vmax.f32 %v3125_v21, 0.0  ;;  %v3117_v22 = vadd.f32 %v5464_v56, %v3094_v14 }
 0x35c   :  { %3157 = vst.msk [vmem:[%s5608_s10 + $0x8] sm:$0xff] %vm1440_vm12, %v3141_v43 }
 0x371   :  { %v4013_v26 = vpop.f32.mrf.mxu1 }
 0x372   :  { %v2863_v28 = vmul.f32 %v4013_v26, %v5458_v10  ;;  %v3063_v26 = vpop.f32.mrf.mxu0 }
 0x373   :  { %v2803_v35 = vpop.f32.mrf.mxu1  ;;  %v3097_v33 = vmul.f32 %v5453_v59, %v3063_v26 }
 0x374   :  { %v2886_v37 = vadd.f32 %v5470_v0, %v2863_v28  ;;  %v2861_v38 = vmul.f32 %v5458_v10, %v2803_v35  ;;  %v4040_v28 = vpop.f32.mrf.mxu0 }
 0x375   :  { %v4014_v41 = vpop.f32.mrf.mxu1 }
 0x376   :  { %v3130_v30 = vadd.f32 %v3114_v36, %v2886_v37  ;;  %v2884_v44 = vadd.f32 %v5470_v0, %v2861_v38  ;;  %v2864_v46 = vmul.f32 %v4014_v41, %v5458_v10  ;;  %v3100_v37 = vmul.f32 %v4040_v28, %v5453_v59  ;;  %v3066_v38 = vpop.f32.mrf.mxu0 }
 0x377   :  { %v2806_v40 = vpop.f32.mrf.mxu1  ;;  %v3122_v41 = vadd.f32 %v5464_v56, %v3099_v31 }
 0x378   :  { %v3146_v49 = vmax.f32 %v3130_v30, 0.0  ;;  %v3128_v50 = vadd.f32 %v3112_v39, %v2884_v44  ;;  %v2887_v51 = vadd.f32 %v5470_v0, %v2864_v46  ;;  %v2862_v52 = vmul.f32 %v5458_v10, %v2806_v40 }
 0x379   :  { %v3120_v44 = vadd.f32 %v5464_v56, %v3097_v33 }
 0x37a   :  { %3162 = vst.msk [vmem:[%s5608_s10 + $0x30] sm:$0xff] %vm1440_vm12, %v3146_v49  ;;  %v3144_v57 = vmax.f32 %v3128_v50, 0.0  ;;  %v3131_v58 = vadd.f32 %v3115_v24, %v2887_v51  ;;  %v2885_v15 = vadd.f32 %v5470_v0, %v2862_v52  ;;  %v3098_v24 = vmul.f32 %v5453_v59, %v3066_v38 }
 0x37b   :  { %v3123_v51 = vadd.f32 %v5464_v56, %v3100_v37 }
 0x37c   :  { %3160 = vst.msk [vmem:[%s5608_s10 + $0x20] sm:$0xff] %vm1440_vm12, %v3144_v57  ;;  %v3147_v32 = vmax.f32 %v3131_v58, 0.0  ;;  %v3129_v62 = vadd.f32 %v3113_v34, %v2885_v15 }
 0x37e   :  { %3163 = vst.msk [vmem:[%s5608_s10 + $0x38] sm:$0xff] %vm1440_vm12, %v3147_v32  ;;  %v3145_v55 = vmax.f32 %v3129_v62, 0.0  ;;  %v3121_v32 = vadd.f32 %v5464_v56, %v3098_v24 }
 0x380   :  { %3161 = vst.msk [vmem:[%s5608_s10 + $0x28] sm:$0xff] %vm1440_vm12, %v3145_v55 }
 0x3b5   :  { %v4017_v4 = vpop.f32.mrf.mxu1 }
 0x3b6   :  { %v2867_v5 = vmul.f32 %v4017_v4, %v5458_v10 }
 0x3b7   :  { %v2819_v11 = vpop.f32.mrf.mxu1 }
 0x3b8   :  { %v2890_v47 = vadd.f32 %v5470_v0, %v2867_v5  ;;  %v2865_v53 = vmul.f32 %v5458_v10, %v2819_v11 }
 0x3b9   :  { %v4018_v13 = vpop.f32.mrf.mxu1 }
 0x3ba   :  { %v3134_v16 = vadd.f32 %v3118_v27, %v2890_v47  ;;  %v2888_v17 = vadd.f32 %v5470_v0, %v2865_v53  ;;  %v2868_v42 = vmul.f32 %v4018_v13, %v5458_v10 }
 0x3bb   :  { %v2822_v54 = vpop.f32.mrf.mxu1 }
 0x3bc   :  { %v3150_v18 = vmax.f32 %v3134_v16, 0.0  ;;  %v3132_v19 = vadd.f32 %v3116_v12, %v2888_v17  ;;  %v2891_v9 = vadd.f32 %v5470_v0, %v2868_v42  ;;  %v2866_v20 = vmul.f32 %v5458_v10, %v2822_v54 }
 0x3be   :  { %3166 = vst.msk [vmem:[%s5608_s10 + $0x50] sm:$0xff] %vm1440_vm12, %v3150_v18  ;;  %v3148_v21 = vmax.f32 %v3132_v19, 0.0  ;;  %v3135_v43 = vadd.f32 %v3119_v48, %v2891_v9  ;;  %v2889_v61 = vadd.f32 %v5470_v0, %v2866_v20 }
 0x3c0   :  { %3164 = vst.msk [vmem:[%s5608_s10 + $0x40] sm:$0xff] %vm1440_vm12, %v3148_v21  ;;  %v3151_v23 = vmax.f32 %v3135_v43, 0.0  ;;  %v3133_v25 = vadd.f32 %v3117_v22, %v2889_v61 }
 0x3c2   :  { %3167 = vst.msk [vmem:[%s5608_s10 + $0x58] sm:$0xff] %vm1440_vm12, %v3151_v23  ;;  %v3149_v6 = vmax.f32 %v3133_v25, 0.0 }
 0x3c4   :  { %3165 = vst.msk [vmem:[%s5608_s10 + $0x48] sm:$0xff] %vm1440_vm12, %v3149_v6 }
 0x3f1   :  { %v4021_v35 = vpop.f32.mrf.mxu1 }
 0x3f2   :  { %v2871_v36 = vmul.f32 %v4021_v35, %v5458_v10 }
 0x3f3   :  { %v2835_v39 = vpop.f32.mrf.mxu1 }
 0x3f4   :  { %v2894_v29 = vadd.f32 %v5470_v0, %v2871_v36  ;;  %v2869_v30 = vmul.f32 %v5458_v10, %v2835_v39 }
 0x3f5   :  { %v4022_v46 = vpop.f32.mrf.mxu1 }
 0x3f6   :  { %v3138_v40 = vadd.f32 %v3122_v41, %v2894_v29  ;;  %v2892_v49 = vadd.f32 %v5470_v0, %v2869_v30  ;;  %v2872_v50 = vmul.f32 %v4022_v46, %v5458_v10 }
 0x3f7   :  { %v2838_v52 = vpop.f32.mrf.mxu1 }
 0x3f8   :  { %v3154_v34 = vmax.f32 %v3138_v40, 0.0  ;;  %v3136_v57 = vadd.f32 %v3120_v44, %v2892_v49  ;;  %v2895_v58 = vadd.f32 %v5470_v0, %v2872_v50  ;;  %v2870_v15 = vmul.f32 %v5458_v10, %v2838_v52 }
 0x3fa   :  { %3170 = vst.msk [vmem:[%s5608_s10 + $0x70] sm:$0xff] %vm1440_vm12, %v3154_v34  ;;  %v3152_v59 = vmax.f32 %v3136_v57, 0.0  ;;  %v3139_v62 = vadd.f32 %v3123_v51, %v2895_v58  ;;  %v2893_v55 = vadd.f32 %v5470_v0, %v2870_v15 }
 0x3fc   :  { %3168 = vst.msk [vmem:[%s5608_s10 + $0x60] sm:$0xff] %vm1440_vm12, %v3152_v59  ;;  %v3155_v60 = vmax.f32 %v3139_v62, 0.0  ;;  %v3137_v63 = vadd.f32 %v3121_v32, %v2893_v55 }
 0x3fe   :  { %3171 = vst.msk [vmem:[%s5608_s10 + $0x78] sm:$0xff] %vm1440_vm12, %v3155_v60  ;;  %v3153_v10 = vmax.f32 %v3137_v63, 0.0 }
 0x400   :  { %3169 = vst.msk [vmem:[%s5608_s10 + $0x68] sm:$0xff] %vm1440_vm12, %v3153_v10 }

</bundles_post_ra>
